<compile_context>
chip_gen: v5e
topology: v5e:2x2
jax: 0.10.0
libtpu: 0.0.40
codegen_flags: <defaults>
</compile_context>

<pallas_src>
import math

import numpy as np
import jax
import jax.numpy as jnp
from jax import lax
from jax.experimental import pallas as pl
from jax.experimental.pallas import tpu as pltpu

N_CLASSES = 5
TILE_N = 8          # images per grid step (one sublane group); tunable.


# ----------------------------------------------------------------------------
# One-time weight re-layout (PyTorch layout -> kernel layout).
# ----------------------------------------------------------------------------
def prepare_params(p):
    """Convert PyTorch-layout parameters into kernel-friendly matrices (once)."""
    w1 = np.asarray(p["conv1_w"], np.float32)    # (6, 1, 3, 3)  OIHW
    b1 = np.asarray(p["conv1_b"], np.float32)    # (6,)
    w2 = np.asarray(p["conv2_w"], np.float32)    # (16, 6, 3, 3)
    b2 = np.asarray(p["conv2_b"], np.float32)    # (16,)
    f1w = np.asarray(p["fc1_w"], np.float32)     # (120, 64)
    f2w = np.asarray(p["fc2_w"], np.float32)     # (84, 120)
    f3w = np.asarray(p["fc3_w"], np.float32)     # (5, 84)

    # conv1: pooled output row i consumes input rows 2i+rr (rr = 0..3).
    # w1row[rr] maps a full 14-wide input row to the 144 = 6(j)*4(corner)*6(co)
    # pre-pool conv1 outputs of that pooled row (column Q = j*24 + corner*6 + co).
    w1row = np.zeros((4, 14, 144), np.float32)
    for rr in range(4):
        for a in range(2):
            di = rr - a
            if not 0 <= di <= 2:
                continue
            for b in range(2):
                corner = a * 2 + b
                for j in range(6):
                    q0 = j * 24 + corner * 6
                    for dj in range(3):
                        c = 2 * j + b + dj
                        w1row[rr, c, q0:q0 + 6] = w1[:, 0, di, dj]

    # conv2: pooled output (i2, j2) consumes the 4x4 block of pooled1 positions
    # (2i2+rr, 2j2+cc).  w2blk[rr*4+cc] maps that position's 6 channels to the
    # 64 = 4(corner)*16(co) pre-pool conv2 outputs (column Q2 = corner*16 + co).
    w2blk = np.zeros((16, 6, 64), np.float32)
    for rr in range(4):
        for cc in range(4):
            k = rr * 4 + cc
            for a in range(2):
                di = rr - a
                if not 0 <= di <= 2:
                    continue
                for b in range(2):
                    dj = cc - b
                    if not 0 <= dj <= 2:
                        continue
                    corner = a * 2 + b
                    w2blk[k, :, corner * 16:(corner + 1) * 16] = w2[:, :, di, dj].T

    # Kernel flatten order is m = pos2*16 + co; PyTorch x.view(-1, 64) order is
    # k = co*4 + pos2 (C, H, W).  Fold the permutation into fc1's rows.
    perm = np.array([co * 4 + pos2 for pos2 in range(4) for co in range(16)])
    wf1 = f1w.T[perm]                            # (64, 120)
    wf2 = f2w.T                                  # (120, 84)
    wf3 = f3w.T                                  # (84, 5)

    bias = np.zeros((8, 256), np.float32)        # one packed bias buffer (1 DMA)
    bias[0, :144] = np.tile(b1, 24)              # conv1 bias tiled over (j, corner)
    bias[1, :64] = np.tile(b2, 4)                # conv2 bias tiled over corner
    bias[2, :120] = np.asarray(p["fc1_b"], np.float32)
    bias[3, :84] = np.asarray(p["fc2_b"], np.float32)
    bias[4, :N_CLASSES] = np.asarray(p["fc3_b"], np.float32)

    return {
        "w1row": jnp.asarray(w1row),
        "w2blk": jnp.asarray(w2blk),
        "wf1": jnp.asarray(wf1),
        "wf2": jnp.asarray(wf2),
        "wf3": jnp.asarray(wf3),
        "bias": jnp.asarray(bias),
    }


# ----------------------------------------------------------------------------
# The fused Pallas kernel: whole Net.forward for one tile of TILE_N images.
# ----------------------------------------------------------------------------
def _net_kernel(x_ref, w1_ref, w2_ref, f1_ref, f2_ref, f3_ref, b_ref,
                o_ref, p1_s):
    """
    x_ref  : (14, TILE_N, 14)   input rows, layout (H, n, W)
    w1_ref : (4, 14, 144)       conv1 blocks, per relative input row rr
    w2_ref : (16, 6, 64)        conv2 blocks, per relative pooled1 position
    f1_ref : (64, 120)  f2_ref : (120, 84)  f3_ref : (84, 5)
    b_ref  : (8, 256)           packed biases
    o_ref  : (TILE_N, 5)        logits
    p1_s   : (36, TILE_N, 6)    VMEM scratch: pooled conv1 activations (6x6 map)
    """
    f32 = jnp.float32
    b1 = b_ref[0:1, 0:144]
    b2 = b_ref[1:2, 0:64]

    # ---- conv1 (1->6, k=3) + ReLU + fused 2x2 max-pool, per pooled row i ----
    for i in range(6):
        y = jnp.dot(x_ref[2 * i], w1_ref[0], preferred_element_type=f32)
        for rr in range(1, 4):
            y = y + jnp.dot(x_ref[2 * i + rr], w1_ref[rr],
                            preferred_element_type=f32)
        y = jnp.maximum(y + b1, 0.0)                      # (TILE_N, 144)
        for j in range(6):                                # pool over 4 corners
            q = j * 24
            m = jnp.maximum(
                jnp.maximum(y[:, q:q + 6], y[:, q + 6:q + 12]),
                jnp.maximum(y[:, q + 12:q + 18], y[:, q + 18:q + 24]))
            p1_s[i * 6 + j] = m                           # pooled1[:, :, i, j]

    # ---- conv2 (6->16, k=3) + ReLU + fused 2x2 max-pool ----
    pooled2 = []
    for i2 in range(2):
        for j2 in range(2):
            acc = b2
            for rr in range(4):
                for cc in range(4):
                    pos = (2 * i2 + rr) * 6 + (2 * j2 + cc)
                    acc = acc + jnp.dot(p1_s[pos], w2_ref[rr * 4 + cc],
                                        preferred_element_type=f32)
            yc = jnp.maximum(acc, 0.0)                    # (TILE_N, 64)
            pooled2.append(
                jnp.maximum(jnp.maximum(yc[:, 0:16], yc[:, 16:32]),
                            jnp.maximum(yc[:, 32:48], yc[:, 48:64])))

    # ---- fc1 -> ReLU -> fc2 -> ReLU -> fc3 (flatten folded into fc1 blocks) --
    h = jnp.dot(pooled2[0], f1_ref[0:16, :], preferred_element_type=f32)
    for p2 in range(1, 4):
        h = h + jnp.dot(pooled2[p2], f1_ref[p2 * 16:(p2 + 1) * 16, :],
                        preferred_element_type=f32)
    h = jnp.maximum(h + b_ref[2:3, 0:120], 0.0)
    h = jnp.maximum(jnp.dot(h, f2_ref[...], preferred_element_type=f32)
                    + b_ref[3:4, 0:84], 0.0)
    out = (jnp.dot(h, f3_ref[...], preferred_element_type=f32)
           + b_ref[4:5, 0:N_CLASSES])
    o_ref[...] = out.astype(o_ref.dtype)


def net_forward(x_nchw, kp):
    """Pallas implementation of Net.forward.  Input: NCHW (N, 1, 14, 14)."""
    N, C, H, W = x_nchw.shape
    assert C == 1 and H == 14 and W == 14
    n_pad = ((N + TILE_N - 1) // TILE_N) * TILE_N

    x = jnp.transpose(x_nchw[:, 0, :, :], (1, 0, 2))      # (14, N, 14)
    if n_pad != N:
        x = jnp.pad(x, ((0, 0), (0, n_pad - N), (0, 0)))

    out = pl.pallas_call(
        _net_kernel,
        out_shape=jax.ShapeDtypeStruct((n_pad, N_CLASSES), jnp.float32),
        grid_spec=pltpu.PrefetchScalarGridSpec(
            num_scalar_prefetch=0,
            grid=(n_pad // TILE_N,),
            in_specs=[
                pl.BlockSpec((14, TILE_N, 14), lambda i: (0, i, 0)),   # input
                pl.BlockSpec((4, 14, 144), lambda i: (0, 0, 0)),       # conv1
                pl.BlockSpec((16, 6, 64), lambda i: (0, 0, 0)),        # conv2
                pl.BlockSpec((64, 120), lambda i: (0, 0)),             # fc1
                pl.BlockSpec((120, 84), lambda i: (0, 0)),             # fc2
                pl.BlockSpec((84, N_CLASSES), lambda i: (0, 0)),       # fc3
                pl.BlockSpec((8, 256), lambda i: (0, 0)),              # biases
            ],
            out_specs=pl.BlockSpec((TILE_N, N_CLASSES), lambda i: (i, 0)),
            scratch_shapes=[pltpu.VMEM((36, TILE_N, 6), jnp.float32)],
        ),
        compiler_params=pltpu.CompilerParams(
            dimension_semantics=("parallel",)),
    )(x, kp["w1row"], kp["w2blk"], kp["wf1"], kp["wf2"], kp["wf3"], kp["bias"])
    return out[:N]


# ----------------------------------------------------------------------------
# Deterministic parameter init (PyTorch default-style uniform(-1/sqrt(fan_in)))
# ----------------------------------------------------------------------------
def init_params(key):
    def uniform(k, shape, fan_in):
        bound = 1.0 / math.sqrt(fan_in)
        return jax.random.uniform(k, shape, jnp.float32, -bound, bound)

    ks = jax.random.split(key, 10)
    return {
        "conv1_w": uniform(ks[0], (6, 1, 3, 3), 1 * 9),
        "conv1_b": uniform(ks[1], (6,), 1 * 9),
        "conv2_w": uniform(ks[2], (16, 6, 3, 3), 6 * 9),
        "conv2_b": uniform(ks[3], (16,), 6 * 9),
        "fc1_w": uniform(ks[4], (120, 64), 64),
        "fc1_b": uniform(ks[5], (120,), 64),
        "fc2_w": uniform(ks[6], (84, 120), 120),
        "fc2_b": uniform(ks[7], (84,), 120),
        "fc3_w": uniform(ks[8], (N_CLASSES, 84), 84),
        "fc3_b": uniform(ks[9], (N_CLASSES,), 84),
    }


# Pure-JAX reference (mirrors the PyTorch forward exactly) for validation.
def ref_forward(x_nchw, p):
    y = lax.conv_general_dilated(
        x_nchw, p["conv1_w"], (1, 1), "VALID",
        dimension_numbers=("NCHW", "OIHW", "NCHW"))
    y = jnp.maximum(y + p["conv1_b"][None, :, None, None], 0.0)
    y = lax.reduce_window(y, -jnp.inf, lax.max, (1, 1, 2, 2), (1, 1, 2, 2), "VALID")
    y = lax.conv_general_dilated(
        y, p["conv2_w"], (1, 1), "VALID",
        dimension_numbers=("NCHW", "OIHW", "NCHW"))
    y = jnp.maximum(y + p["conv2_b"][None, :, None, None], 0.0)
    y = lax.reduce_window(y, -jnp.inf, lax.max, (1, 1, 2, 2), (1, 1, 2, 2), "VALID")
    flat = y.reshape(y.shape[0], -1)                      # NCHW flatten
    h = jnp.maximum(flat @ p["fc1_w"].T + p["fc1_b"], 0.0)
    h = jnp.maximum(h @ p["fc2_w"].T + p["fc2_b"], 0.0)
    return h @ p["fc3_w"].T + p["fc3_b"]


if __name__ == "__main__":
    key = jax.random.PRNGKey(0)
    k_x, k_p = jax.random.split(key)

    params = init_params(k_p)          # PyTorch-layout params
    kparams = prepare_params(params)   # kernel-layout params (built once)

    fwd = jax.jit(net_forward)

    # Small batch (2 images -> padded to one 8-image tile, grid=(1,)).
    x = jax.random.normal(k_x, (2, 1, 14, 14), jnp.float32)        # NCHW
    out = jax.block_until_ready(fwd(x, kparams))
    ref = ref_forward(x, params)
    assert out.shape == (2, N_CLASSES)
    assert jnp.allclose(out, ref, atol=3e-3, rtol=3e-3), (out, ref)

    # Larger batch exercising the batch-tiled, megacore-parallel grid path.
    x2 = jax.random.normal(jax.random.PRNGKey(1), (16, 1, 14, 14), jnp.float32)
    out2 = jax.block_until_ready(fwd(x2, kparams))
    ref2 = ref_forward(x2, params)
    assert out2.shape == (16, N_CLASSES)
    assert jnp.allclose(out2, ref2, atol=3e-3, rtol=3e-3), (out2, ref2)

    print("KERNEL_OK")
</pallas_src>

<mosaic_0001>
module attributes {stable_mosaic.version = 11 : i64} {
  func.func @_net_kernel(%arg0: i32, %arg1: memref<14x8x14xf32, #tpu.memory_space<vmem>>, %arg2: memref<4x14x144xf32, #tpu.memory_space<vmem>>, %arg3: memref<16x6x64xf32, #tpu.memory_space<vmem>>, %arg4: memref<64x120xf32, #tpu.memory_space<vmem>>, %arg5: memref<120x84xf32, #tpu.memory_space<vmem>>, %arg6: memref<84x5xf32, #tpu.memory_space<vmem>>, %arg7: memref<8x256xf32, #tpu.memory_space<vmem>>, %arg8: memref<8x5xf32, #tpu.memory_space<vmem>>, %arg9: memref<36x8x6xf32, #tpu.memory_space<vmem>>) attributes {dimension_semantics = [#tpu.dimension_semantics<parallel>], iteration_bounds = array<i64: 1>, scalar_prefetch = 0 : i64, scratch_operands = 1 : i64, tpu.core_type = #tpu.core_type<tc>, window_params = [{transform_indices = @transform_0, window_bounds = array<i64: 14, 8, 14>}, {pipeline_mode = #tpu.pipeline_mode<synchronous>, transform_indices = @transform_1, window_bounds = array<i64: 4, 14, 144>}, {pipeline_mode = #tpu.pipeline_mode<synchronous>, transform_indices = @transform_2, window_bounds = array<i64: 16, 6, 64>}, {pipeline_mode = #tpu.pipeline_mode<synchronous>, transform_indices = @transform_3, window_bounds = array<i64: 64, 120>}, {pipeline_mode = #tpu.pipeline_mode<synchronous>, transform_indices = @transform_4, window_bounds = array<i64: 120, 84>}, {pipeline_mode = #tpu.pipeline_mode<synchronous>, transform_indices = @transform_5, window_bounds = array<i64: 84, 5>}, {pipeline_mode = #tpu.pipeline_mode<synchronous>, transform_indices = @transform_6, window_bounds = array<i64: 8, 256>}, {transform_indices = @transform_7, window_bounds = array<i64: 8, 5>}]} {
    %c0 = arith.constant 0 : index
    %c0_0 = arith.constant 0 : index
    %0 = vector.load %arg7[%c0, %c0_0] : memref<8x256xf32, #tpu.memory_space<vmem>>, vector<1x144xf32>
    %c1 = arith.constant 1 : index
    %c0_1 = arith.constant 0 : index
    %1 = vector.load %arg7[%c1, %c0_1] : memref<8x256xf32, #tpu.memory_space<vmem>>, vector<1x64xf32>
    %c0_2 = arith.constant 0 : index
    %c0_3 = arith.constant 0 : index
    %c0_4 = arith.constant 0 : index
    %2 = vector.load %arg1[%c0_2, %c0_3, %c0_4] : memref<14x8x14xf32, #tpu.memory_space<vmem>>, vector<1x8x14xf32>
    %3 = vector.shape_cast %2 : vector<1x8x14xf32> to vector<8x14xf32>
    %c0_5 = arith.constant 0 : index
    %c0_6 = arith.constant 0 : index
    %c0_7 = arith.constant 0 : index
    %4 = vector.load %arg2[%c0_5, %c0_6, %c0_7] : memref<4x14x144xf32, #tpu.memory_space<vmem>>, vector<1x14x144xf32>
    %5 = vector.shape_cast %4 : vector<1x14x144xf32> to vector<14x144xf32>
    %cst = arith.constant dense<0.000000e+00> : vector<8x144xf32>
    %6 = tpu.matmul %3, %5, %cst {dimension_numbers = #tpu.dot_dimension_numbers<[1], [0], [0], [1], [0, 0, 1, 1], [], []>} : vector<8x14xf32>, vector<14x144xf32>, vector<8x144xf32> -> vector<8x144xf32>
    %c1_8 = arith.constant 1 : index
    %c0_9 = arith.constant 0 : index
    %c0_10 = arith.constant 0 : index
    %7 = vector.load %arg1[%c1_8, %c0_9, %c0_10] : memref<14x8x14xf32, #tpu.memory_space<vmem>>, vector<1x8x14xf32>
    %8 = vector.shape_cast %7 : vector<1x8x14xf32> to vector<8x14xf32>
    %c1_11 = arith.constant 1 : index
    %c0_12 = arith.constant 0 : index
    %c0_13 = arith.constant 0 : index
    %9 = vector.load %arg2[%c1_11, %c0_12, %c0_13] : memref<4x14x144xf32, #tpu.memory_space<vmem>>, vector<1x14x144xf32>
    %10 = vector.shape_cast %9 : vector<1x14x144xf32> to vector<14x144xf32>
    %cst_14 = arith.constant dense<0.000000e+00> : vector<8x144xf32>
    %11 = tpu.matmul %8, %10, %cst_14 {dimension_numbers = #tpu.dot_dimension_numbers<[1], [0], [0], [1], [0, 0, 1, 1], [], []>} : vector<8x14xf32>, vector<14x144xf32>, vector<8x144xf32> -> vector<8x144xf32>
    %12 = arith.addf %6, %11 : vector<8x144xf32>
    %c2 = arith.constant 2 : index
    %c0_15 = arith.constant 0 : index
    %c0_16 = arith.constant 0 : index
    %13 = vector.load %arg1[%c2, %c0_15, %c0_16] : memref<14x8x14xf32, #tpu.memory_space<vmem>>, vector<1x8x14xf32>
    %14 = vector.shape_cast %13 : vector<1x8x14xf32> to vector<8x14xf32>
    %c2_17 = arith.constant 2 : index
    %c0_18 = arith.constant 0 : index
    %c0_19 = arith.constant 0 : index
    %15 = vector.load %arg2[%c2_17, %c0_18, %c0_19] : memref<4x14x144xf32, #tpu.memory_space<vmem>>, vector<1x14x144xf32>
    %16 = vector.shape_cast %15 : vector<1x14x144xf32> to vector<14x144xf32>
    %cst_20 = arith.constant dense<0.000000e+00> : vector<8x144xf32>
    %17 = tpu.matmul %14, %16, %cst_20 {dimension_numbers = #tpu.dot_dimension_numbers<[1], [0], [0], [1], [0, 0, 1, 1], [], []>} : vector<8x14xf32>, vector<14x144xf32>, vector<8x144xf32> -> vector<8x144xf32>
    %18 = arith.addf %12, %17 : vector<8x144xf32>
    %c3 = arith.constant 3 : index
    %c0_21 = arith.constant 0 : index
    %c0_22 = arith.constant 0 : index
    %19 = vector.load %arg1[%c3, %c0_21, %c0_22] : memref<14x8x14xf32, #tpu.memory_space<vmem>>, vector<1x8x14xf32>
    %20 = vector.shape_cast %19 : vector<1x8x14xf32> to vector<8x14xf32>
    %c3_23 = arith.constant 3 : index
    %c0_24 = arith.constant 0 : index
    %c0_25 = arith.constant 0 : index
    %21 = vector.load %arg2[%c3_23, %c0_24, %c0_25] : memref<4x14x144xf32, #tpu.memory_space<vmem>>, vector<1x14x144xf32>
    %22 = vector.shape_cast %21 : vector<1x14x144xf32> to vector<14x144xf32>
    %cst_26 = arith.constant dense<0.000000e+00> : vector<8x144xf32>
    %23 = tpu.matmul %20, %22, %cst_26 {dimension_numbers = #tpu.dot_dimension_numbers<[1], [0], [0], [1], [0, 0, 1, 1], [], []>} : vector<8x14xf32>, vector<14x144xf32>, vector<8x144xf32> -> vector<8x144xf32>
    %24 = arith.addf %18, %23 : vector<8x144xf32>
    %25 = vector.broadcast %0 : vector<1x144xf32> to vector<8x144xf32>
    %26 = arith.addf %24, %25 : vector<8x144xf32>
    %cst_27 = arith.constant 0.000000e+00 : f32
    %27 = vector.broadcast %cst_27 : f32 to vector<8x144xf32>
    %28 = arith.maximumf %26, %27 : vector<8x144xf32>
    %29 = vector.extract_strided_slice %28 {offsets = [0, 0], sizes = [8, 6], strides = [1, 1]} : vector<8x144xf32> to vector<8x6xf32>
    %30 = vector.extract_strided_slice %28 {offsets = [0, 6], sizes = [8, 6], strides = [1, 1]} : vector<8x144xf32> to vector<8x6xf32>
    %31 = arith.maximumf %29, %30 : vector<8x6xf32>
    %32 = vector.extract_strided_slice %28 {offsets = [0, 12], sizes = [8, 6], strides = [1, 1]} : vector<8x144xf32> to vector<8x6xf32>
    %33 = vector.extract_strided_slice %28 {offsets = [0, 18], sizes = [8, 6], strides = [1, 1]} : vector<8x144xf32> to vector<8x6xf32>
    %34 = arith.maximumf %32, %33 : vector<8x6xf32>
    %35 = arith.maximumf %31, %34 : vector<8x6xf32>
    %c0_28 = arith.constant 0 : index
    %c0_29 = arith.constant 0 : index
    %c0_30 = arith.constant 0 : index
    %36 = vector.load %arg9[%c0_28, %c0_29, %c0_30] : memref<36x8x6xf32, #tpu.memory_space<vmem>>, vector<1x8x6xf32>
    %37 = vector.shape_cast %36 : vector<1x8x6xf32> to vector<8x6xf32>
    %38 = vector.shape_cast %35 : vector<8x6xf32> to vector<1x8x6xf32>
    tpu.vector_store %arg9[%c0_28, %c0_29, %c0_30], %38 {strides = array<i32>} : memref<36x8x6xf32, #tpu.memory_space<vmem>>, vector<1x8x6xf32>,
    %39 = vector.extract_strided_slice %28 {offsets = [0, 24], sizes = [8, 6], strides = [1, 1]} : vector<8x144xf32> to vector<8x6xf32>
    %40 = vector.extract_strided_slice %28 {offsets = [0, 30], sizes = [8, 6], strides = [1, 1]} : vector<8x144xf32> to vector<8x6xf32>
    %41 = arith.maximumf %39, %40 : vector<8x6xf32>
    %42 = vector.extract_strided_slice %28 {offsets = [0, 36], sizes = [8, 6], strides = [1, 1]} : vector<8x144xf32> to vector<8x6xf32>
    %43 = vector.extract_strided_slice %28 {offsets = [0, 42], sizes = [8, 6], strides = [1, 1]} : vector<8x144xf32> to vector<8x6xf32>
    %44 = arith.maximumf %42, %43 : vector<8x6xf32>
    %45 = arith.maximumf %41, %44 : vector<8x6xf32>
    %c1_31 = arith.constant 1 : index
    %c0_32 = arith.constant 0 : index
    %c0_33 = arith.constant 0 : index
    %46 = vector.load %arg9[%c1_31, %c0_32, %c0_33] : memref<36x8x6xf32, #tpu.memory_space<vmem>>, vector<1x8x6xf32>
    %47 = vector.shape_cast %46 : vector<1x8x6xf32> to vector<8x6xf32>
    %48 = vector.shape_cast %45 : vector<8x6xf32> to vector<1x8x6xf32>
    tpu.vector_store %arg9[%c1_31, %c0_32, %c0_33], %48 {strides = array<i32>} : memref<36x8x6xf32, #tpu.memory_space<vmem>>, vector<1x8x6xf32>,
    %49 = vector.extract_strided_slice %28 {offsets = [0, 48], sizes = [8, 6], strides = [1, 1]} : vector<8x144xf32> to vector<8x6xf32>
    %50 = vector.extract_strided_slice %28 {offsets = [0, 54], sizes = [8, 6], strides = [1, 1]} : vector<8x144xf32> to vector<8x6xf32>
    %51 = arith.maximumf %49, %50 : vector<8x6xf32>
    %52 = vector.extract_strided_slice %28 {offsets = [0, 60], sizes = [8, 6], strides = [1, 1]} : vector<8x144xf32> to vector<8x6xf32>
    %53 = vector.extract_strided_slice %28 {offsets = [0, 66], sizes = [8, 6], strides = [1, 1]} : vector<8x144xf32> to vector<8x6xf32>
    %54 = arith.maximumf %52, %53 : vector<8x6xf32>
    %55 = arith.maximumf %51, %54 : vector<8x6xf32>
    %c2_34 = arith.constant 2 : index
    %c0_35 = arith.constant 0 : index
    %c0_36 = arith.constant 0 : index
    %56 = vector.load %arg9[%c2_34, %c0_35, %c0_36] : memref<36x8x6xf32, #tpu.memory_space<vmem>>, vector<1x8x6xf32>
    %57 = vector.shape_cast %56 : vector<1x8x6xf32> to vector<8x6xf32>
    %58 = vector.shape_cast %55 : vector<8x6xf32> to vector<1x8x6xf32>
    tpu.vector_store %arg9[%c2_34, %c0_35, %c0_36], %58 {strides = array<i32>} : memref<36x8x6xf32, #tpu.memory_space<vmem>>, vector<1x8x6xf32>,
    %59 = vector.extract_strided_slice %28 {offsets = [0, 72], sizes = [8, 6], strides = [1, 1]} : vector<8x144xf32> to vector<8x6xf32>
    %60 = vector.extract_strided_slice %28 {offsets = [0, 78], sizes = [8, 6], strides = [1, 1]} : vector<8x144xf32> to vector<8x6xf32>
    %61 = arith.maximumf %59, %60 : vector<8x6xf32>
    %62 = vector.extract_strided_slice %28 {offsets = [0, 84], sizes = [8, 6], strides = [1, 1]} : vector<8x144xf32> to vector<8x6xf32>
    %63 = vector.extract_strided_slice %28 {offsets = [0, 90], sizes = [8, 6], strides = [1, 1]} : vector<8x144xf32> to vector<8x6xf32>
    %64 = arith.maximumf %62, %63 : vector<8x6xf32>
    %65 = arith.maximumf %61, %64 : vector<8x6xf32>
    %c3_37 = arith.constant 3 : index
    %c0_38 = arith.constant 0 : index
    %c0_39 = arith.constant 0 : index
    %66 = vector.load %arg9[%c3_37, %c0_38, %c0_39] : memref<36x8x6xf32, #tpu.memory_space<vmem>>, vector<1x8x6xf32>
    %67 = vector.shape_cast %66 : vector<1x8x6xf32> to vector<8x6xf32>
    %68 = vector.shape_cast %65 : vector<8x6xf32> to vector<1x8x6xf32>
    tpu.vector_store %arg9[%c3_37, %c0_38, %c0_39], %68 {strides = array<i32>} : memref<36x8x6xf32, #tpu.memory_space<vmem>>, vector<1x8x6xf32>,
    %69 = vector.extract_strided_slice %28 {offsets = [0, 96], sizes = [8, 6], strides = [1, 1]} : vector<8x144xf32> to vector<8x6xf32>
    %70 = vector.extract_strided_slice %28 {offsets = [0, 102], sizes = [8, 6], strides = [1, 1]} : vector<8x144xf32> to vector<8x6xf32>
    %71 = arith.maximumf %69, %70 : vector<8x6xf32>
    %72 = vector.extract_strided_slice %28 {offsets = [0, 108], sizes = [8, 6], strides = [1, 1]} : vector<8x144xf32> to vector<8x6xf32>
    %73 = vector.extract_strided_slice %28 {offsets = [0, 114], sizes = [8, 6], strides = [1, 1]} : vector<8x144xf32> to vector<8x6xf32>
    %74 = arith.maximumf %72, %73 : vector<8x6xf32>
    %75 = arith.maximumf %71, %74 : vector<8x6xf32>
    %c4 = arith.constant 4 : index
    %c0_40 = arith.constant 0 : index
    %c0_41 = arith.constant 0 : index
    %76 = vector.load %arg9[%c4, %c0_40, %c0_41] : memref<36x8x6xf32, #tpu.memory_space<vmem>>, vector<1x8x6xf32>
    %77 = vector.shape_cast %76 : vector<1x8x6xf32> to vector<8x6xf32>
    %78 = vector.shape_cast %75 : vector<8x6xf32> to vector<1x8x6xf32>
    tpu.vector_store %arg9[%c4, %c0_40, %c0_41], %78 {strides = array<i32>} : memref<36x8x6xf32, #tpu.memory_space<vmem>>, vector<1x8x6xf32>,
    %79 = vector.extract_strided_slice %28 {offsets = [0, 120], sizes = [8, 6], strides = [1, 1]} : vector<8x144xf32> to vector<8x6xf32>
    %80 = vector.extract_strided_slice %28 {offsets = [0, 126], sizes = [8, 6], strides = [1, 1]} : vector<8x144xf32> to vector<8x6xf32>
    %81 = arith.maximumf %79, %80 : vector<8x6xf32>
    %82 = vector.extract_strided_slice %28 {offsets = [0, 132], sizes = [8, 6], strides = [1, 1]} : vector<8x144xf32> to vector<8x6xf32>
    %83 = vector.extract_strided_slice %28 {offsets = [0, 138], sizes = [8, 6], strides = [1, 1]} : vector<8x144xf32> to vector<8x6xf32>
    %84 = arith.maximumf %82, %83 : vector<8x6xf32>
    %85 = arith.maximumf %81, %84 : vector<8x6xf32>
    %c5 = arith.constant 5 : index
    %c0_42 = arith.constant 0 : index
    %c0_43 = arith.constant 0 : index
    %86 = vector.load %arg9[%c5, %c0_42, %c0_43] : memref<36x8x6xf32, #tpu.memory_space<vmem>>, vector<1x8x6xf32>
    %87 = vector.shape_cast %86 : vector<1x8x6xf32> to vector<8x6xf32>
    %88 = vector.shape_cast %85 : vector<8x6xf32> to vector<1x8x6xf32>
    tpu.vector_store %arg9[%c5, %c0_42, %c0_43], %88 {strides = array<i32>} : memref<36x8x6xf32, #tpu.memory_space<vmem>>, vector<1x8x6xf32>,
    %c2_44 = arith.constant 2 : index
    %c0_45 = arith.constant 0 : index
    %c0_46 = arith.constant 0 : index
    %89 = vector.load %arg1[%c2_44, %c0_45, %c0_46] : memref<14x8x14xf32, #tpu.memory_space<vmem>>, vector<1x8x14xf32>
    %90 = vector.shape_cast %89 : vector<1x8x14xf32> to vector<8x14xf32>
    %c0_47 = arith.constant 0 : index
    %c0_48 = arith.constant 0 : index
    %c0_49 = arith.constant 0 : index
    %91 = vector.load %arg2[%c0_47, %c0_48, %c0_49] : memref<4x14x144xf32, #tpu.memory_space<vmem>>, vector<1x14x144xf32>
    %92 = vector.shape_cast %91 : vector<1x14x144xf32> to vector<14x144xf32>
    %cst_50 = arith.constant dense<0.000000e+00> : vector<8x144xf32>
    %93 = tpu.matmul %90, %92, %cst_50 {dimension_numbers = #tpu.dot_dimension_numbers<[1], [0], [0], [1], [0, 0, 1, 1], [], []>} : vector<8x14xf32>, vector<14x144xf32>, vector<8x144xf32> -> vector<8x144xf32>
    %c3_51 = arith.constant 3 : index
    %c0_52 = arith.constant 0 : index
    %c0_53 = arith.constant 0 : index
    %94 = vector.load %arg1[%c3_51, %c0_52, %c0_53] : memref<14x8x14xf32, #tpu.memory_space<vmem>>, vector<1x8x14xf32>
    %95 = vector.shape_cast %94 : vector<1x8x14xf32> to vector<8x14xf32>
    %c1_54 = arith.constant 1 : index
    %c0_55 = arith.constant 0 : index
    %c0_56 = arith.constant 0 : index
    %96 = vector.load %arg2[%c1_54, %c0_55, %c0_56] : memref<4x14x144xf32, #tpu.memory_space<vmem>>, vector<1x14x144xf32>
    %97 = vector.shape_cast %96 : vector<1x14x144xf32> to vector<14x144xf32>
    %cst_57 = arith.constant dense<0.000000e+00> : vector<8x144xf32>
    %98 = tpu.matmul %95, %97, %cst_57 {dimension_numbers = #tpu.dot_dimension_numbers<[1], [0], [0], [1], [0, 0, 1, 1], [], []>} : vector<8x14xf32>, vector<14x144xf32>, vector<8x144xf32> -> vector<8x144xf32>
    %99 = arith.addf %93, %98 : vector<8x144xf32>
    %c4_58 = arith.constant 4 : index
    %c0_59 = arith.constant 0 : index
    %c0_60 = arith.constant 0 : index
    %100 = vector.load %arg1[%c4_58, %c0_59, %c0_60] : memref<14x8x14xf32, #tpu.memory_space<vmem>>, vector<1x8x14xf32>
    %101 = vector.shape_cast %100 : vector<1x8x14xf32> to vector<8x14xf32>
    %c2_61 = arith.constant 2 : index
    %c0_62 = arith.constant 0 : index
    %c0_63 = arith.constant 0 : index
    %102 = vector.load %arg2[%c2_61, %c0_62, %c0_63] : memref<4x14x144xf32, #tpu.memory_space<vmem>>, vector<1x14x144xf32>
    %103 = vector.shape_cast %102 : vector<1x14x144xf32> to vector<14x144xf32>
    %cst_64 = arith.constant dense<0.000000e+00> : vector<8x144xf32>
    %104 = tpu.matmul %101, %103, %cst_64 {dimension_numbers = #tpu.dot_dimension_numbers<[1], [0], [0], [1], [0, 0, 1, 1], [], []>} : vector<8x14xf32>, vector<14x144xf32>, vector<8x144xf32> -> vector<8x144xf32>
    %105 = arith.addf %99, %104 : vector<8x144xf32>
    %c5_65 = arith.constant 5 : index
    %c0_66 = arith.constant 0 : index
    %c0_67 = arith.constant 0 : index
    %106 = vector.load %arg1[%c5_65, %c0_66, %c0_67] : memref<14x8x14xf32, #tpu.memory_space<vmem>>, vector<1x8x14xf32>
    %107 = vector.shape_cast %106 : vector<1x8x14xf32> to vector<8x14xf32>
    %c3_68 = arith.constant 3 : index
    %c0_69 = arith.constant 0 : index
    %c0_70 = arith.constant 0 : index
    %108 = vector.load %arg2[%c3_68, %c0_69, %c0_70] : memref<4x14x144xf32, #tpu.memory_space<vmem>>, vector<1x14x144xf32>
    %109 = vector.shape_cast %108 : vector<1x14x144xf32> to vector<14x144xf32>
    %cst_71 = arith.constant dense<0.000000e+00> : vector<8x144xf32>
    %110 = tpu.matmul %107, %109, %cst_71 {dimension_numbers = #tpu.dot_dimension_numbers<[1], [0], [0], [1], [0, 0, 1, 1], [], []>} : vector<8x14xf32>, vector<14x144xf32>, vector<8x144xf32> -> vector<8x144xf32>
    %111 = arith.addf %105, %110 : vector<8x144xf32>
    %112 = vector.broadcast %0 : vector<1x144xf32> to vector<8x144xf32>
    %113 = arith.addf %111, %112 : vector<8x144xf32>
    %cst_72 = arith.constant 0.000000e+00 : f32
    %114 = vector.broadcast %cst_72 : f32 to vector<8x144xf32>
    %115 = arith.maximumf %113, %114 : vector<8x144xf32>
    %116 = vector.extract_strided_slice %115 {offsets = [0, 0], sizes = [8, 6], strides = [1, 1]} : vector<8x144xf32> to vector<8x6xf32>
    %117 = vector.extract_strided_slice %115 {offsets = [0, 6], sizes = [8, 6], strides = [1, 1]} : vector<8x144xf32> to vector<8x6xf32>
    %118 = arith.maximumf %116, %117 : vector<8x6xf32>
    %119 = vector.extract_strided_slice %115 {offsets = [0, 12], sizes = [8, 6], strides = [1, 1]} : vector<8x144xf32> to vector<8x6xf32>
    %120 = vector.extract_strided_slice %115 {offsets = [0, 18], sizes = [8, 6], strides = [1, 1]} : vector<8x144xf32> to vector<8x6xf32>
    %121 = arith.maximumf %119, %120 : vector<8x6xf32>
    %122 = arith.maximumf %118, %121 : vector<8x6xf32>
    %c6 = arith.constant 6 : index
    %c0_73 = arith.constant 0 : index
    %c0_74 = arith.constant 0 : index
    %123 = vector.load %arg9[%c6, %c0_73, %c0_74] : memref<36x8x6xf32, #tpu.memory_space<vmem>>, vector<1x8x6xf32>
    %124 = vector.shape_cast %123 : vector<1x8x6xf32> to vector<8x6xf32>
    %125 = vector.shape_cast %122 : vector<8x6xf32> to vector<1x8x6xf32>
    tpu.vector_store %arg9[%c6, %c0_73, %c0_74], %125 {strides = array<i32>} : memref<36x8x6xf32, #tpu.memory_space<vmem>>, vector<1x8x6xf32>,
    %126 = vector.extract_strided_slice %115 {offsets = [0, 24], sizes = [8, 6], strides = [1, 1]} : vector<8x144xf32> to vector<8x6xf32>
    %127 = vector.extract_strided_slice %115 {offsets = [0, 30], sizes = [8, 6], strides = [1, 1]} : vector<8x144xf32> to vector<8x6xf32>
    %128 = arith.maximumf %126, %127 : vector<8x6xf32>
    %129 = vector.extract_strided_slice %115 {offsets = [0, 36], sizes = [8, 6], strides = [1, 1]} : vector<8x144xf32> to vector<8x6xf32>
    %130 = vector.extract_strided_slice %115 {offsets = [0, 42], sizes = [8, 6], strides = [1, 1]} : vector<8x144xf32> to vector<8x6xf32>
    %131 = arith.maximumf %129, %130 : vector<8x6xf32>
    %132 = arith.maximumf %128, %131 : vector<8x6xf32>
    %c7 = arith.constant 7 : index
    %c0_75 = arith.constant 0 : index
    %c0_76 = arith.constant 0 : index
    %133 = vector.load %arg9[%c7, %c0_75, %c0_76] : memref<36x8x6xf32, #tpu.memory_space<vmem>>, vector<1x8x6xf32>
    %134 = vector.shape_cast %133 : vector<1x8x6xf32> to vector<8x6xf32>
    %135 = vector.shape_cast %132 : vector<8x6xf32> to vector<1x8x6xf32>
    tpu.vector_store %arg9[%c7, %c0_75, %c0_76], %135 {strides = array<i32>} : memref<36x8x6xf32, #tpu.memory_space<vmem>>, vector<1x8x6xf32>,
    %136 = vector.extract_strided_slice %115 {offsets = [0, 48], sizes = [8, 6], strides = [1, 1]} : vector<8x144xf32> to vector<8x6xf32>
    %137 = vector.extract_strided_slice %115 {offsets = [0, 54], sizes = [8, 6], strides = [1, 1]} : vector<8x144xf32> to vector<8x6xf32>
    %138 = arith.maximumf %136, %137 : vector<8x6xf32>
    %139 = vector.extract_strided_slice %115 {offsets = [0, 60], sizes = [8, 6], strides = [1, 1]} : vector<8x144xf32> to vector<8x6xf32>
    %140 = vector.extract_strided_slice %115 {offsets = [0, 66], sizes = [8, 6], strides = [1, 1]} : vector<8x144xf32> to vector<8x6xf32>
    %141 = arith.maximumf %139, %140 : vector<8x6xf32>
    %142 = arith.maximumf %138, %141 : vector<8x6xf32>
    %c8 = arith.constant 8 : index
    %c0_77 = arith.constant 0 : index
    %c0_78 = arith.constant 0 : index
    %143 = vector.load %arg9[%c8, %c0_77, %c0_78] : memref<36x8x6xf32, #tpu.memory_space<vmem>>, vector<1x8x6xf32>
    %144 = vector.shape_cast %143 : vector<1x8x6xf32> to vector<8x6xf32>
    %145 = vector.shape_cast %142 : vector<8x6xf32> to vector<1x8x6xf32>
    tpu.vector_store %arg9[%c8, %c0_77, %c0_78], %145 {strides = array<i32>} : memref<36x8x6xf32, #tpu.memory_space<vmem>>, vector<1x8x6xf32>,
    %146 = vector.extract_strided_slice %115 {offsets = [0, 72], sizes = [8, 6], strides = [1, 1]} : vector<8x144xf32> to vector<8x6xf32>
    %147 = vector.extract_strided_slice %115 {offsets = [0, 78], sizes = [8, 6], strides = [1, 1]} : vector<8x144xf32> to vector<8x6xf32>
    %148 = arith.maximumf %146, %147 : vector<8x6xf32>
    %149 = vector.extract_strided_slice %115 {offsets = [0, 84], sizes = [8, 6], strides = [1, 1]} : vector<8x144xf32> to vector<8x6xf32>
    %150 = vector.extract_strided_slice %115 {offsets = [0, 90], sizes = [8, 6], strides = [1, 1]} : vector<8x144xf32> to vector<8x6xf32>
    %151 = arith.maximumf %149, %150 : vector<8x6xf32>
    %152 = arith.maximumf %148, %151 : vector<8x6xf32>
    %c9 = arith.constant 9 : index
    %c0_79 = arith.constant 0 : index
    %c0_80 = arith.constant 0 : index
    %153 = vector.load %arg9[%c9, %c0_79, %c0_80] : memref<36x8x6xf32, #tpu.memory_space<vmem>>, vector<1x8x6xf32>
    %154 = vector.shape_cast %153 : vector<1x8x6xf32> to vector<8x6xf32>
    %155 = vector.shape_cast %152 : vector<8x6xf32> to vector<1x8x6xf32>
    tpu.vector_store %arg9[%c9, %c0_79, %c0_80], %155 {strides = array<i32>} : memref<36x8x6xf32, #tpu.memory_space<vmem>>, vector<1x8x6xf32>,
    %156 = vector.extract_strided_slice %115 {offsets = [0, 96], sizes = [8, 6], strides = [1, 1]} : vector<8x144xf32> to vector<8x6xf32>
    %157 = vector.extract_strided_slice %115 {offsets = [0, 102], sizes = [8, 6], strides = [1, 1]} : vector<8x144xf32> to vector<8x6xf32>
    %158 = arith.maximumf %156, %157 : vector<8x6xf32>
    %159 = vector.extract_strided_slice %115 {offsets = [0, 108], sizes = [8, 6], strides = [1, 1]} : vector<8x144xf32> to vector<8x6xf32>
    %160 = vector.extract_strided_slice %115 {offsets = [0, 114], sizes = [8, 6], strides = [1, 1]} : vector<8x144xf32> to vector<8x6xf32>
    %161 = arith.maximumf %159, %160 : vector<8x6xf32>
    %162 = arith.maximumf %158, %161 : vector<8x6xf32>
    %c10 = arith.constant 10 : index
    %c0_81 = arith.constant 0 : index
    %c0_82 = arith.constant 0 : index
    %163 = vector.load %arg9[%c10, %c0_81, %c0_82] : memref<36x8x6xf32, #tpu.memory_space<vmem>>, vector<1x8x6xf32>
    %164 = vector.shape_cast %163 : vector<1x8x6xf32> to vector<8x6xf32>
    %165 = vector.shape_cast %162 : vector<8x6xf32> to vector<1x8x6xf32>
    tpu.vector_store %arg9[%c10, %c0_81, %c0_82], %165 {strides = array<i32>} : memref<36x8x6xf32, #tpu.memory_space<vmem>>, vector<1x8x6xf32>,
    %166 = vector.extract_strided_slice %115 {offsets = [0, 120], sizes = [8, 6], strides = [1, 1]} : vector<8x144xf32> to vector<8x6xf32>
    %167 = vector.extract_strided_slice %115 {offsets = [0, 126], sizes = [8, 6], strides = [1, 1]} : vector<8x144xf32> to vector<8x6xf32>
    %168 = arith.maximumf %166, %167 : vector<8x6xf32>
    %169 = vector.extract_strided_slice %115 {offsets = [0, 132], sizes = [8, 6], strides = [1, 1]} : vector<8x144xf32> to vector<8x6xf32>
    %170 = vector.extract_strided_slice %115 {offsets = [0, 138], sizes = [8, 6], strides = [1, 1]} : vector<8x144xf32> to vector<8x6xf32>
    %171 = arith.maximumf %169, %170 : vector<8x6xf32>
    %172 = arith.maximumf %168, %171 : vector<8x6xf32>
    %c11 = arith.constant 11 : index
    %c0_83 = arith.constant 0 : index
    %c0_84 = arith.constant 0 : index
    %173 = vector.load %arg9[%c11, %c0_83, %c0_84] : memref<36x8x6xf32, #tpu.memory_space<vmem>>, vector<1x8x6xf32>
    %174 = vector.shape_cast %173 : vector<1x8x6xf32> to vector<8x6xf32>
    %175 = vector.shape_cast %172 : vector<8x6xf32> to vector<1x8x6xf32>
    tpu.vector_store %arg9[%c11, %c0_83, %c0_84], %175 {strides = array<i32>} : memref<36x8x6xf32, #tpu.memory_space<vmem>>, vector<1x8x6xf32>,
    %c4_85 = arith.constant 4 : index
    %c0_86 = arith.constant 0 : index
    %c0_87 = arith.constant 0 : index
    %176 = vector.load %arg1[%c4_85, %c0_86, %c0_87] : memref<14x8x14xf32, #tpu.memory_space<vmem>>, vector<1x8x14xf32>
    %177 = vector.shape_cast %176 : vector<1x8x14xf32> to vector<8x14xf32>
    %c0_88 = arith.constant 0 : index
    %c0_89 = arith.constant 0 : index
    %c0_90 = arith.constant 0 : index
    %178 = vector.load %arg2[%c0_88, %c0_89, %c0_90] : memref<4x14x144xf32, #tpu.memory_space<vmem>>, vector<1x14x144xf32>
    %179 = vector.shape_cast %178 : vector<1x14x144xf32> to vector<14x144xf32>
    %cst_91 = arith.constant dense<0.000000e+00> : vector<8x144xf32>
    %180 = tpu.matmul %177, %179, %cst_91 {dimension_numbers = #tpu.dot_dimension_numbers<[1], [0], [0], [1], [0, 0, 1, 1], [], []>} : vector<8x14xf32>, vector<14x144xf32>, vector<8x144xf32> -> vector<8x144xf32>
    %c5_92 = arith.constant 5 : index
    %c0_93 = arith.constant 0 : index
    %c0_94 = arith.constant 0 : index
    %181 = vector.load %arg1[%c5_92, %c0_93, %c0_94] : memref<14x8x14xf32, #tpu.memory_space<vmem>>, vector<1x8x14xf32>
    %182 = vector.shape_cast %181 : vector<1x8x14xf32> to vector<8x14xf32>
    %c1_95 = arith.constant 1 : index
    %c0_96 = arith.constant 0 : index
    %c0_97 = arith.constant 0 : index
    %183 = vector.load %arg2[%c1_95, %c0_96, %c0_97] : memref<4x14x144xf32, #tpu.memory_space<vmem>>, vector<1x14x144xf32>
    %184 = vector.shape_cast %183 : vector<1x14x144xf32> to vector<14x144xf32>
    %cst_98 = arith.constant dense<0.000000e+00> : vector<8x144xf32>
    %185 = tpu.matmul %182, %184, %cst_98 {dimension_numbers = #tpu.dot_dimension_numbers<[1], [0], [0], [1], [0, 0, 1, 1], [], []>} : vector<8x14xf32>, vector<14x144xf32>, vector<8x144xf32> -> vector<8x144xf32>
    %186 = arith.addf %180, %185 : vector<8x144xf32>
    %c6_99 = arith.constant 6 : index
    %c0_100 = arith.constant 0 : index
    %c0_101 = arith.constant 0 : index
    %187 = vector.load %arg1[%c6_99, %c0_100, %c0_101] : memref<14x8x14xf32, #tpu.memory_space<vmem>>, vector<1x8x14xf32>
    %188 = vector.shape_cast %187 : vector<1x8x14xf32> to vector<8x14xf32>
    %c2_102 = arith.constant 2 : index
    %c0_103 = arith.constant 0 : index
    %c0_104 = arith.constant 0 : index
    %189 = vector.load %arg2[%c2_102, %c0_103, %c0_104] : memref<4x14x144xf32, #tpu.memory_space<vmem>>, vector<1x14x144xf32>
    %190 = vector.shape_cast %189 : vector<1x14x144xf32> to vector<14x144xf32>
    %cst_105 = arith.constant dense<0.000000e+00> : vector<8x144xf32>
    %191 = tpu.matmul %188, %190, %cst_105 {dimension_numbers = #tpu.dot_dimension_numbers<[1], [0], [0], [1], [0, 0, 1, 1], [], []>} : vector<8x14xf32>, vector<14x144xf32>, vector<8x144xf32> -> vector<8x144xf32>
    %192 = arith.addf %186, %191 : vector<8x144xf32>
    %c7_106 = arith.constant 7 : index
    %c0_107 = arith.constant 0 : index
    %c0_108 = arith.constant 0 : index
    %193 = vector.load %arg1[%c7_106, %c0_107, %c0_108] : memref<14x8x14xf32, #tpu.memory_space<vmem>>, vector<1x8x14xf32>
    %194 = vector.shape_cast %193 : vector<1x8x14xf32> to vector<8x14xf32>
    %c3_109 = arith.constant 3 : index
    %c0_110 = arith.constant 0 : index
    %c0_111 = arith.constant 0 : index
    %195 = vector.load %arg2[%c3_109, %c0_110, %c0_111] : memref<4x14x144xf32, #tpu.memory_space<vmem>>, vector<1x14x144xf32>
    %196 = vector.shape_cast %195 : vector<1x14x144xf32> to vector<14x144xf32>
    %cst_112 = arith.constant dense<0.000000e+00> : vector<8x144xf32>
    %197 = tpu.matmul %194, %196, %cst_112 {dimension_numbers = #tpu.dot_dimension_numbers<[1], [0], [0], [1], [0, 0, 1, 1], [], []>} : vector<8x14xf32>, vector<14x144xf32>, vector<8x144xf32> -> vector<8x144xf32>
    %198 = arith.addf %192, %197 : vector<8x144xf32>
    %199 = vector.broadcast %0 : vector<1x144xf32> to vector<8x144xf32>
    %200 = arith.addf %198, %199 : vector<8x144xf32>
    %cst_113 = arith.constant 0.000000e+00 : f32
    %201 = vector.broadcast %cst_113 : f32 to vector<8x144xf32>
    %202 = arith.maximumf %200, %201 : vector<8x144xf32>
    %203 = vector.extract_strided_slice %202 {offsets = [0, 0], sizes = [8, 6], strides = [1, 1]} : vector<8x144xf32> to vector<8x6xf32>
    %204 = vector.extract_strided_slice %202 {offsets = [0, 6], sizes = [8, 6], strides = [1, 1]} : vector<8x144xf32> to vector<8x6xf32>
    %205 = arith.maximumf %203, %204 : vector<8x6xf32>
    %206 = vector.extract_strided_slice %202 {offsets = [0, 12], sizes = [8, 6], strides = [1, 1]} : vector<8x144xf32> to vector<8x6xf32>
    %207 = vector.extract_strided_slice %202 {offsets = [0, 18], sizes = [8, 6], strides = [1, 1]} : vector<8x144xf32> to vector<8x6xf32>
    %208 = arith.maximumf %206, %207 : vector<8x6xf32>
    %209 = arith.maximumf %205, %208 : vector<8x6xf32>
    %c12 = arith.constant 12 : index
    %c0_114 = arith.constant 0 : index
    %c0_115 = arith.constant 0 : index
    %210 = vector.load %arg9[%c12, %c0_114, %c0_115] : memref<36x8x6xf32, #tpu.memory_space<vmem>>, vector<1x8x6xf32>
    %211 = vector.shape_cast %210 : vector<1x8x6xf32> to vector<8x6xf32>
    %212 = vector.shape_cast %209 : vector<8x6xf32> to vector<1x8x6xf32>
    tpu.vector_store %arg9[%c12, %c0_114, %c0_115], %212 {strides = array<i32>} : memref<36x8x6xf32, #tpu.memory_space<vmem>>, vector<1x8x6xf32>,
    %213 = vector.extract_strided_slice %202 {offsets = [0, 24], sizes = [8, 6], strides = [1, 1]} : vector<8x144xf32> to vector<8x6xf32>
    %214 = vector.extract_strided_slice %202 {offsets = [0, 30], sizes = [8, 6], strides = [1, 1]} : vector<8x144xf32> to vector<8x6xf32>
    %215 = arith.maximumf %213, %214 : vector<8x6xf32>
    %216 = vector.extract_strided_slice %202 {offsets = [0, 36], sizes = [8, 6], strides = [1, 1]} : vector<8x144xf32> to vector<8x6xf32>
    %217 = vector.extract_strided_slice %202 {offsets = [0, 42], sizes = [8, 6], strides = [1, 1]} : vector<8x144xf32> to vector<8x6xf32>
    %218 = arith.maximumf %216, %217 : vector<8x6xf32>
    %219 = arith.maximumf %215, %218 : vector<8x6xf32>
    %c13 = arith.constant 13 : index
    %c0_116 = arith.constant 0 : index
    %c0_117 = arith.constant 0 : index
    %220 = vector.load %arg9[%c13, %c0_116, %c0_117] : memref<36x8x6xf32, #tpu.memory_space<vmem>>, vector<1x8x6xf32>
    %221 = vector.shape_cast %220 : vector<1x8x6xf32> to vector<8x6xf32>
    %222 = vector.shape_cast %219 : vector<8x6xf32> to vector<1x8x6xf32>
    tpu.vector_store %arg9[%c13, %c0_116, %c0_117], %222 {strides = array<i32>} : memref<36x8x6xf32, #tpu.memory_space<vmem>>, vector<1x8x6xf32>,
    %223 = vector.extract_strided_slice %202 {offsets = [0, 48], sizes = [8, 6], strides = [1, 1]} : vector<8x144xf32> to vector<8x6xf32>
    %224 = vector.extract_strided_slice %202 {offsets = [0, 54], sizes = [8, 6], strides = [1, 1]} : vector<8x144xf32> to vector<8x6xf32>
    %225 = arith.maximumf %223, %224 : vector<8x6xf32>
    %226 = vector.extract_strided_slice %202 {offsets = [0, 60], sizes = [8, 6], strides = [1, 1]} : vector<8x144xf32> to vector<8x6xf32>
    %227 = vector.extract_strided_slice %202 {offsets = [0, 66], sizes = [8, 6], strides = [1, 1]} : vector<8x144xf32> to vector<8x6xf32>
    %228 = arith.maximumf %226, %227 : vector<8x6xf32>
    %229 = arith.maximumf %225, %228 : vector<8x6xf32>
    %c14 = arith.constant 14 : index
    %c0_118 = arith.constant 0 : index
    %c0_119 = arith.constant 0 : index
    %230 = vector.load %arg9[%c14, %c0_118, %c0_119] : memref<36x8x6xf32, #tpu.memory_space<vmem>>, vector<1x8x6xf32>
    %231 = vector.shape_cast %230 : vector<1x8x6xf32> to vector<8x6xf32>
    %232 = vector.shape_cast %229 : vector<8x6xf32> to vector<1x8x6xf32>
    tpu.vector_store %arg9[%c14, %c0_118, %c0_119], %232 {strides = array<i32>} : memref<36x8x6xf32, #tpu.memory_space<vmem>>, vector<1x8x6xf32>,
    %233 = vector.extract_strided_slice %202 {offsets = [0, 72], sizes = [8, 6], strides = [1, 1]} : vector<8x144xf32> to vector<8x6xf32>
    %234 = vector.extract_strided_slice %202 {offsets = [0, 78], sizes = [8, 6], strides = [1, 1]} : vector<8x144xf32> to vector<8x6xf32>
    %235 = arith.maximumf %233, %234 : vector<8x6xf32>
    %236 = vector.extract_strided_slice %202 {offsets = [0, 84], sizes = [8, 6], strides = [1, 1]} : vector<8x144xf32> to vector<8x6xf32>
    %237 = vector.extract_strided_slice %202 {offsets = [0, 90], sizes = [8, 6], strides = [1, 1]} : vector<8x144xf32> to vector<8x6xf32>
    %238 = arith.maximumf %236, %237 : vector<8x6xf32>
    %239 = arith.maximumf %235, %238 : vector<8x6xf32>
    %c15 = arith.constant 15 : index
    %c0_120 = arith.constant 0 : index
    %c0_121 = arith.constant 0 : index
    %240 = vector.load %arg9[%c15, %c0_120, %c0_121] : memref<36x8x6xf32, #tpu.memory_space<vmem>>, vector<1x8x6xf32>
    %241 = vector.shape_cast %240 : vector<1x8x6xf32> to vector<8x6xf32>
    %242 = vector.shape_cast %239 : vector<8x6xf32> to vector<1x8x6xf32>
    tpu.vector_store %arg9[%c15, %c0_120, %c0_121], %242 {strides = array<i32>} : memref<36x8x6xf32, #tpu.memory_space<vmem>>, vector<1x8x6xf32>,
    %243 = vector.extract_strided_slice %202 {offsets = [0, 96], sizes = [8, 6], strides = [1, 1]} : vector<8x144xf32> to vector<8x6xf32>
    %244 = vector.extract_strided_slice %202 {offsets = [0, 102], sizes = [8, 6], strides = [1, 1]} : vector<8x144xf32> to vector<8x6xf32>
    %245 = arith.maximumf %243, %244 : vector<8x6xf32>
    %246 = vector.extract_strided_slice %202 {offsets = [0, 108], sizes = [8, 6], strides = [1, 1]} : vector<8x144xf32> to vector<8x6xf32>
    %247 = vector.extract_strided_slice %202 {offsets = [0, 114], sizes = [8, 6], strides = [1, 1]} : vector<8x144xf32> to vector<8x6xf32>
    %248 = arith.maximumf %246, %247 : vector<8x6xf32>
    %249 = arith.maximumf %245, %248 : vector<8x6xf32>
    %c16 = arith.constant 16 : index
    %c0_122 = arith.constant 0 : index
    %c0_123 = arith.constant 0 : index
    %250 = vector.load %arg9[%c16, %c0_122, %c0_123] : memref<36x8x6xf32, #tpu.memory_space<vmem>>, vector<1x8x6xf32>
    %251 = vector.shape_cast %250 : vector<1x8x6xf32> to vector<8x6xf32>
    %252 = vector.shape_cast %249 : vector<8x6xf32> to vector<1x8x6xf32>
    tpu.vector_store %arg9[%c16, %c0_122, %c0_123], %252 {strides = array<i32>} : memref<36x8x6xf32, #tpu.memory_space<vmem>>, vector<1x8x6xf32>,
    %253 = vector.extract_strided_slice %202 {offsets = [0, 120], sizes = [8, 6], strides = [1, 1]} : vector<8x144xf32> to vector<8x6xf32>
    %254 = vector.extract_strided_slice %202 {offsets = [0, 126], sizes = [8, 6], strides = [1, 1]} : vector<8x144xf32> to vector<8x6xf32>
    %255 = arith.maximumf %253, %254 : vector<8x6xf32>
    %256 = vector.extract_strided_slice %202 {offsets = [0, 132], sizes = [8, 6], strides = [1, 1]} : vector<8x144xf32> to vector<8x6xf32>
    %257 = vector.extract_strided_slice %202 {offsets = [0, 138], sizes = [8, 6], strides = [1, 1]} : vector<8x144xf32> to vector<8x6xf32>
    %258 = arith.maximumf %256, %257 : vector<8x6xf32>
    %259 = arith.maximumf %255, %258 : vector<8x6xf32>
    %c17 = arith.constant 17 : index
    %c0_124 = arith.constant 0 : index
    %c0_125 = arith.constant 0 : index
    %260 = vector.load %arg9[%c17, %c0_124, %c0_125] : memref<36x8x6xf32, #tpu.memory_space<vmem>>, vector<1x8x6xf32>
    %261 = vector.shape_cast %260 : vector<1x8x6xf32> to vector<8x6xf32>
    %262 = vector.shape_cast %259 : vector<8x6xf32> to vector<1x8x6xf32>
    tpu.vector_store %arg9[%c17, %c0_124, %c0_125], %262 {strides = array<i32>} : memref<36x8x6xf32, #tpu.memory_space<vmem>>, vector<1x8x6xf32>,
    %c6_126 = arith.constant 6 : index
    %c0_127 = arith.constant 0 : index
    %c0_128 = arith.constant 0 : index
    %263 = vector.load %arg1[%c6_126, %c0_127, %c0_128] : memref<14x8x14xf32, #tpu.memory_space<vmem>>, vector<1x8x14xf32>
    %264 = vector.shape_cast %263 : vector<1x8x14xf32> to vector<8x14xf32>
    %c0_129 = arith.constant 0 : index
    %c0_130 = arith.constant 0 : index
    %c0_131 = arith.constant 0 : index
    %265 = vector.load %arg2[%c0_129, %c0_130, %c0_131] : memref<4x14x144xf32, #tpu.memory_space<vmem>>, vector<1x14x144xf32>
    %266 = vector.shape_cast %265 : vector<1x14x144xf32> to vector<14x144xf32>
    %cst_132 = arith.constant dense<0.000000e+00> : vector<8x144xf32>
    %267 = tpu.matmul %264, %266, %cst_132 {dimension_numbers = #tpu.dot_dimension_numbers<[1], [0], [0], [1], [0, 0, 1, 1], [], []>} : vector<8x14xf32>, vector<14x144xf32>, vector<8x144xf32> -> vector<8x144xf32>
    %c7_133 = arith.constant 7 : index
    %c0_134 = arith.constant 0 : index
    %c0_135 = arith.constant 0 : index
    %268 = vector.load %arg1[%c7_133, %c0_134, %c0_135] : memref<14x8x14xf32, #tpu.memory_space<vmem>>, vector<1x8x14xf32>
    %269 = vector.shape_cast %268 : vector<1x8x14xf32> to vector<8x14xf32>
    %c1_136 = arith.constant 1 : index
    %c0_137 = arith.constant 0 : index
    %c0_138 = arith.constant 0 : index
    %270 = vector.load %arg2[%c1_136, %c0_137, %c0_138] : memref<4x14x144xf32, #tpu.memory_space<vmem>>, vector<1x14x144xf32>
    %271 = vector.shape_cast %270 : vector<1x14x144xf32> to vector<14x144xf32>
    %cst_139 = arith.constant dense<0.000000e+00> : vector<8x144xf32>
    %272 = tpu.matmul %269, %271, %cst_139 {dimension_numbers = #tpu.dot_dimension_numbers<[1], [0], [0], [1], [0, 0, 1, 1], [], []>} : vector<8x14xf32>, vector<14x144xf32>, vector<8x144xf32> -> vector<8x144xf32>
    %273 = arith.addf %267, %272 : vector<8x144xf32>
    %c8_140 = arith.constant 8 : index
    %c0_141 = arith.constant 0 : index
    %c0_142 = arith.constant 0 : index
    %274 = vector.load %arg1[%c8_140, %c0_141, %c0_142] : memref<14x8x14xf32, #tpu.memory_space<vmem>>, vector<1x8x14xf32>
    %275 = vector.shape_cast %274 : vector<1x8x14xf32> to vector<8x14xf32>
    %c2_143 = arith.constant 2 : index
    %c0_144 = arith.constant 0 : index
    %c0_145 = arith.constant 0 : index
    %276 = vector.load %arg2[%c2_143, %c0_144, %c0_145] : memref<4x14x144xf32, #tpu.memory_space<vmem>>, vector<1x14x144xf32>
    %277 = vector.shape_cast %276 : vector<1x14x144xf32> to vector<14x144xf32>
    %cst_146 = arith.constant dense<0.000000e+00> : vector<8x144xf32>
    %278 = tpu.matmul %275, %277, %cst_146 {dimension_numbers = #tpu.dot_dimension_numbers<[1], [0], [0], [1], [0, 0, 1, 1], [], []>} : vector<8x14xf32>, vector<14x144xf32>, vector<8x144xf32> -> vector<8x144xf32>
    %279 = arith.addf %273, %278 : vector<8x144xf32>
    %c9_147 = arith.constant 9 : index
    %c0_148 = arith.constant 0 : index
    %c0_149 = arith.constant 0 : index
    %280 = vector.load %arg1[%c9_147, %c0_148, %c0_149] : memref<14x8x14xf32, #tpu.memory_space<vmem>>, vector<1x8x14xf32>
    %281 = vector.shape_cast %280 : vector<1x8x14xf32> to vector<8x14xf32>
    %c3_150 = arith.constant 3 : index
    %c0_151 = arith.constant 0 : index
    %c0_152 = arith.constant 0 : index
    %282 = vector.load %arg2[%c3_150, %c0_151, %c0_152] : memref<4x14x144xf32, #tpu.memory_space<vmem>>, vector<1x14x144xf32>
    %283 = vector.shape_cast %282 : vector<1x14x144xf32> to vector<14x144xf32>
    %cst_153 = arith.constant dense<0.000000e+00> : vector<8x144xf32>
    %284 = tpu.matmul %281, %283, %cst_153 {dimension_numbers = #tpu.dot_dimension_numbers<[1], [0], [0], [1], [0, 0, 1, 1], [], []>} : vector<8x14xf32>, vector<14x144xf32>, vector<8x144xf32> -> vector<8x144xf32>
    %285 = arith.addf %279, %284 : vector<8x144xf32>
    %286 = vector.broadcast %0 : vector<1x144xf32> to vector<8x144xf32>
    %287 = arith.addf %285, %286 : vector<8x144xf32>
    %cst_154 = arith.constant 0.000000e+00 : f32
    %288 = vector.broadcast %cst_154 : f32 to vector<8x144xf32>
    %289 = arith.maximumf %287, %288 : vector<8x144xf32>
    %290 = vector.extract_strided_slice %289 {offsets = [0, 0], sizes = [8, 6], strides = [1, 1]} : vector<8x144xf32> to vector<8x6xf32>
    %291 = vector.extract_strided_slice %289 {offsets = [0, 6], sizes = [8, 6], strides = [1, 1]} : vector<8x144xf32> to vector<8x6xf32>
    %292 = arith.maximumf %290, %291 : vector<8x6xf32>
    %293 = vector.extract_strided_slice %289 {offsets = [0, 12], sizes = [8, 6], strides = [1, 1]} : vector<8x144xf32> to vector<8x6xf32>
    %294 = vector.extract_strided_slice %289 {offsets = [0, 18], sizes = [8, 6], strides = [1, 1]} : vector<8x144xf32> to vector<8x6xf32>
    %295 = arith.maximumf %293, %294 : vector<8x6xf32>
    %296 = arith.maximumf %292, %295 : vector<8x6xf32>
    %c18 = arith.constant 18 : index
    %c0_155 = arith.constant 0 : index
    %c0_156 = arith.constant 0 : index
    %297 = vector.load %arg9[%c18, %c0_155, %c0_156] : memref<36x8x6xf32, #tpu.memory_space<vmem>>, vector<1x8x6xf32>
    %298 = vector.shape_cast %297 : vector<1x8x6xf32> to vector<8x6xf32>
    %299 = vector.shape_cast %296 : vector<8x6xf32> to vector<1x8x6xf32>
    tpu.vector_store %arg9[%c18, %c0_155, %c0_156], %299 {strides = array<i32>} : memref<36x8x6xf32, #tpu.memory_space<vmem>>, vector<1x8x6xf32>,
    %300 = vector.extract_strided_slice %289 {offsets = [0, 24], sizes = [8, 6], strides = [1, 1]} : vector<8x144xf32> to vector<8x6xf32>
    %301 = vector.extract_strided_slice %289 {offsets = [0, 30], sizes = [8, 6], strides = [1, 1]} : vector<8x144xf32> to vector<8x6xf32>
    %302 = arith.maximumf %300, %301 : vector<8x6xf32>
    %303 = vector.extract_strided_slice %289 {offsets = [0, 36], sizes = [8, 6], strides = [1, 1]} : vector<8x144xf32> to vector<8x6xf32>
    %304 = vector.extract_strided_slice %289 {offsets = [0, 42], sizes = [8, 6], strides = [1, 1]} : vector<8x144xf32> to vector<8x6xf32>
    %305 = arith.maximumf %303, %304 : vector<8x6xf32>
    %306 = arith.maximumf %302, %305 : vector<8x6xf32>
    %c19 = arith.constant 19 : index
    %c0_157 = arith.constant 0 : index
    %c0_158 = arith.constant 0 : index
    %307 = vector.load %arg9[%c19, %c0_157, %c0_158] : memref<36x8x6xf32, #tpu.memory_space<vmem>>, vector<1x8x6xf32>
    %308 = vector.shape_cast %307 : vector<1x8x6xf32> to vector<8x6xf32>
    %309 = vector.shape_cast %306 : vector<8x6xf32> to vector<1x8x6xf32>
    tpu.vector_store %arg9[%c19, %c0_157, %c0_158], %309 {strides = array<i32>} : memref<36x8x6xf32, #tpu.memory_space<vmem>>, vector<1x8x6xf32>,
    %310 = vector.extract_strided_slice %289 {offsets = [0, 48], sizes = [8, 6], strides = [1, 1]} : vector<8x144xf32> to vector<8x6xf32>
    %311 = vector.extract_strided_slice %289 {offsets = [0, 54], sizes = [8, 6], strides = [1, 1]} : vector<8x144xf32> to vector<8x6xf32>
    %312 = arith.maximumf %310, %311 : vector<8x6xf32>
    %313 = vector.extract_strided_slice %289 {offsets = [0, 60], sizes = [8, 6], strides = [1, 1]} : vector<8x144xf32> to vector<8x6xf32>
    %314 = vector.extract_strided_slice %289 {offsets = [0, 66], sizes = [8, 6], strides = [1, 1]} : vector<8x144xf32> to vector<8x6xf32>
    %315 = arith.maximumf %313, %314 : vector<8x6xf32>
    %316 = arith.maximumf %312, %315 : vector<8x6xf32>
    %c20 = arith.constant 20 : index
    %c0_159 = arith.constant 0 : index
    %c0_160 = arith.constant 0 : index
    %317 = vector.load %arg9[%c20, %c0_159, %c0_160] : memref<36x8x6xf32, #tpu.memory_space<vmem>>, vector<1x8x6xf32>
    %318 = vector.shape_cast %317 : vector<1x8x6xf32> to vector<8x6xf32>
    %319 = vector.shape_cast %316 : vector<8x6xf32> to vector<1x8x6xf32>
    tpu.vector_store %arg9[%c20, %c0_159, %c0_160], %319 {strides = array<i32>} : memref<36x8x6xf32, #tpu.memory_space<vmem>>, vector<1x8x6xf32>,
    %320 = vector.extract_strided_slice %289 {offsets = [0, 72], sizes = [8, 6], strides = [1, 1]} : vector<8x144xf32> to vector<8x6xf32>
    %321 = vector.extract_strided_slice %289 {offsets = [0, 78], sizes = [8, 6], strides = [1, 1]} : vector<8x144xf32> to vector<8x6xf32>
    %322 = arith.maximumf %320, %321 : vector<8x6xf32>
    %323 = vector.extract_strided_slice %289 {offsets = [0, 84], sizes = [8, 6], strides = [1, 1]} : vector<8x144xf32> to vector<8x6xf32>
    %324 = vector.extract_strided_slice %289 {offsets = [0, 90], sizes = [8, 6], strides = [1, 1]} : vector<8x144xf32> to vector<8x6xf32>
    %325 = arith.maximumf %323, %324 : vector<8x6xf32>
    %326 = arith.maximumf %322, %325 : vector<8x6xf32>
    %c21 = arith.constant 21 : index
    %c0_161 = arith.constant 0 : index
    %c0_162 = arith.constant 0 : index
    %327 = vector.load %arg9[%c21, %c0_161, %c0_162] : memref<36x8x6xf32, #tpu.memory_space<vmem>>, vector<1x8x6xf32>
    %328 = vector.shape_cast %327 : vector<1x8x6xf32> to vector<8x6xf32>
    %329 = vector.shape_cast %326 : vector<8x6xf32> to vector<1x8x6xf32>
    tpu.vector_store %arg9[%c21, %c0_161, %c0_162], %329 {strides = array<i32>} : memref<36x8x6xf32, #tpu.memory_space<vmem>>, vector<1x8x6xf32>,
    %330 = vector.extract_strided_slice %289 {offsets = [0, 96], sizes = [8, 6], strides = [1, 1]} : vector<8x144xf32> to vector<8x6xf32>
    %331 = vector.extract_strided_slice %289 {offsets = [0, 102], sizes = [8, 6], strides = [1, 1]} : vector<8x144xf32> to vector<8x6xf32>
    %332 = arith.maximumf %330, %331 : vector<8x6xf32>
    %333 = vector.extract_strided_slice %289 {offsets = [0, 108], sizes = [8, 6], strides = [1, 1]} : vector<8x144xf32> to vector<8x6xf32>
    %334 = vector.extract_strided_slice %289 {offsets = [0, 114], sizes = [8, 6], strides = [1, 1]} : vector<8x144xf32> to vector<8x6xf32>
    %335 = arith.maximumf %333, %334 : vector<8x6xf32>
    %336 = arith.maximumf %332, %335 : vector<8x6xf32>
    %c22 = arith.constant 22 : index
    %c0_163 = arith.constant 0 : index
    %c0_164 = arith.constant 0 : index
    %337 = vector.load %arg9[%c22, %c0_163, %c0_164] : memref<36x8x6xf32, #tpu.memory_space<vmem>>, vector<1x8x6xf32>
    %338 = vector.shape_cast %337 : vector<1x8x6xf32> to vector<8x6xf32>
    %339 = vector.shape_cast %336 : vector<8x6xf32> to vector<1x8x6xf32>
    tpu.vector_store %arg9[%c22, %c0_163, %c0_164], %339 {strides = array<i32>} : memref<36x8x6xf32, #tpu.memory_space<vmem>>, vector<1x8x6xf32>,
    %340 = vector.extract_strided_slice %289 {offsets = [0, 120], sizes = [8, 6], strides = [1, 1]} : vector<8x144xf32> to vector<8x6xf32>
    %341 = vector.extract_strided_slice %289 {offsets = [0, 126], sizes = [8, 6], strides = [1, 1]} : vector<8x144xf32> to vector<8x6xf32>
    %342 = arith.maximumf %340, %341 : vector<8x6xf32>
    %343 = vector.extract_strided_slice %289 {offsets = [0, 132], sizes = [8, 6], strides = [1, 1]} : vector<8x144xf32> to vector<8x6xf32>
    %344 = vector.extract_strided_slice %289 {offsets = [0, 138], sizes = [8, 6], strides = [1, 1]} : vector<8x144xf32> to vector<8x6xf32>
    %345 = arith.maximumf %343, %344 : vector<8x6xf32>
    %346 = arith.maximumf %342, %345 : vector<8x6xf32>
    %c23 = arith.constant 23 : index
    %c0_165 = arith.constant 0 : index
    %c0_166 = arith.constant 0 : index
    %347 = vector.load %arg9[%c23, %c0_165, %c0_166] : memref<36x8x6xf32, #tpu.memory_space<vmem>>, vector<1x8x6xf32>
    %348 = vector.shape_cast %347 : vector<1x8x6xf32> to vector<8x6xf32>
    %349 = vector.shape_cast %346 : vector<8x6xf32> to vector<1x8x6xf32>
    tpu.vector_store %arg9[%c23, %c0_165, %c0_166], %349 {strides = array<i32>} : memref<36x8x6xf32, #tpu.memory_space<vmem>>, vector<1x8x6xf32>,
    %c8_167 = arith.constant 8 : index
    %c0_168 = arith.constant 0 : index
    %c0_169 = arith.constant 0 : index
    %350 = vector.load %arg1[%c8_167, %c0_168, %c0_169] : memref<14x8x14xf32, #tpu.memory_space<vmem>>, vector<1x8x14xf32>
    %351 = vector.shape_cast %350 : vector<1x8x14xf32> to vector<8x14xf32>
    %c0_170 = arith.constant 0 : index
    %c0_171 = arith.constant 0 : index
    %c0_172 = arith.constant 0 : index
    %352 = vector.load %arg2[%c0_170, %c0_171, %c0_172] : memref<4x14x144xf32, #tpu.memory_space<vmem>>, vector<1x14x144xf32>
    %353 = vector.shape_cast %352 : vector<1x14x144xf32> to vector<14x144xf32>
    %cst_173 = arith.constant dense<0.000000e+00> : vector<8x144xf32>
    %354 = tpu.matmul %351, %353, %cst_173 {dimension_numbers = #tpu.dot_dimension_numbers<[1], [0], [0], [1], [0, 0, 1, 1], [], []>} : vector<8x14xf32>, vector<14x144xf32>, vector<8x144xf32> -> vector<8x144xf32>
    %c9_174 = arith.constant 9 : index
    %c0_175 = arith.constant 0 : index
    %c0_176 = arith.constant 0 : index
    %355 = vector.load %arg1[%c9_174, %c0_175, %c0_176] : memref<14x8x14xf32, #tpu.memory_space<vmem>>, vector<1x8x14xf32>
    %356 = vector.shape_cast %355 : vector<1x8x14xf32> to vector<8x14xf32>
    %c1_177 = arith.constant 1 : index
    %c0_178 = arith.constant 0 : index
    %c0_179 = arith.constant 0 : index
    %357 = vector.load %arg2[%c1_177, %c0_178, %c0_179] : memref<4x14x144xf32, #tpu.memory_space<vmem>>, vector<1x14x144xf32>
    %358 = vector.shape_cast %357 : vector<1x14x144xf32> to vector<14x144xf32>
    %cst_180 = arith.constant dense<0.000000e+00> : vector<8x144xf32>
    %359 = tpu.matmul %356, %358, %cst_180 {dimension_numbers = #tpu.dot_dimension_numbers<[1], [0], [0], [1], [0, 0, 1, 1], [], []>} : vector<8x14xf32>, vector<14x144xf32>, vector<8x144xf32> -> vector<8x144xf32>
    %360 = arith.addf %354, %359 : vector<8x144xf32>
    %c10_181 = arith.constant 10 : index
    %c0_182 = arith.constant 0 : index
    %c0_183 = arith.constant 0 : index
    %361 = vector.load %arg1[%c10_181, %c0_182, %c0_183] : memref<14x8x14xf32, #tpu.memory_space<vmem>>, vector<1x8x14xf32>
    %362 = vector.shape_cast %361 : vector<1x8x14xf32> to vector<8x14xf32>
    %c2_184 = arith.constant 2 : index
    %c0_185 = arith.constant 0 : index
    %c0_186 = arith.constant 0 : index
    %363 = vector.load %arg2[%c2_184, %c0_185, %c0_186] : memref<4x14x144xf32, #tpu.memory_space<vmem>>, vector<1x14x144xf32>
    %364 = vector.shape_cast %363 : vector<1x14x144xf32> to vector<14x144xf32>
    %cst_187 = arith.constant dense<0.000000e+00> : vector<8x144xf32>
    %365 = tpu.matmul %362, %364, %cst_187 {dimension_numbers = #tpu.dot_dimension_numbers<[1], [0], [0], [1], [0, 0, 1, 1], [], []>} : vector<8x14xf32>, vector<14x144xf32>, vector<8x144xf32> -> vector<8x144xf32>
    %366 = arith.addf %360, %365 : vector<8x144xf32>
    %c11_188 = arith.constant 11 : index
    %c0_189 = arith.constant 0 : index
    %c0_190 = arith.constant 0 : index
    %367 = vector.load %arg1[%c11_188, %c0_189, %c0_190] : memref<14x8x14xf32, #tpu.memory_space<vmem>>, vector<1x8x14xf32>
    %368 = vector.shape_cast %367 : vector<1x8x14xf32> to vector<8x14xf32>
    %c3_191 = arith.constant 3 : index
    %c0_192 = arith.constant 0 : index
    %c0_193 = arith.constant 0 : index
    %369 = vector.load %arg2[%c3_191, %c0_192, %c0_193] : memref<4x14x144xf32, #tpu.memory_space<vmem>>, vector<1x14x144xf32>
    %370 = vector.shape_cast %369 : vector<1x14x144xf32> to vector<14x144xf32>
    %cst_194 = arith.constant dense<0.000000e+00> : vector<8x144xf32>
    %371 = tpu.matmul %368, %370, %cst_194 {dimension_numbers = #tpu.dot_dimension_numbers<[1], [0], [0], [1], [0, 0, 1, 1], [], []>} : vector<8x14xf32>, vector<14x144xf32>, vector<8x144xf32> -> vector<8x144xf32>
    %372 = arith.addf %366, %371 : vector<8x144xf32>
    %373 = vector.broadcast %0 : vector<1x144xf32> to vector<8x144xf32>
    %374 = arith.addf %372, %373 : vector<8x144xf32>
    %cst_195 = arith.constant 0.000000e+00 : f32
    %375 = vector.broadcast %cst_195 : f32 to vector<8x144xf32>
    %376 = arith.maximumf %374, %375 : vector<8x144xf32>
    %377 = vector.extract_strided_slice %376 {offsets = [0, 0], sizes = [8, 6], strides = [1, 1]} : vector<8x144xf32> to vector<8x6xf32>
    %378 = vector.extract_strided_slice %376 {offsets = [0, 6], sizes = [8, 6], strides = [1, 1]} : vector<8x144xf32> to vector<8x6xf32>
    %379 = arith.maximumf %377, %378 : vector<8x6xf32>
    %380 = vector.extract_strided_slice %376 {offsets = [0, 12], sizes = [8, 6], strides = [1, 1]} : vector<8x144xf32> to vector<8x6xf32>
    %381 = vector.extract_strided_slice %376 {offsets = [0, 18], sizes = [8, 6], strides = [1, 1]} : vector<8x144xf32> to vector<8x6xf32>
    %382 = arith.maximumf %380, %381 : vector<8x6xf32>
    %383 = arith.maximumf %379, %382 : vector<8x6xf32>
    %c24 = arith.constant 24 : index
    %c0_196 = arith.constant 0 : index
    %c0_197 = arith.constant 0 : index
    %384 = vector.load %arg9[%c24, %c0_196, %c0_197] : memref<36x8x6xf32, #tpu.memory_space<vmem>>, vector<1x8x6xf32>
    %385 = vector.shape_cast %384 : vector<1x8x6xf32> to vector<8x6xf32>
    %386 = vector.shape_cast %383 : vector<8x6xf32> to vector<1x8x6xf32>
    tpu.vector_store %arg9[%c24, %c0_196, %c0_197], %386 {strides = array<i32>} : memref<36x8x6xf32, #tpu.memory_space<vmem>>, vector<1x8x6xf32>,
    %387 = vector.extract_strided_slice %376 {offsets = [0, 24], sizes = [8, 6], strides = [1, 1]} : vector<8x144xf32> to vector<8x6xf32>
    %388 = vector.extract_strided_slice %376 {offsets = [0, 30], sizes = [8, 6], strides = [1, 1]} : vector<8x144xf32> to vector<8x6xf32>
    %389 = arith.maximumf %387, %388 : vector<8x6xf32>
    %390 = vector.extract_strided_slice %376 {offsets = [0, 36], sizes = [8, 6], strides = [1, 1]} : vector<8x144xf32> to vector<8x6xf32>
    %391 = vector.extract_strided_slice %376 {offsets = [0, 42], sizes = [8, 6], strides = [1, 1]} : vector<8x144xf32> to vector<8x6xf32>
    %392 = arith.maximumf %390, %391 : vector<8x6xf32>
    %393 = arith.maximumf %389, %392 : vector<8x6xf32>
    %c25 = arith.constant 25 : index
    %c0_198 = arith.constant 0 : index
    %c0_199 = arith.constant 0 : index
    %394 = vector.load %arg9[%c25, %c0_198, %c0_199] : memref<36x8x6xf32, #tpu.memory_space<vmem>>, vector<1x8x6xf32>
    %395 = vector.shape_cast %394 : vector<1x8x6xf32> to vector<8x6xf32>
    %396 = vector.shape_cast %393 : vector<8x6xf32> to vector<1x8x6xf32>
    tpu.vector_store %arg9[%c25, %c0_198, %c0_199], %396 {strides = array<i32>} : memref<36x8x6xf32, #tpu.memory_space<vmem>>, vector<1x8x6xf32>,
    %397 = vector.extract_strided_slice %376 {offsets = [0, 48], sizes = [8, 6], strides = [1, 1]} : vector<8x144xf32> to vector<8x6xf32>
    %398 = vector.extract_strided_slice %376 {offsets = [0, 54], sizes = [8, 6], strides = [1, 1]} : vector<8x144xf32> to vector<8x6xf32>
    %399 = arith.maximumf %397, %398 : vector<8x6xf32>
    %400 = vector.extract_strided_slice %376 {offsets = [0, 60], sizes = [8, 6], strides = [1, 1]} : vector<8x144xf32> to vector<8x6xf32>
    %401 = vector.extract_strided_slice %376 {offsets = [0, 66], sizes = [8, 6], strides = [1, 1]} : vector<8x144xf32> to vector<8x6xf32>
    %402 = arith.maximumf %400, %401 : vector<8x6xf32>
    %403 = arith.maximumf %399, %402 : vector<8x6xf32>
    %c26 = arith.constant 26 : index
    %c0_200 = arith.constant 0 : index
    %c0_201 = arith.constant 0 : index
    %404 = vector.load %arg9[%c26, %c0_200, %c0_201] : memref<36x8x6xf32, #tpu.memory_space<vmem>>, vector<1x8x6xf32>
    %405 = vector.shape_cast %404 : vector<1x8x6xf32> to vector<8x6xf32>
    %406 = vector.shape_cast %403 : vector<8x6xf32> to vector<1x8x6xf32>
    tpu.vector_store %arg9[%c26, %c0_200, %c0_201], %406 {strides = array<i32>} : memref<36x8x6xf32, #tpu.memory_space<vmem>>, vector<1x8x6xf32>,
    %407 = vector.extract_strided_slice %376 {offsets = [0, 72], sizes = [8, 6], strides = [1, 1]} : vector<8x144xf32> to vector<8x6xf32>
    %408 = vector.extract_strided_slice %376 {offsets = [0, 78], sizes = [8, 6], strides = [1, 1]} : vector<8x144xf32> to vector<8x6xf32>
    %409 = arith.maximumf %407, %408 : vector<8x6xf32>
    %410 = vector.extract_strided_slice %376 {offsets = [0, 84], sizes = [8, 6], strides = [1, 1]} : vector<8x144xf32> to vector<8x6xf32>
    %411 = vector.extract_strided_slice %376 {offsets = [0, 90], sizes = [8, 6], strides = [1, 1]} : vector<8x144xf32> to vector<8x6xf32>
    %412 = arith.maximumf %410, %411 : vector<8x6xf32>
    %413 = arith.maximumf %409, %412 : vector<8x6xf32>
    %c27 = arith.constant 27 : index
    %c0_202 = arith.constant 0 : index
    %c0_203 = arith.constant 0 : index
    %414 = vector.load %arg9[%c27, %c0_202, %c0_203] : memref<36x8x6xf32, #tpu.memory_space<vmem>>, vector<1x8x6xf32>
    %415 = vector.shape_cast %414 : vector<1x8x6xf32> to vector<8x6xf32>
    %416 = vector.shape_cast %413 : vector<8x6xf32> to vector<1x8x6xf32>
    tpu.vector_store %arg9[%c27, %c0_202, %c0_203], %416 {strides = array<i32>} : memref<36x8x6xf32, #tpu.memory_space<vmem>>, vector<1x8x6xf32>,
    %417 = vector.extract_strided_slice %376 {offsets = [0, 96], sizes = [8, 6], strides = [1, 1]} : vector<8x144xf32> to vector<8x6xf32>
    %418 = vector.extract_strided_slice %376 {offsets = [0, 102], sizes = [8, 6], strides = [1, 1]} : vector<8x144xf32> to vector<8x6xf32>
    %419 = arith.maximumf %417, %418 : vector<8x6xf32>
    %420 = vector.extract_strided_slice %376 {offsets = [0, 108], sizes = [8, 6], strides = [1, 1]} : vector<8x144xf32> to vector<8x6xf32>
    %421 = vector.extract_strided_slice %376 {offsets = [0, 114], sizes = [8, 6], strides = [1, 1]} : vector<8x144xf32> to vector<8x6xf32>
    %422 = arith.maximumf %420, %421 : vector<8x6xf32>
    %423 = arith.maximumf %419, %422 : vector<8x6xf32>
    %c28 = arith.constant 28 : index
    %c0_204 = arith.constant 0 : index
    %c0_205 = arith.constant 0 : index
    %424 = vector.load %arg9[%c28, %c0_204, %c0_205] : memref<36x8x6xf32, #tpu.memory_space<vmem>>, vector<1x8x6xf32>
    %425 = vector.shape_cast %424 : vector<1x8x6xf32> to vector<8x6xf32>
    %426 = vector.shape_cast %423 : vector<8x6xf32> to vector<1x8x6xf32>
    tpu.vector_store %arg9[%c28, %c0_204, %c0_205], %426 {strides = array<i32>} : memref<36x8x6xf32, #tpu.memory_space<vmem>>, vector<1x8x6xf32>,
    %427 = vector.extract_strided_slice %376 {offsets = [0, 120], sizes = [8, 6], strides = [1, 1]} : vector<8x144xf32> to vector<8x6xf32>
    %428 = vector.extract_strided_slice %376 {offsets = [0, 126], sizes = [8, 6], strides = [1, 1]} : vector<8x144xf32> to vector<8x6xf32>
    %429 = arith.maximumf %427, %428 : vector<8x6xf32>
    %430 = vector.extract_strided_slice %376 {offsets = [0, 132], sizes = [8, 6], strides = [1, 1]} : vector<8x144xf32> to vector<8x6xf32>
    %431 = vector.extract_strided_slice %376 {offsets = [0, 138], sizes = [8, 6], strides = [1, 1]} : vector<8x144xf32> to vector<8x6xf32>
    %432 = arith.maximumf %430, %431 : vector<8x6xf32>
    %433 = arith.maximumf %429, %432 : vector<8x6xf32>
    %c29 = arith.constant 29 : index
    %c0_206 = arith.constant 0 : index
    %c0_207 = arith.constant 0 : index
    %434 = vector.load %arg9[%c29, %c0_206, %c0_207] : memref<36x8x6xf32, #tpu.memory_space<vmem>>, vector<1x8x6xf32>
    %435 = vector.shape_cast %434 : vector<1x8x6xf32> to vector<8x6xf32>
    %436 = vector.shape_cast %433 : vector<8x6xf32> to vector<1x8x6xf32>
    tpu.vector_store %arg9[%c29, %c0_206, %c0_207], %436 {strides = array<i32>} : memref<36x8x6xf32, #tpu.memory_space<vmem>>, vector<1x8x6xf32>,
    %c10_208 = arith.constant 10 : index
    %c0_209 = arith.constant 0 : index
    %c0_210 = arith.constant 0 : index
    %437 = vector.load %arg1[%c10_208, %c0_209, %c0_210] : memref<14x8x14xf32, #tpu.memory_space<vmem>>, vector<1x8x14xf32>
    %438 = vector.shape_cast %437 : vector<1x8x14xf32> to vector<8x14xf32>
    %c0_211 = arith.constant 0 : index
    %c0_212 = arith.constant 0 : index
    %c0_213 = arith.constant 0 : index
    %439 = vector.load %arg2[%c0_211, %c0_212, %c0_213] : memref<4x14x144xf32, #tpu.memory_space<vmem>>, vector<1x14x144xf32>
    %440 = vector.shape_cast %439 : vector<1x14x144xf32> to vector<14x144xf32>
    %cst_214 = arith.constant dense<0.000000e+00> : vector<8x144xf32>
    %441 = tpu.matmul %438, %440, %cst_214 {dimension_numbers = #tpu.dot_dimension_numbers<[1], [0], [0], [1], [0, 0, 1, 1], [], []>} : vector<8x14xf32>, vector<14x144xf32>, vector<8x144xf32> -> vector<8x144xf32>
    %c11_215 = arith.constant 11 : index
    %c0_216 = arith.constant 0 : index
    %c0_217 = arith.constant 0 : index
    %442 = vector.load %arg1[%c11_215, %c0_216, %c0_217] : memref<14x8x14xf32, #tpu.memory_space<vmem>>, vector<1x8x14xf32>
    %443 = vector.shape_cast %442 : vector<1x8x14xf32> to vector<8x14xf32>
    %c1_218 = arith.constant 1 : index
    %c0_219 = arith.constant 0 : index
    %c0_220 = arith.constant 0 : index
    %444 = vector.load %arg2[%c1_218, %c0_219, %c0_220] : memref<4x14x144xf32, #tpu.memory_space<vmem>>, vector<1x14x144xf32>
    %445 = vector.shape_cast %444 : vector<1x14x144xf32> to vector<14x144xf32>
    %cst_221 = arith.constant dense<0.000000e+00> : vector<8x144xf32>
    %446 = tpu.matmul %443, %445, %cst_221 {dimension_numbers = #tpu.dot_dimension_numbers<[1], [0], [0], [1], [0, 0, 1, 1], [], []>} : vector<8x14xf32>, vector<14x144xf32>, vector<8x144xf32> -> vector<8x144xf32>
    %447 = arith.addf %441, %446 : vector<8x144xf32>
    %c12_222 = arith.constant 12 : index
    %c0_223 = arith.constant 0 : index
    %c0_224 = arith.constant 0 : index
    %448 = vector.load %arg1[%c12_222, %c0_223, %c0_224] : memref<14x8x14xf32, #tpu.memory_space<vmem>>, vector<1x8x14xf32>
    %449 = vector.shape_cast %448 : vector<1x8x14xf32> to vector<8x14xf32>
    %c2_225 = arith.constant 2 : index
    %c0_226 = arith.constant 0 : index
    %c0_227 = arith.constant 0 : index
    %450 = vector.load %arg2[%c2_225, %c0_226, %c0_227] : memref<4x14x144xf32, #tpu.memory_space<vmem>>, vector<1x14x144xf32>
    %451 = vector.shape_cast %450 : vector<1x14x144xf32> to vector<14x144xf32>
    %cst_228 = arith.constant dense<0.000000e+00> : vector<8x144xf32>
    %452 = tpu.matmul %449, %451, %cst_228 {dimension_numbers = #tpu.dot_dimension_numbers<[1], [0], [0], [1], [0, 0, 1, 1], [], []>} : vector<8x14xf32>, vector<14x144xf32>, vector<8x144xf32> -> vector<8x144xf32>
    %453 = arith.addf %447, %452 : vector<8x144xf32>
    %c13_229 = arith.constant 13 : index
    %c0_230 = arith.constant 0 : index
    %c0_231 = arith.constant 0 : index
    %454 = vector.load %arg1[%c13_229, %c0_230, %c0_231] : memref<14x8x14xf32, #tpu.memory_space<vmem>>, vector<1x8x14xf32>
    %455 = vector.shape_cast %454 : vector<1x8x14xf32> to vector<8x14xf32>
    %c3_232 = arith.constant 3 : index
    %c0_233 = arith.constant 0 : index
    %c0_234 = arith.constant 0 : index
    %456 = vector.load %arg2[%c3_232, %c0_233, %c0_234] : memref<4x14x144xf32, #tpu.memory_space<vmem>>, vector<1x14x144xf32>
    %457 = vector.shape_cast %456 : vector<1x14x144xf32> to vector<14x144xf32>
    %cst_235 = arith.constant dense<0.000000e+00> : vector<8x144xf32>
    %458 = tpu.matmul %455, %457, %cst_235 {dimension_numbers = #tpu.dot_dimension_numbers<[1], [0], [0], [1], [0, 0, 1, 1], [], []>} : vector<8x14xf32>, vector<14x144xf32>, vector<8x144xf32> -> vector<8x144xf32>
    %459 = arith.addf %453, %458 : vector<8x144xf32>
    %460 = vector.broadcast %0 : vector<1x144xf32> to vector<8x144xf32>
    %461 = arith.addf %459, %460 : vector<8x144xf32>
    %cst_236 = arith.constant 0.000000e+00 : f32
    %462 = vector.broadcast %cst_236 : f32 to vector<8x144xf32>
    %463 = arith.maximumf %461, %462 : vector<8x144xf32>
    %464 = vector.extract_strided_slice %463 {offsets = [0, 0], sizes = [8, 6], strides = [1, 1]} : vector<8x144xf32> to vector<8x6xf32>
    %465 = vector.extract_strided_slice %463 {offsets = [0, 6], sizes = [8, 6], strides = [1, 1]} : vector<8x144xf32> to vector<8x6xf32>
    %466 = arith.maximumf %464, %465 : vector<8x6xf32>
    %467 = vector.extract_strided_slice %463 {offsets = [0, 12], sizes = [8, 6], strides = [1, 1]} : vector<8x144xf32> to vector<8x6xf32>
    %468 = vector.extract_strided_slice %463 {offsets = [0, 18], sizes = [8, 6], strides = [1, 1]} : vector<8x144xf32> to vector<8x6xf32>
    %469 = arith.maximumf %467, %468 : vector<8x6xf32>
    %470 = arith.maximumf %466, %469 : vector<8x6xf32>
    %c30 = arith.constant 30 : index
    %c0_237 = arith.constant 0 : index
    %c0_238 = arith.constant 0 : index
    %471 = vector.load %arg9[%c30, %c0_237, %c0_238] : memref<36x8x6xf32, #tpu.memory_space<vmem>>, vector<1x8x6xf32>
    %472 = vector.shape_cast %471 : vector<1x8x6xf32> to vector<8x6xf32>
    %473 = vector.shape_cast %470 : vector<8x6xf32> to vector<1x8x6xf32>
    tpu.vector_store %arg9[%c30, %c0_237, %c0_238], %473 {strides = array<i32>} : memref<36x8x6xf32, #tpu.memory_space<vmem>>, vector<1x8x6xf32>,
    %474 = vector.extract_strided_slice %463 {offsets = [0, 24], sizes = [8, 6], strides = [1, 1]} : vector<8x144xf32> to vector<8x6xf32>
    %475 = vector.extract_strided_slice %463 {offsets = [0, 30], sizes = [8, 6], strides = [1, 1]} : vector<8x144xf32> to vector<8x6xf32>
    %476 = arith.maximumf %474, %475 : vector<8x6xf32>
    %477 = vector.extract_strided_slice %463 {offsets = [0, 36], sizes = [8, 6], strides = [1, 1]} : vector<8x144xf32> to vector<8x6xf32>
    %478 = vector.extract_strided_slice %463 {offsets = [0, 42], sizes = [8, 6], strides = [1, 1]} : vector<8x144xf32> to vector<8x6xf32>
    %479 = arith.maximumf %477, %478 : vector<8x6xf32>
    %480 = arith.maximumf %476, %479 : vector<8x6xf32>
    %c31 = arith.constant 31 : index
    %c0_239 = arith.constant 0 : index
    %c0_240 = arith.constant 0 : index
    %481 = vector.load %arg9[%c31, %c0_239, %c0_240] : memref<36x8x6xf32, #tpu.memory_space<vmem>>, vector<1x8x6xf32>
    %482 = vector.shape_cast %481 : vector<1x8x6xf32> to vector<8x6xf32>
    %483 = vector.shape_cast %480 : vector<8x6xf32> to vector<1x8x6xf32>
    tpu.vector_store %arg9[%c31, %c0_239, %c0_240], %483 {strides = array<i32>} : memref<36x8x6xf32, #tpu.memory_space<vmem>>, vector<1x8x6xf32>,
    %484 = vector.extract_strided_slice %463 {offsets = [0, 48], sizes = [8, 6], strides = [1, 1]} : vector<8x144xf32> to vector<8x6xf32>
    %485 = vector.extract_strided_slice %463 {offsets = [0, 54], sizes = [8, 6], strides = [1, 1]} : vector<8x144xf32> to vector<8x6xf32>
    %486 = arith.maximumf %484, %485 : vector<8x6xf32>
    %487 = vector.extract_strided_slice %463 {offsets = [0, 60], sizes = [8, 6], strides = [1, 1]} : vector<8x144xf32> to vector<8x6xf32>
    %488 = vector.extract_strided_slice %463 {offsets = [0, 66], sizes = [8, 6], strides = [1, 1]} : vector<8x144xf32> to vector<8x6xf32>
    %489 = arith.maximumf %487, %488 : vector<8x6xf32>
    %490 = arith.maximumf %486, %489 : vector<8x6xf32>
    %c32 = arith.constant 32 : index
    %c0_241 = arith.constant 0 : index
    %c0_242 = arith.constant 0 : index
    %491 = vector.load %arg9[%c32, %c0_241, %c0_242] : memref<36x8x6xf32, #tpu.memory_space<vmem>>, vector<1x8x6xf32>
    %492 = vector.shape_cast %491 : vector<1x8x6xf32> to vector<8x6xf32>
    %493 = vector.shape_cast %490 : vector<8x6xf32> to vector<1x8x6xf32>
    tpu.vector_store %arg9[%c32, %c0_241, %c0_242], %493 {strides = array<i32>} : memref<36x8x6xf32, #tpu.memory_space<vmem>>, vector<1x8x6xf32>,
    %494 = vector.extract_strided_slice %463 {offsets = [0, 72], sizes = [8, 6], strides = [1, 1]} : vector<8x144xf32> to vector<8x6xf32>
    %495 = vector.extract_strided_slice %463 {offsets = [0, 78], sizes = [8, 6], strides = [1, 1]} : vector<8x144xf32> to vector<8x6xf32>
    %496 = arith.maximumf %494, %495 : vector<8x6xf32>
    %497 = vector.extract_strided_slice %463 {offsets = [0, 84], sizes = [8, 6], strides = [1, 1]} : vector<8x144xf32> to vector<8x6xf32>
    %498 = vector.extract_strided_slice %463 {offsets = [0, 90], sizes = [8, 6], strides = [1, 1]} : vector<8x144xf32> to vector<8x6xf32>
    %499 = arith.maximumf %497, %498 : vector<8x6xf32>
    %500 = arith.maximumf %496, %499 : vector<8x6xf32>
    %c33 = arith.constant 33 : index
    %c0_243 = arith.constant 0 : index
    %c0_244 = arith.constant 0 : index
    %501 = vector.load %arg9[%c33, %c0_243, %c0_244] : memref<36x8x6xf32, #tpu.memory_space<vmem>>, vector<1x8x6xf32>
    %502 = vector.shape_cast %501 : vector<1x8x6xf32> to vector<8x6xf32>
    %503 = vector.shape_cast %500 : vector<8x6xf32> to vector<1x8x6xf32>
    tpu.vector_store %arg9[%c33, %c0_243, %c0_244], %503 {strides = array<i32>} : memref<36x8x6xf32, #tpu.memory_space<vmem>>, vector<1x8x6xf32>,
    %504 = vector.extract_strided_slice %463 {offsets = [0, 96], sizes = [8, 6], strides = [1, 1]} : vector<8x144xf32> to vector<8x6xf32>
    %505 = vector.extract_strided_slice %463 {offsets = [0, 102], sizes = [8, 6], strides = [1, 1]} : vector<8x144xf32> to vector<8x6xf32>
    %506 = arith.maximumf %504, %505 : vector<8x6xf32>
    %507 = vector.extract_strided_slice %463 {offsets = [0, 108], sizes = [8, 6], strides = [1, 1]} : vector<8x144xf32> to vector<8x6xf32>
    %508 = vector.extract_strided_slice %463 {offsets = [0, 114], sizes = [8, 6], strides = [1, 1]} : vector<8x144xf32> to vector<8x6xf32>
    %509 = arith.maximumf %507, %508 : vector<8x6xf32>
    %510 = arith.maximumf %506, %509 : vector<8x6xf32>
    %c34 = arith.constant 34 : index
    %c0_245 = arith.constant 0 : index
    %c0_246 = arith.constant 0 : index
    %511 = vector.load %arg9[%c34, %c0_245, %c0_246] : memref<36x8x6xf32, #tpu.memory_space<vmem>>, vector<1x8x6xf32>
    %512 = vector.shape_cast %511 : vector<1x8x6xf32> to vector<8x6xf32>
    %513 = vector.shape_cast %510 : vector<8x6xf32> to vector<1x8x6xf32>
    tpu.vector_store %arg9[%c34, %c0_245, %c0_246], %513 {strides = array<i32>} : memref<36x8x6xf32, #tpu.memory_space<vmem>>, vector<1x8x6xf32>,
    %514 = vector.extract_strided_slice %463 {offsets = [0, 120], sizes = [8, 6], strides = [1, 1]} : vector<8x144xf32> to vector<8x6xf32>
    %515 = vector.extract_strided_slice %463 {offsets = [0, 126], sizes = [8, 6], strides = [1, 1]} : vector<8x144xf32> to vector<8x6xf32>
    %516 = arith.maximumf %514, %515 : vector<8x6xf32>
    %517 = vector.extract_strided_slice %463 {offsets = [0, 132], sizes = [8, 6], strides = [1, 1]} : vector<8x144xf32> to vector<8x6xf32>
    %518 = vector.extract_strided_slice %463 {offsets = [0, 138], sizes = [8, 6], strides = [1, 1]} : vector<8x144xf32> to vector<8x6xf32>
    %519 = arith.maximumf %517, %518 : vector<8x6xf32>
    %520 = arith.maximumf %516, %519 : vector<8x6xf32>
    %c35 = arith.constant 35 : index
    %c0_247 = arith.constant 0 : index
    %c0_248 = arith.constant 0 : index
    %521 = vector.load %arg9[%c35, %c0_247, %c0_248] : memref<36x8x6xf32, #tpu.memory_space<vmem>>, vector<1x8x6xf32>
    %522 = vector.shape_cast %521 : vector<1x8x6xf32> to vector<8x6xf32>
    %523 = vector.shape_cast %520 : vector<8x6xf32> to vector<1x8x6xf32>
    tpu.vector_store %arg9[%c35, %c0_247, %c0_248], %523 {strides = array<i32>} : memref<36x8x6xf32, #tpu.memory_space<vmem>>, vector<1x8x6xf32>,
    %c0_249 = arith.constant 0 : index
    %c0_250 = arith.constant 0 : index
    %c0_251 = arith.constant 0 : index
    %524 = vector.load %arg9[%c0_249, %c0_250, %c0_251] : memref<36x8x6xf32, #tpu.memory_space<vmem>>, vector<1x8x6xf32>
    %525 = vector.shape_cast %524 : vector<1x8x6xf32> to vector<8x6xf32>
    %c0_252 = arith.constant 0 : index
    %c0_253 = arith.constant 0 : index
    %c0_254 = arith.constant 0 : index
    %526 = vector.load %arg3[%c0_252, %c0_253, %c0_254] : memref<16x6x64xf32, #tpu.memory_space<vmem>>, vector<1x6x64xf32>
    %527 = vector.shape_cast %526 : vector<1x6x64xf32> to vector<6x64xf32>
    %cst_255 = arith.constant dense<0.000000e+00> : vector<8x64xf32>
    %528 = tpu.matmul %525, %527, %cst_255 {dimension_numbers = #tpu.dot_dimension_numbers<[1], [0], [0], [1], [0, 0, 1, 1], [], []>} : vector<8x6xf32>, vector<6x64xf32>, vector<8x64xf32> -> vector<8x64xf32>
    %529 = vector.broadcast %1 : vector<1x64xf32> to vector<8x64xf32>
    %530 = arith.addf %529, %528 : vector<8x64xf32>
    %c1_256 = arith.constant 1 : index
    %c0_257 = arith.constant 0 : index
    %c0_258 = arith.constant 0 : index
    %531 = vector.load %arg9[%c1_256, %c0_257, %c0_258] : memref<36x8x6xf32, #tpu.memory_space<vmem>>, vector<1x8x6xf32>
    %532 = vector.shape_cast %531 : vector<1x8x6xf32> to vector<8x6xf32>
    %c1_259 = arith.constant 1 : index
    %c0_260 = arith.constant 0 : index
    %c0_261 = arith.constant 0 : index
    %533 = vector.load %arg3[%c1_259, %c0_260, %c0_261] : memref<16x6x64xf32, #tpu.memory_space<vmem>>, vector<1x6x64xf32>
    %534 = vector.shape_cast %533 : vector<1x6x64xf32> to vector<6x64xf32>
    %cst_262 = arith.constant dense<0.000000e+00> : vector<8x64xf32>
    %535 = tpu.matmul %532, %534, %cst_262 {dimension_numbers = #tpu.dot_dimension_numbers<[1], [0], [0], [1], [0, 0, 1, 1], [], []>} : vector<8x6xf32>, vector<6x64xf32>, vector<8x64xf32> -> vector<8x64xf32>
    %536 = arith.addf %530, %535 : vector<8x64xf32>
    %c2_263 = arith.constant 2 : index
    %c0_264 = arith.constant 0 : index
    %c0_265 = arith.constant 0 : index
    %537 = vector.load %arg9[%c2_263, %c0_264, %c0_265] : memref<36x8x6xf32, #tpu.memory_space<vmem>>, vector<1x8x6xf32>
    %538 = vector.shape_cast %537 : vector<1x8x6xf32> to vector<8x6xf32>
    %c2_266 = arith.constant 2 : index
    %c0_267 = arith.constant 0 : index
    %c0_268 = arith.constant 0 : index
    %539 = vector.load %arg3[%c2_266, %c0_267, %c0_268] : memref<16x6x64xf32, #tpu.memory_space<vmem>>, vector<1x6x64xf32>
    %540 = vector.shape_cast %539 : vector<1x6x64xf32> to vector<6x64xf32>
    %cst_269 = arith.constant dense<0.000000e+00> : vector<8x64xf32>
    %541 = tpu.matmul %538, %540, %cst_269 {dimension_numbers = #tpu.dot_dimension_numbers<[1], [0], [0], [1], [0, 0, 1, 1], [], []>} : vector<8x6xf32>, vector<6x64xf32>, vector<8x64xf32> -> vector<8x64xf32>
    %542 = arith.addf %536, %541 : vector<8x64xf32>
    %c3_270 = arith.constant 3 : index
    %c0_271 = arith.constant 0 : index
    %c0_272 = arith.constant 0 : index
    %543 = vector.load %arg9[%c3_270, %c0_271, %c0_272] : memref<36x8x6xf32, #tpu.memory_space<vmem>>, vector<1x8x6xf32>
    %544 = vector.shape_cast %543 : vector<1x8x6xf32> to vector<8x6xf32>
    %c3_273 = arith.constant 3 : index
    %c0_274 = arith.constant 0 : index
    %c0_275 = arith.constant 0 : index
    %545 = vector.load %arg3[%c3_273, %c0_274, %c0_275] : memref<16x6x64xf32, #tpu.memory_space<vmem>>, vector<1x6x64xf32>
    %546 = vector.shape_cast %545 : vector<1x6x64xf32> to vector<6x64xf32>
    %cst_276 = arith.constant dense<0.000000e+00> : vector<8x64xf32>
    %547 = tpu.matmul %544, %546, %cst_276 {dimension_numbers = #tpu.dot_dimension_numbers<[1], [0], [0], [1], [0, 0, 1, 1], [], []>} : vector<8x6xf32>, vector<6x64xf32>, vector<8x64xf32> -> vector<8x64xf32>
    %548 = arith.addf %542, %547 : vector<8x64xf32>
    %c6_277 = arith.constant 6 : index
    %c0_278 = arith.constant 0 : index
    %c0_279 = arith.constant 0 : index
    %549 = vector.load %arg9[%c6_277, %c0_278, %c0_279] : memref<36x8x6xf32, #tpu.memory_space<vmem>>, vector<1x8x6xf32>
    %550 = vector.shape_cast %549 : vector<1x8x6xf32> to vector<8x6xf32>
    %c4_280 = arith.constant 4 : index
    %c0_281 = arith.constant 0 : index
    %c0_282 = arith.constant 0 : index
    %551 = vector.load %arg3[%c4_280, %c0_281, %c0_282] : memref<16x6x64xf32, #tpu.memory_space<vmem>>, vector<1x6x64xf32>
    %552 = vector.shape_cast %551 : vector<1x6x64xf32> to vector<6x64xf32>
    %cst_283 = arith.constant dense<0.000000e+00> : vector<8x64xf32>
    %553 = tpu.matmul %550, %552, %cst_283 {dimension_numbers = #tpu.dot_dimension_numbers<[1], [0], [0], [1], [0, 0, 1, 1], [], []>} : vector<8x6xf32>, vector<6x64xf32>, vector<8x64xf32> -> vector<8x64xf32>
    %554 = arith.addf %548, %553 : vector<8x64xf32>
    %c7_284 = arith.constant 7 : index
    %c0_285 = arith.constant 0 : index
    %c0_286 = arith.constant 0 : index
    %555 = vector.load %arg9[%c7_284, %c0_285, %c0_286] : memref<36x8x6xf32, #tpu.memory_space<vmem>>, vector<1x8x6xf32>
    %556 = vector.shape_cast %555 : vector<1x8x6xf32> to vector<8x6xf32>
    %c5_287 = arith.constant 5 : index
    %c0_288 = arith.constant 0 : index
    %c0_289 = arith.constant 0 : index
    %557 = vector.load %arg3[%c5_287, %c0_288, %c0_289] : memref<16x6x64xf32, #tpu.memory_space<vmem>>, vector<1x6x64xf32>
    %558 = vector.shape_cast %557 : vector<1x6x64xf32> to vector<6x64xf32>
    %cst_290 = arith.constant dense<0.000000e+00> : vector<8x64xf32>
    %559 = tpu.matmul %556, %558, %cst_290 {dimension_numbers = #tpu.dot_dimension_numbers<[1], [0], [0], [1], [0, 0, 1, 1], [], []>} : vector<8x6xf32>, vector<6x64xf32>, vector<8x64xf32> -> vector<8x64xf32>
    %560 = arith.addf %554, %559 : vector<8x64xf32>
    %c8_291 = arith.constant 8 : index
    %c0_292 = arith.constant 0 : index
    %c0_293 = arith.constant 0 : index
    %561 = vector.load %arg9[%c8_291, %c0_292, %c0_293] : memref<36x8x6xf32, #tpu.memory_space<vmem>>, vector<1x8x6xf32>
    %562 = vector.shape_cast %561 : vector<1x8x6xf32> to vector<8x6xf32>
    %c6_294 = arith.constant 6 : index
    %c0_295 = arith.constant 0 : index
    %c0_296 = arith.constant 0 : index
    %563 = vector.load %arg3[%c6_294, %c0_295, %c0_296] : memref<16x6x64xf32, #tpu.memory_space<vmem>>, vector<1x6x64xf32>
    %564 = vector.shape_cast %563 : vector<1x6x64xf32> to vector<6x64xf32>
    %cst_297 = arith.constant dense<0.000000e+00> : vector<8x64xf32>
    %565 = tpu.matmul %562, %564, %cst_297 {dimension_numbers = #tpu.dot_dimension_numbers<[1], [0], [0], [1], [0, 0, 1, 1], [], []>} : vector<8x6xf32>, vector<6x64xf32>, vector<8x64xf32> -> vector<8x64xf32>
    %566 = arith.addf %560, %565 : vector<8x64xf32>
    %c9_298 = arith.constant 9 : index
    %c0_299 = arith.constant 0 : index
    %c0_300 = arith.constant 0 : index
    %567 = vector.load %arg9[%c9_298, %c0_299, %c0_300] : memref<36x8x6xf32, #tpu.memory_space<vmem>>, vector<1x8x6xf32>
    %568 = vector.shape_cast %567 : vector<1x8x6xf32> to vector<8x6xf32>
    %c7_301 = arith.constant 7 : index
    %c0_302 = arith.constant 0 : index
    %c0_303 = arith.constant 0 : index
    %569 = vector.load %arg3[%c7_301, %c0_302, %c0_303] : memref<16x6x64xf32, #tpu.memory_space<vmem>>, vector<1x6x64xf32>
    %570 = vector.shape_cast %569 : vector<1x6x64xf32> to vector<6x64xf32>
    %cst_304 = arith.constant dense<0.000000e+00> : vector<8x64xf32>
    %571 = tpu.matmul %568, %570, %cst_304 {dimension_numbers = #tpu.dot_dimension_numbers<[1], [0], [0], [1], [0, 0, 1, 1], [], []>} : vector<8x6xf32>, vector<6x64xf32>, vector<8x64xf32> -> vector<8x64xf32>
    %572 = arith.addf %566, %571 : vector<8x64xf32>
    %c12_305 = arith.constant 12 : index
    %c0_306 = arith.constant 0 : index
    %c0_307 = arith.constant 0 : index
    %573 = vector.load %arg9[%c12_305, %c0_306, %c0_307] : memref<36x8x6xf32, #tpu.memory_space<vmem>>, vector<1x8x6xf32>
    %574 = vector.shape_cast %573 : vector<1x8x6xf32> to vector<8x6xf32>
    %c8_308 = arith.constant 8 : index
    %c0_309 = arith.constant 0 : index
    %c0_310 = arith.constant 0 : index
    %575 = vector.load %arg3[%c8_308, %c0_309, %c0_310] : memref<16x6x64xf32, #tpu.memory_space<vmem>>, vector<1x6x64xf32>
    %576 = vector.shape_cast %575 : vector<1x6x64xf32> to vector<6x64xf32>
    %cst_311 = arith.constant dense<0.000000e+00> : vector<8x64xf32>
    %577 = tpu.matmul %574, %576, %cst_311 {dimension_numbers = #tpu.dot_dimension_numbers<[1], [0], [0], [1], [0, 0, 1, 1], [], []>} : vector<8x6xf32>, vector<6x64xf32>, vector<8x64xf32> -> vector<8x64xf32>
    %578 = arith.addf %572, %577 : vector<8x64xf32>
    %c13_312 = arith.constant 13 : index
    %c0_313 = arith.constant 0 : index
    %c0_314 = arith.constant 0 : index
    %579 = vector.load %arg9[%c13_312, %c0_313, %c0_314] : memref<36x8x6xf32, #tpu.memory_space<vmem>>, vector<1x8x6xf32>
    %580 = vector.shape_cast %579 : vector<1x8x6xf32> to vector<8x6xf32>
    %c9_315 = arith.constant 9 : index
    %c0_316 = arith.constant 0 : index
    %c0_317 = arith.constant 0 : index
    %581 = vector.load %arg3[%c9_315, %c0_316, %c0_317] : memref<16x6x64xf32, #tpu.memory_space<vmem>>, vector<1x6x64xf32>
    %582 = vector.shape_cast %581 : vector<1x6x64xf32> to vector<6x64xf32>
    %cst_318 = arith.constant dense<0.000000e+00> : vector<8x64xf32>
    %583 = tpu.matmul %580, %582, %cst_318 {dimension_numbers = #tpu.dot_dimension_numbers<[1], [0], [0], [1], [0, 0, 1, 1], [], []>} : vector<8x6xf32>, vector<6x64xf32>, vector<8x64xf32> -> vector<8x64xf32>
    %584 = arith.addf %578, %583 : vector<8x64xf32>
    %c14_319 = arith.constant 14 : index
    %c0_320 = arith.constant 0 : index
    %c0_321 = arith.constant 0 : index
    %585 = vector.load %arg9[%c14_319, %c0_320, %c0_321] : memref<36x8x6xf32, #tpu.memory_space<vmem>>, vector<1x8x6xf32>
    %586 = vector.shape_cast %585 : vector<1x8x6xf32> to vector<8x6xf32>
    %c10_322 = arith.constant 10 : index
    %c0_323 = arith.constant 0 : index
    %c0_324 = arith.constant 0 : index
    %587 = vector.load %arg3[%c10_322, %c0_323, %c0_324] : memref<16x6x64xf32, #tpu.memory_space<vmem>>, vector<1x6x64xf32>
    %588 = vector.shape_cast %587 : vector<1x6x64xf32> to vector<6x64xf32>
    %cst_325 = arith.constant dense<0.000000e+00> : vector<8x64xf32>
    %589 = tpu.matmul %586, %588, %cst_325 {dimension_numbers = #tpu.dot_dimension_numbers<[1], [0], [0], [1], [0, 0, 1, 1], [], []>} : vector<8x6xf32>, vector<6x64xf32>, vector<8x64xf32> -> vector<8x64xf32>
    %590 = arith.addf %584, %589 : vector<8x64xf32>
    %c15_326 = arith.constant 15 : index
    %c0_327 = arith.constant 0 : index
    %c0_328 = arith.constant 0 : index
    %591 = vector.load %arg9[%c15_326, %c0_327, %c0_328] : memref<36x8x6xf32, #tpu.memory_space<vmem>>, vector<1x8x6xf32>
    %592 = vector.shape_cast %591 : vector<1x8x6xf32> to vector<8x6xf32>
    %c11_329 = arith.constant 11 : index
    %c0_330 = arith.constant 0 : index
    %c0_331 = arith.constant 0 : index
    %593 = vector.load %arg3[%c11_329, %c0_330, %c0_331] : memref<16x6x64xf32, #tpu.memory_space<vmem>>, vector<1x6x64xf32>
    %594 = vector.shape_cast %593 : vector<1x6x64xf32> to vector<6x64xf32>
    %cst_332 = arith.constant dense<0.000000e+00> : vector<8x64xf32>
    %595 = tpu.matmul %592, %594, %cst_332 {dimension_numbers = #tpu.dot_dimension_numbers<[1], [0], [0], [1], [0, 0, 1, 1], [], []>} : vector<8x6xf32>, vector<6x64xf32>, vector<8x64xf32> -> vector<8x64xf32>
    %596 = arith.addf %590, %595 : vector<8x64xf32>
    %c18_333 = arith.constant 18 : index
    %c0_334 = arith.constant 0 : index
    %c0_335 = arith.constant 0 : index
    %597 = vector.load %arg9[%c18_333, %c0_334, %c0_335] : memref<36x8x6xf32, #tpu.memory_space<vmem>>, vector<1x8x6xf32>
    %598 = vector.shape_cast %597 : vector<1x8x6xf32> to vector<8x6xf32>
    %c12_336 = arith.constant 12 : index
    %c0_337 = arith.constant 0 : index
    %c0_338 = arith.constant 0 : index
    %599 = vector.load %arg3[%c12_336, %c0_337, %c0_338] : memref<16x6x64xf32, #tpu.memory_space<vmem>>, vector<1x6x64xf32>
    %600 = vector.shape_cast %599 : vector<1x6x64xf32> to vector<6x64xf32>
    %cst_339 = arith.constant dense<0.000000e+00> : vector<8x64xf32>
    %601 = tpu.matmul %598, %600, %cst_339 {dimension_numbers = #tpu.dot_dimension_numbers<[1], [0], [0], [1], [0, 0, 1, 1], [], []>} : vector<8x6xf32>, vector<6x64xf32>, vector<8x64xf32> -> vector<8x64xf32>
    %602 = arith.addf %596, %601 : vector<8x64xf32>
    %c19_340 = arith.constant 19 : index
    %c0_341 = arith.constant 0 : index
    %c0_342 = arith.constant 0 : index
    %603 = vector.load %arg9[%c19_340, %c0_341, %c0_342] : memref<36x8x6xf32, #tpu.memory_space<vmem>>, vector<1x8x6xf32>
    %604 = vector.shape_cast %603 : vector<1x8x6xf32> to vector<8x6xf32>
    %c13_343 = arith.constant 13 : index
    %c0_344 = arith.constant 0 : index
    %c0_345 = arith.constant 0 : index
    %605 = vector.load %arg3[%c13_343, %c0_344, %c0_345] : memref<16x6x64xf32, #tpu.memory_space<vmem>>, vector<1x6x64xf32>
    %606 = vector.shape_cast %605 : vector<1x6x64xf32> to vector<6x64xf32>
    %cst_346 = arith.constant dense<0.000000e+00> : vector<8x64xf32>
    %607 = tpu.matmul %604, %606, %cst_346 {dimension_numbers = #tpu.dot_dimension_numbers<[1], [0], [0], [1], [0, 0, 1, 1], [], []>} : vector<8x6xf32>, vector<6x64xf32>, vector<8x64xf32> -> vector<8x64xf32>
    %608 = arith.addf %602, %607 : vector<8x64xf32>
    %c20_347 = arith.constant 20 : index
    %c0_348 = arith.constant 0 : index
    %c0_349 = arith.constant 0 : index
    %609 = vector.load %arg9[%c20_347, %c0_348, %c0_349] : memref<36x8x6xf32, #tpu.memory_space<vmem>>, vector<1x8x6xf32>
    %610 = vector.shape_cast %609 : vector<1x8x6xf32> to vector<8x6xf32>
    %c14_350 = arith.constant 14 : index
    %c0_351 = arith.constant 0 : index
    %c0_352 = arith.constant 0 : index
    %611 = vector.load %arg3[%c14_350, %c0_351, %c0_352] : memref<16x6x64xf32, #tpu.memory_space<vmem>>, vector<1x6x64xf32>
    %612 = vector.shape_cast %611 : vector<1x6x64xf32> to vector<6x64xf32>
    %cst_353 = arith.constant dense<0.000000e+00> : vector<8x64xf32>
    %613 = tpu.matmul %610, %612, %cst_353 {dimension_numbers = #tpu.dot_dimension_numbers<[1], [0], [0], [1], [0, 0, 1, 1], [], []>} : vector<8x6xf32>, vector<6x64xf32>, vector<8x64xf32> -> vector<8x64xf32>
    %614 = arith.addf %608, %613 : vector<8x64xf32>
    %c21_354 = arith.constant 21 : index
    %c0_355 = arith.constant 0 : index
    %c0_356 = arith.constant 0 : index
    %615 = vector.load %arg9[%c21_354, %c0_355, %c0_356] : memref<36x8x6xf32, #tpu.memory_space<vmem>>, vector<1x8x6xf32>
    %616 = vector.shape_cast %615 : vector<1x8x6xf32> to vector<8x6xf32>
    %c15_357 = arith.constant 15 : index
    %c0_358 = arith.constant 0 : index
    %c0_359 = arith.constant 0 : index
    %617 = vector.load %arg3[%c15_357, %c0_358, %c0_359] : memref<16x6x64xf32, #tpu.memory_space<vmem>>, vector<1x6x64xf32>
    %618 = vector.shape_cast %617 : vector<1x6x64xf32> to vector<6x64xf32>
    %cst_360 = arith.constant dense<0.000000e+00> : vector<8x64xf32>
    %619 = tpu.matmul %616, %618, %cst_360 {dimension_numbers = #tpu.dot_dimension_numbers<[1], [0], [0], [1], [0, 0, 1, 1], [], []>} : vector<8x6xf32>, vector<6x64xf32>, vector<8x64xf32> -> vector<8x64xf32>
    %620 = arith.addf %614, %619 : vector<8x64xf32>
    %cst_361 = arith.constant 0.000000e+00 : f32
    %621 = vector.broadcast %cst_361 : f32 to vector<8x64xf32>
    %622 = arith.maximumf %620, %621 : vector<8x64xf32>
    %623 = vector.extract_strided_slice %622 {offsets = [0, 0], sizes = [8, 16], strides = [1, 1]} : vector<8x64xf32> to vector<8x16xf32>
    %624 = vector.extract_strided_slice %622 {offsets = [0, 16], sizes = [8, 16], strides = [1, 1]} : vector<8x64xf32> to vector<8x16xf32>
    %625 = arith.maximumf %623, %624 : vector<8x16xf32>
    %626 = vector.extract_strided_slice %622 {offsets = [0, 32], sizes = [8, 16], strides = [1, 1]} : vector<8x64xf32> to vector<8x16xf32>
    %627 = vector.extract_strided_slice %622 {offsets = [0, 48], sizes = [8, 16], strides = [1, 1]} : vector<8x64xf32> to vector<8x16xf32>
    %628 = arith.maximumf %626, %627 : vector<8x16xf32>
    %629 = arith.maximumf %625, %628 : vector<8x16xf32>
    %c2_362 = arith.constant 2 : index
    %c0_363 = arith.constant 0 : index
    %c0_364 = arith.constant 0 : index
    %630 = vector.load %arg9[%c2_362, %c0_363, %c0_364] : memref<36x8x6xf32, #tpu.memory_space<vmem>>, vector<1x8x6xf32>
    %631 = vector.shape_cast %630 : vector<1x8x6xf32> to vector<8x6xf32>
    %c0_365 = arith.constant 0 : index
    %c0_366 = arith.constant 0 : index
    %c0_367 = arith.constant 0 : index
    %632 = vector.load %arg3[%c0_365, %c0_366, %c0_367] : memref<16x6x64xf32, #tpu.memory_space<vmem>>, vector<1x6x64xf32>
    %633 = vector.shape_cast %632 : vector<1x6x64xf32> to vector<6x64xf32>
    %cst_368 = arith.constant dense<0.000000e+00> : vector<8x64xf32>
    %634 = tpu.matmul %631, %633, %cst_368 {dimension_numbers = #tpu.dot_dimension_numbers<[1], [0], [0], [1], [0, 0, 1, 1], [], []>} : vector<8x6xf32>, vector<6x64xf32>, vector<8x64xf32> -> vector<8x64xf32>
    %635 = vector.broadcast %1 : vector<1x64xf32> to vector<8x64xf32>
    %636 = arith.addf %635, %634 : vector<8x64xf32>
    %c3_369 = arith.constant 3 : index
    %c0_370 = arith.constant 0 : index
    %c0_371 = arith.constant 0 : index
    %637 = vector.load %arg9[%c3_369, %c0_370, %c0_371] : memref<36x8x6xf32, #tpu.memory_space<vmem>>, vector<1x8x6xf32>
    %638 = vector.shape_cast %637 : vector<1x8x6xf32> to vector<8x6xf32>
    %c1_372 = arith.constant 1 : index
    %c0_373 = arith.constant 0 : index
    %c0_374 = arith.constant 0 : index
    %639 = vector.load %arg3[%c1_372, %c0_373, %c0_374] : memref<16x6x64xf32, #tpu.memory_space<vmem>>, vector<1x6x64xf32>
    %640 = vector.shape_cast %639 : vector<1x6x64xf32> to vector<6x64xf32>
    %cst_375 = arith.constant dense<0.000000e+00> : vector<8x64xf32>
    %641 = tpu.matmul %638, %640, %cst_375 {dimension_numbers = #tpu.dot_dimension_numbers<[1], [0], [0], [1], [0, 0, 1, 1], [], []>} : vector<8x6xf32>, vector<6x64xf32>, vector<8x64xf32> -> vector<8x64xf32>
    %642 = arith.addf %636, %641 : vector<8x64xf32>
    %c4_376 = arith.constant 4 : index
    %c0_377 = arith.constant 0 : index
    %c0_378 = arith.constant 0 : index
    %643 = vector.load %arg9[%c4_376, %c0_377, %c0_378] : memref<36x8x6xf32, #tpu.memory_space<vmem>>, vector<1x8x6xf32>
    %644 = vector.shape_cast %643 : vector<1x8x6xf32> to vector<8x6xf32>
    %c2_379 = arith.constant 2 : index
    %c0_380 = arith.constant 0 : index
    %c0_381 = arith.constant 0 : index
    %645 = vector.load %arg3[%c2_379, %c0_380, %c0_381] : memref<16x6x64xf32, #tpu.memory_space<vmem>>, vector<1x6x64xf32>
    %646 = vector.shape_cast %645 : vector<1x6x64xf32> to vector<6x64xf32>
    %cst_382 = arith.constant dense<0.000000e+00> : vector<8x64xf32>
    %647 = tpu.matmul %644, %646, %cst_382 {dimension_numbers = #tpu.dot_dimension_numbers<[1], [0], [0], [1], [0, 0, 1, 1], [], []>} : vector<8x6xf32>, vector<6x64xf32>, vector<8x64xf32> -> vector<8x64xf32>
    %648 = arith.addf %642, %647 : vector<8x64xf32>
    %c5_383 = arith.constant 5 : index
    %c0_384 = arith.constant 0 : index
    %c0_385 = arith.constant 0 : index
    %649 = vector.load %arg9[%c5_383, %c0_384, %c0_385] : memref<36x8x6xf32, #tpu.memory_space<vmem>>, vector<1x8x6xf32>
    %650 = vector.shape_cast %649 : vector<1x8x6xf32> to vector<8x6xf32>
    %c3_386 = arith.constant 3 : index
    %c0_387 = arith.constant 0 : index
    %c0_388 = arith.constant 0 : index
    %651 = vector.load %arg3[%c3_386, %c0_387, %c0_388] : memref<16x6x64xf32, #tpu.memory_space<vmem>>, vector<1x6x64xf32>
    %652 = vector.shape_cast %651 : vector<1x6x64xf32> to vector<6x64xf32>
    %cst_389 = arith.constant dense<0.000000e+00> : vector<8x64xf32>
    %653 = tpu.matmul %650, %652, %cst_389 {dimension_numbers = #tpu.dot_dimension_numbers<[1], [0], [0], [1], [0, 0, 1, 1], [], []>} : vector<8x6xf32>, vector<6x64xf32>, vector<8x64xf32> -> vector<8x64xf32>
    %654 = arith.addf %648, %653 : vector<8x64xf32>
    %c8_390 = arith.constant 8 : index
    %c0_391 = arith.constant 0 : index
    %c0_392 = arith.constant 0 : index
    %655 = vector.load %arg9[%c8_390, %c0_391, %c0_392] : memref<36x8x6xf32, #tpu.memory_space<vmem>>, vector<1x8x6xf32>
    %656 = vector.shape_cast %655 : vector<1x8x6xf32> to vector<8x6xf32>
    %c4_393 = arith.constant 4 : index
    %c0_394 = arith.constant 0 : index
    %c0_395 = arith.constant 0 : index
    %657 = vector.load %arg3[%c4_393, %c0_394, %c0_395] : memref<16x6x64xf32, #tpu.memory_space<vmem>>, vector<1x6x64xf32>
    %658 = vector.shape_cast %657 : vector<1x6x64xf32> to vector<6x64xf32>
    %cst_396 = arith.constant dense<0.000000e+00> : vector<8x64xf32>
    %659 = tpu.matmul %656, %658, %cst_396 {dimension_numbers = #tpu.dot_dimension_numbers<[1], [0], [0], [1], [0, 0, 1, 1], [], []>} : vector<8x6xf32>, vector<6x64xf32>, vector<8x64xf32> -> vector<8x64xf32>
    %660 = arith.addf %654, %659 : vector<8x64xf32>
    %c9_397 = arith.constant 9 : index
    %c0_398 = arith.constant 0 : index
    %c0_399 = arith.constant 0 : index
    %661 = vector.load %arg9[%c9_397, %c0_398, %c0_399] : memref<36x8x6xf32, #tpu.memory_space<vmem>>, vector<1x8x6xf32>
    %662 = vector.shape_cast %661 : vector<1x8x6xf32> to vector<8x6xf32>
    %c5_400 = arith.constant 5 : index
    %c0_401 = arith.constant 0 : index
    %c0_402 = arith.constant 0 : index
    %663 = vector.load %arg3[%c5_400, %c0_401, %c0_402] : memref<16x6x64xf32, #tpu.memory_space<vmem>>, vector<1x6x64xf32>
    %664 = vector.shape_cast %663 : vector<1x6x64xf32> to vector<6x64xf32>
    %cst_403 = arith.constant dense<0.000000e+00> : vector<8x64xf32>
    %665 = tpu.matmul %662, %664, %cst_403 {dimension_numbers = #tpu.dot_dimension_numbers<[1], [0], [0], [1], [0, 0, 1, 1], [], []>} : vector<8x6xf32>, vector<6x64xf32>, vector<8x64xf32> -> vector<8x64xf32>
    %666 = arith.addf %660, %665 : vector<8x64xf32>
    %c10_404 = arith.constant 10 : index
    %c0_405 = arith.constant 0 : index
    %c0_406 = arith.constant 0 : index
    %667 = vector.load %arg9[%c10_404, %c0_405, %c0_406] : memref<36x8x6xf32, #tpu.memory_space<vmem>>, vector<1x8x6xf32>
    %668 = vector.shape_cast %667 : vector<1x8x6xf32> to vector<8x6xf32>
    %c6_407 = arith.constant 6 : index
    %c0_408 = arith.constant 0 : index
    %c0_409 = arith.constant 0 : index
    %669 = vector.load %arg3[%c6_407, %c0_408, %c0_409] : memref<16x6x64xf32, #tpu.memory_space<vmem>>, vector<1x6x64xf32>
    %670 = vector.shape_cast %669 : vector<1x6x64xf32> to vector<6x64xf32>
    %cst_410 = arith.constant dense<0.000000e+00> : vector<8x64xf32>
    %671 = tpu.matmul %668, %670, %cst_410 {dimension_numbers = #tpu.dot_dimension_numbers<[1], [0], [0], [1], [0, 0, 1, 1], [], []>} : vector<8x6xf32>, vector<6x64xf32>, vector<8x64xf32> -> vector<8x64xf32>
    %672 = arith.addf %666, %671 : vector<8x64xf32>
    %c11_411 = arith.constant 11 : index
    %c0_412 = arith.constant 0 : index
    %c0_413 = arith.constant 0 : index
    %673 = vector.load %arg9[%c11_411, %c0_412, %c0_413] : memref<36x8x6xf32, #tpu.memory_space<vmem>>, vector<1x8x6xf32>
    %674 = vector.shape_cast %673 : vector<1x8x6xf32> to vector<8x6xf32>
    %c7_414 = arith.constant 7 : index
    %c0_415 = arith.constant 0 : index
    %c0_416 = arith.constant 0 : index
    %675 = vector.load %arg3[%c7_414, %c0_415, %c0_416] : memref<16x6x64xf32, #tpu.memory_space<vmem>>, vector<1x6x64xf32>
    %676 = vector.shape_cast %675 : vector<1x6x64xf32> to vector<6x64xf32>
    %cst_417 = arith.constant dense<0.000000e+00> : vector<8x64xf32>
    %677 = tpu.matmul %674, %676, %cst_417 {dimension_numbers = #tpu.dot_dimension_numbers<[1], [0], [0], [1], [0, 0, 1, 1], [], []>} : vector<8x6xf32>, vector<6x64xf32>, vector<8x64xf32> -> vector<8x64xf32>
    %678 = arith.addf %672, %677 : vector<8x64xf32>
    %c14_418 = arith.constant 14 : index
    %c0_419 = arith.constant 0 : index
    %c0_420 = arith.constant 0 : index
    %679 = vector.load %arg9[%c14_418, %c0_419, %c0_420] : memref<36x8x6xf32, #tpu.memory_space<vmem>>, vector<1x8x6xf32>
    %680 = vector.shape_cast %679 : vector<1x8x6xf32> to vector<8x6xf32>
    %c8_421 = arith.constant 8 : index
    %c0_422 = arith.constant 0 : index
    %c0_423 = arith.constant 0 : index
    %681 = vector.load %arg3[%c8_421, %c0_422, %c0_423] : memref<16x6x64xf32, #tpu.memory_space<vmem>>, vector<1x6x64xf32>
    %682 = vector.shape_cast %681 : vector<1x6x64xf32> to vector<6x64xf32>
    %cst_424 = arith.constant dense<0.000000e+00> : vector<8x64xf32>
    %683 = tpu.matmul %680, %682, %cst_424 {dimension_numbers = #tpu.dot_dimension_numbers<[1], [0], [0], [1], [0, 0, 1, 1], [], []>} : vector<8x6xf32>, vector<6x64xf32>, vector<8x64xf32> -> vector<8x64xf32>
    %684 = arith.addf %678, %683 : vector<8x64xf32>
    %c15_425 = arith.constant 15 : index
    %c0_426 = arith.constant 0 : index
    %c0_427 = arith.constant 0 : index
    %685 = vector.load %arg9[%c15_425, %c0_426, %c0_427] : memref<36x8x6xf32, #tpu.memory_space<vmem>>, vector<1x8x6xf32>
    %686 = vector.shape_cast %685 : vector<1x8x6xf32> to vector<8x6xf32>
    %c9_428 = arith.constant 9 : index
    %c0_429 = arith.constant 0 : index
    %c0_430 = arith.constant 0 : index
    %687 = vector.load %arg3[%c9_428, %c0_429, %c0_430] : memref<16x6x64xf32, #tpu.memory_space<vmem>>, vector<1x6x64xf32>
    %688 = vector.shape_cast %687 : vector<1x6x64xf32> to vector<6x64xf32>
    %cst_431 = arith.constant dense<0.000000e+00> : vector<8x64xf32>
    %689 = tpu.matmul %686, %688, %cst_431 {dimension_numbers = #tpu.dot_dimension_numbers<[1], [0], [0], [1], [0, 0, 1, 1], [], []>} : vector<8x6xf32>, vector<6x64xf32>, vector<8x64xf32> -> vector<8x64xf32>
    %690 = arith.addf %684, %689 : vector<8x64xf32>
    %c16_432 = arith.constant 16 : index
    %c0_433 = arith.constant 0 : index
    %c0_434 = arith.constant 0 : index
    %691 = vector.load %arg9[%c16_432, %c0_433, %c0_434] : memref<36x8x6xf32, #tpu.memory_space<vmem>>, vector<1x8x6xf32>
    %692 = vector.shape_cast %691 : vector<1x8x6xf32> to vector<8x6xf32>
    %c10_435 = arith.constant 10 : index
    %c0_436 = arith.constant 0 : index
    %c0_437 = arith.constant 0 : index
    %693 = vector.load %arg3[%c10_435, %c0_436, %c0_437] : memref<16x6x64xf32, #tpu.memory_space<vmem>>, vector<1x6x64xf32>
    %694 = vector.shape_cast %693 : vector<1x6x64xf32> to vector<6x64xf32>
    %cst_438 = arith.constant dense<0.000000e+00> : vector<8x64xf32>
    %695 = tpu.matmul %692, %694, %cst_438 {dimension_numbers = #tpu.dot_dimension_numbers<[1], [0], [0], [1], [0, 0, 1, 1], [], []>} : vector<8x6xf32>, vector<6x64xf32>, vector<8x64xf32> -> vector<8x64xf32>
    %696 = arith.addf %690, %695 : vector<8x64xf32>
    %c17_439 = arith.constant 17 : index
    %c0_440 = arith.constant 0 : index
    %c0_441 = arith.constant 0 : index
    %697 = vector.load %arg9[%c17_439, %c0_440, %c0_441] : memref<36x8x6xf32, #tpu.memory_space<vmem>>, vector<1x8x6xf32>
    %698 = vector.shape_cast %697 : vector<1x8x6xf32> to vector<8x6xf32>
    %c11_442 = arith.constant 11 : index
    %c0_443 = arith.constant 0 : index
    %c0_444 = arith.constant 0 : index
    %699 = vector.load %arg3[%c11_442, %c0_443, %c0_444] : memref<16x6x64xf32, #tpu.memory_space<vmem>>, vector<1x6x64xf32>
    %700 = vector.shape_cast %699 : vector<1x6x64xf32> to vector<6x64xf32>
    %cst_445 = arith.constant dense<0.000000e+00> : vector<8x64xf32>
    %701 = tpu.matmul %698, %700, %cst_445 {dimension_numbers = #tpu.dot_dimension_numbers<[1], [0], [0], [1], [0, 0, 1, 1], [], []>} : vector<8x6xf32>, vector<6x64xf32>, vector<8x64xf32> -> vector<8x64xf32>
    %702 = arith.addf %696, %701 : vector<8x64xf32>
    %c20_446 = arith.constant 20 : index
    %c0_447 = arith.constant 0 : index
    %c0_448 = arith.constant 0 : index
    %703 = vector.load %arg9[%c20_446, %c0_447, %c0_448] : memref<36x8x6xf32, #tpu.memory_space<vmem>>, vector<1x8x6xf32>
    %704 = vector.shape_cast %703 : vector<1x8x6xf32> to vector<8x6xf32>
    %c12_449 = arith.constant 12 : index
    %c0_450 = arith.constant 0 : index
    %c0_451 = arith.constant 0 : index
    %705 = vector.load %arg3[%c12_449, %c0_450, %c0_451] : memref<16x6x64xf32, #tpu.memory_space<vmem>>, vector<1x6x64xf32>
    %706 = vector.shape_cast %705 : vector<1x6x64xf32> to vector<6x64xf32>
    %cst_452 = arith.constant dense<0.000000e+00> : vector<8x64xf32>
    %707 = tpu.matmul %704, %706, %cst_452 {dimension_numbers = #tpu.dot_dimension_numbers<[1], [0], [0], [1], [0, 0, 1, 1], [], []>} : vector<8x6xf32>, vector<6x64xf32>, vector<8x64xf32> -> vector<8x64xf32>
    %708 = arith.addf %702, %707 : vector<8x64xf32>
    %c21_453 = arith.constant 21 : index
    %c0_454 = arith.constant 0 : index
    %c0_455 = arith.constant 0 : index
    %709 = vector.load %arg9[%c21_453, %c0_454, %c0_455] : memref<36x8x6xf32, #tpu.memory_space<vmem>>, vector<1x8x6xf32>
    %710 = vector.shape_cast %709 : vector<1x8x6xf32> to vector<8x6xf32>
    %c13_456 = arith.constant 13 : index
    %c0_457 = arith.constant 0 : index
    %c0_458 = arith.constant 0 : index
    %711 = vector.load %arg3[%c13_456, %c0_457, %c0_458] : memref<16x6x64xf32, #tpu.memory_space<vmem>>, vector<1x6x64xf32>
    %712 = vector.shape_cast %711 : vector<1x6x64xf32> to vector<6x64xf32>
    %cst_459 = arith.constant dense<0.000000e+00> : vector<8x64xf32>
    %713 = tpu.matmul %710, %712, %cst_459 {dimension_numbers = #tpu.dot_dimension_numbers<[1], [0], [0], [1], [0, 0, 1, 1], [], []>} : vector<8x6xf32>, vector<6x64xf32>, vector<8x64xf32> -> vector<8x64xf32>
    %714 = arith.addf %708, %713 : vector<8x64xf32>
    %c22_460 = arith.constant 22 : index
    %c0_461 = arith.constant 0 : index
    %c0_462 = arith.constant 0 : index
    %715 = vector.load %arg9[%c22_460, %c0_461, %c0_462] : memref<36x8x6xf32, #tpu.memory_space<vmem>>, vector<1x8x6xf32>
    %716 = vector.shape_cast %715 : vector<1x8x6xf32> to vector<8x6xf32>
    %c14_463 = arith.constant 14 : index
    %c0_464 = arith.constant 0 : index
    %c0_465 = arith.constant 0 : index
    %717 = vector.load %arg3[%c14_463, %c0_464, %c0_465] : memref<16x6x64xf32, #tpu.memory_space<vmem>>, vector<1x6x64xf32>
    %718 = vector.shape_cast %717 : vector<1x6x64xf32> to vector<6x64xf32>
    %cst_466 = arith.constant dense<0.000000e+00> : vector<8x64xf32>
    %719 = tpu.matmul %716, %718, %cst_466 {dimension_numbers = #tpu.dot_dimension_numbers<[1], [0], [0], [1], [0, 0, 1, 1], [], []>} : vector<8x6xf32>, vector<6x64xf32>, vector<8x64xf32> -> vector<8x64xf32>
    %720 = arith.addf %714, %719 : vector<8x64xf32>
    %c23_467 = arith.constant 23 : index
    %c0_468 = arith.constant 0 : index
    %c0_469 = arith.constant 0 : index
    %721 = vector.load %arg9[%c23_467, %c0_468, %c0_469] : memref<36x8x6xf32, #tpu.memory_space<vmem>>, vector<1x8x6xf32>
    %722 = vector.shape_cast %721 : vector<1x8x6xf32> to vector<8x6xf32>
    %c15_470 = arith.constant 15 : index
    %c0_471 = arith.constant 0 : index
    %c0_472 = arith.constant 0 : index
    %723 = vector.load %arg3[%c15_470, %c0_471, %c0_472] : memref<16x6x64xf32, #tpu.memory_space<vmem>>, vector<1x6x64xf32>
    %724 = vector.shape_cast %723 : vector<1x6x64xf32> to vector<6x64xf32>
    %cst_473 = arith.constant dense<0.000000e+00> : vector<8x64xf32>
    %725 = tpu.matmul %722, %724, %cst_473 {dimension_numbers = #tpu.dot_dimension_numbers<[1], [0], [0], [1], [0, 0, 1, 1], [], []>} : vector<8x6xf32>, vector<6x64xf32>, vector<8x64xf32> -> vector<8x64xf32>
    %726 = arith.addf %720, %725 : vector<8x64xf32>
    %cst_474 = arith.constant 0.000000e+00 : f32
    %727 = vector.broadcast %cst_474 : f32 to vector<8x64xf32>
    %728 = arith.maximumf %726, %727 : vector<8x64xf32>
    %729 = vector.extract_strided_slice %728 {offsets = [0, 0], sizes = [8, 16], strides = [1, 1]} : vector<8x64xf32> to vector<8x16xf32>
    %730 = vector.extract_strided_slice %728 {offsets = [0, 16], sizes = [8, 16], strides = [1, 1]} : vector<8x64xf32> to vector<8x16xf32>
    %731 = arith.maximumf %729, %730 : vector<8x16xf32>
    %732 = vector.extract_strided_slice %728 {offsets = [0, 32], sizes = [8, 16], strides = [1, 1]} : vector<8x64xf32> to vector<8x16xf32>
    %733 = vector.extract_strided_slice %728 {offsets = [0, 48], sizes = [8, 16], strides = [1, 1]} : vector<8x64xf32> to vector<8x16xf32>
    %734 = arith.maximumf %732, %733 : vector<8x16xf32>
    %735 = arith.maximumf %731, %734 : vector<8x16xf32>
    %c12_475 = arith.constant 12 : index
    %c0_476 = arith.constant 0 : index
    %c0_477 = arith.constant 0 : index
    %736 = vector.load %arg9[%c12_475, %c0_476, %c0_477] : memref<36x8x6xf32, #tpu.memory_space<vmem>>, vector<1x8x6xf32>
    %737 = vector.shape_cast %736 : vector<1x8x6xf32> to vector<8x6xf32>
    %c0_478 = arith.constant 0 : index
    %c0_479 = arith.constant 0 : index
    %c0_480 = arith.constant 0 : index
    %738 = vector.load %arg3[%c0_478, %c0_479, %c0_480] : memref<16x6x64xf32, #tpu.memory_space<vmem>>, vector<1x6x64xf32>
    %739 = vector.shape_cast %738 : vector<1x6x64xf32> to vector<6x64xf32>
    %cst_481 = arith.constant dense<0.000000e+00> : vector<8x64xf32>
    %740 = tpu.matmul %737, %739, %cst_481 {dimension_numbers = #tpu.dot_dimension_numbers<[1], [0], [0], [1], [0, 0, 1, 1], [], []>} : vector<8x6xf32>, vector<6x64xf32>, vector<8x64xf32> -> vector<8x64xf32>
    %741 = vector.broadcast %1 : vector<1x64xf32> to vector<8x64xf32>
    %742 = arith.addf %741, %740 : vector<8x64xf32>
    %c13_482 = arith.constant 13 : index
    %c0_483 = arith.constant 0 : index
    %c0_484 = arith.constant 0 : index
    %743 = vector.load %arg9[%c13_482, %c0_483, %c0_484] : memref<36x8x6xf32, #tpu.memory_space<vmem>>, vector<1x8x6xf32>
    %744 = vector.shape_cast %743 : vector<1x8x6xf32> to vector<8x6xf32>
    %c1_485 = arith.constant 1 : index
    %c0_486 = arith.constant 0 : index
    %c0_487 = arith.constant 0 : index
    %745 = vector.load %arg3[%c1_485, %c0_486, %c0_487] : memref<16x6x64xf32, #tpu.memory_space<vmem>>, vector<1x6x64xf32>
    %746 = vector.shape_cast %745 : vector<1x6x64xf32> to vector<6x64xf32>
    %cst_488 = arith.constant dense<0.000000e+00> : vector<8x64xf32>
    %747 = tpu.matmul %744, %746, %cst_488 {dimension_numbers = #tpu.dot_dimension_numbers<[1], [0], [0], [1], [0, 0, 1, 1], [], []>} : vector<8x6xf32>, vector<6x64xf32>, vector<8x64xf32> -> vector<8x64xf32>
    %748 = arith.addf %742, %747 : vector<8x64xf32>
    %c14_489 = arith.constant 14 : index
    %c0_490 = arith.constant 0 : index
    %c0_491 = arith.constant 0 : index
    %749 = vector.load %arg9[%c14_489, %c0_490, %c0_491] : memref<36x8x6xf32, #tpu.memory_space<vmem>>, vector<1x8x6xf32>
    %750 = vector.shape_cast %749 : vector<1x8x6xf32> to vector<8x6xf32>
    %c2_492 = arith.constant 2 : index
    %c0_493 = arith.constant 0 : index
    %c0_494 = arith.constant 0 : index
    %751 = vector.load %arg3[%c2_492, %c0_493, %c0_494] : memref<16x6x64xf32, #tpu.memory_space<vmem>>, vector<1x6x64xf32>
    %752 = vector.shape_cast %751 : vector<1x6x64xf32> to vector<6x64xf32>
    %cst_495 = arith.constant dense<0.000000e+00> : vector<8x64xf32>
    %753 = tpu.matmul %750, %752, %cst_495 {dimension_numbers = #tpu.dot_dimension_numbers<[1], [0], [0], [1], [0, 0, 1, 1], [], []>} : vector<8x6xf32>, vector<6x64xf32>, vector<8x64xf32> -> vector<8x64xf32>
    %754 = arith.addf %748, %753 : vector<8x64xf32>
    %c15_496 = arith.constant 15 : index
    %c0_497 = arith.constant 0 : index
    %c0_498 = arith.constant 0 : index
    %755 = vector.load %arg9[%c15_496, %c0_497, %c0_498] : memref<36x8x6xf32, #tpu.memory_space<vmem>>, vector<1x8x6xf32>
    %756 = vector.shape_cast %755 : vector<1x8x6xf32> to vector<8x6xf32>
    %c3_499 = arith.constant 3 : index
    %c0_500 = arith.constant 0 : index
    %c0_501 = arith.constant 0 : index
    %757 = vector.load %arg3[%c3_499, %c0_500, %c0_501] : memref<16x6x64xf32, #tpu.memory_space<vmem>>, vector<1x6x64xf32>
    %758 = vector.shape_cast %757 : vector<1x6x64xf32> to vector<6x64xf32>
    %cst_502 = arith.constant dense<0.000000e+00> : vector<8x64xf32>
    %759 = tpu.matmul %756, %758, %cst_502 {dimension_numbers = #tpu.dot_dimension_numbers<[1], [0], [0], [1], [0, 0, 1, 1], [], []>} : vector<8x6xf32>, vector<6x64xf32>, vector<8x64xf32> -> vector<8x64xf32>
    %760 = arith.addf %754, %759 : vector<8x64xf32>
    %c18_503 = arith.constant 18 : index
    %c0_504 = arith.constant 0 : index
    %c0_505 = arith.constant 0 : index
    %761 = vector.load %arg9[%c18_503, %c0_504, %c0_505] : memref<36x8x6xf32, #tpu.memory_space<vmem>>, vector<1x8x6xf32>
    %762 = vector.shape_cast %761 : vector<1x8x6xf32> to vector<8x6xf32>
    %c4_506 = arith.constant 4 : index
    %c0_507 = arith.constant 0 : index
    %c0_508 = arith.constant 0 : index
    %763 = vector.load %arg3[%c4_506, %c0_507, %c0_508] : memref<16x6x64xf32, #tpu.memory_space<vmem>>, vector<1x6x64xf32>
    %764 = vector.shape_cast %763 : vector<1x6x64xf32> to vector<6x64xf32>
    %cst_509 = arith.constant dense<0.000000e+00> : vector<8x64xf32>
    %765 = tpu.matmul %762, %764, %cst_509 {dimension_numbers = #tpu.dot_dimension_numbers<[1], [0], [0], [1], [0, 0, 1, 1], [], []>} : vector<8x6xf32>, vector<6x64xf32>, vector<8x64xf32> -> vector<8x64xf32>
    %766 = arith.addf %760, %765 : vector<8x64xf32>
    %c19_510 = arith.constant 19 : index
    %c0_511 = arith.constant 0 : index
    %c0_512 = arith.constant 0 : index
    %767 = vector.load %arg9[%c19_510, %c0_511, %c0_512] : memref<36x8x6xf32, #tpu.memory_space<vmem>>, vector<1x8x6xf32>
    %768 = vector.shape_cast %767 : vector<1x8x6xf32> to vector<8x6xf32>
    %c5_513 = arith.constant 5 : index
    %c0_514 = arith.constant 0 : index
    %c0_515 = arith.constant 0 : index
    %769 = vector.load %arg3[%c5_513, %c0_514, %c0_515] : memref<16x6x64xf32, #tpu.memory_space<vmem>>, vector<1x6x64xf32>
    %770 = vector.shape_cast %769 : vector<1x6x64xf32> to vector<6x64xf32>
    %cst_516 = arith.constant dense<0.000000e+00> : vector<8x64xf32>
    %771 = tpu.matmul %768, %770, %cst_516 {dimension_numbers = #tpu.dot_dimension_numbers<[1], [0], [0], [1], [0, 0, 1, 1], [], []>} : vector<8x6xf32>, vector<6x64xf32>, vector<8x64xf32> -> vector<8x64xf32>
    %772 = arith.addf %766, %771 : vector<8x64xf32>
    %c20_517 = arith.constant 20 : index
    %c0_518 = arith.constant 0 : index
    %c0_519 = arith.constant 0 : index
    %773 = vector.load %arg9[%c20_517, %c0_518, %c0_519] : memref<36x8x6xf32, #tpu.memory_space<vmem>>, vector<1x8x6xf32>
    %774 = vector.shape_cast %773 : vector<1x8x6xf32> to vector<8x6xf32>
    %c6_520 = arith.constant 6 : index
    %c0_521 = arith.constant 0 : index
    %c0_522 = arith.constant 0 : index
    %775 = vector.load %arg3[%c6_520, %c0_521, %c0_522] : memref<16x6x64xf32, #tpu.memory_space<vmem>>, vector<1x6x64xf32>
    %776 = vector.shape_cast %775 : vector<1x6x64xf32> to vector<6x64xf32>
    %cst_523 = arith.constant dense<0.000000e+00> : vector<8x64xf32>
    %777 = tpu.matmul %774, %776, %cst_523 {dimension_numbers = #tpu.dot_dimension_numbers<[1], [0], [0], [1], [0, 0, 1, 1], [], []>} : vector<8x6xf32>, vector<6x64xf32>, vector<8x64xf32> -> vector<8x64xf32>
    %778 = arith.addf %772, %777 : vector<8x64xf32>
    %c21_524 = arith.constant 21 : index
    %c0_525 = arith.constant 0 : index
    %c0_526 = arith.constant 0 : index
    %779 = vector.load %arg9[%c21_524, %c0_525, %c0_526] : memref<36x8x6xf32, #tpu.memory_space<vmem>>, vector<1x8x6xf32>
    %780 = vector.shape_cast %779 : vector<1x8x6xf32> to vector<8x6xf32>
    %c7_527 = arith.constant 7 : index
    %c0_528 = arith.constant 0 : index
    %c0_529 = arith.constant 0 : index
    %781 = vector.load %arg3[%c7_527, %c0_528, %c0_529] : memref<16x6x64xf32, #tpu.memory_space<vmem>>, vector<1x6x64xf32>
    %782 = vector.shape_cast %781 : vector<1x6x64xf32> to vector<6x64xf32>
    %cst_530 = arith.constant dense<0.000000e+00> : vector<8x64xf32>
    %783 = tpu.matmul %780, %782, %cst_530 {dimension_numbers = #tpu.dot_dimension_numbers<[1], [0], [0], [1], [0, 0, 1, 1], [], []>} : vector<8x6xf32>, vector<6x64xf32>, vector<8x64xf32> -> vector<8x64xf32>
    %784 = arith.addf %778, %783 : vector<8x64xf32>
    %c24_531 = arith.constant 24 : index
    %c0_532 = arith.constant 0 : index
    %c0_533 = arith.constant 0 : index
    %785 = vector.load %arg9[%c24_531, %c0_532, %c0_533] : memref<36x8x6xf32, #tpu.memory_space<vmem>>, vector<1x8x6xf32>
    %786 = vector.shape_cast %785 : vector<1x8x6xf32> to vector<8x6xf32>
    %c8_534 = arith.constant 8 : index
    %c0_535 = arith.constant 0 : index
    %c0_536 = arith.constant 0 : index
    %787 = vector.load %arg3[%c8_534, %c0_535, %c0_536] : memref<16x6x64xf32, #tpu.memory_space<vmem>>, vector<1x6x64xf32>
    %788 = vector.shape_cast %787 : vector<1x6x64xf32> to vector<6x64xf32>
    %cst_537 = arith.constant dense<0.000000e+00> : vector<8x64xf32>
    %789 = tpu.matmul %786, %788, %cst_537 {dimension_numbers = #tpu.dot_dimension_numbers<[1], [0], [0], [1], [0, 0, 1, 1], [], []>} : vector<8x6xf32>, vector<6x64xf32>, vector<8x64xf32> -> vector<8x64xf32>
    %790 = arith.addf %784, %789 : vector<8x64xf32>
    %c25_538 = arith.constant 25 : index
    %c0_539 = arith.constant 0 : index
    %c0_540 = arith.constant 0 : index
    %791 = vector.load %arg9[%c25_538, %c0_539, %c0_540] : memref<36x8x6xf32, #tpu.memory_space<vmem>>, vector<1x8x6xf32>
    %792 = vector.shape_cast %791 : vector<1x8x6xf32> to vector<8x6xf32>
    %c9_541 = arith.constant 9 : index
    %c0_542 = arith.constant 0 : index
    %c0_543 = arith.constant 0 : index
    %793 = vector.load %arg3[%c9_541, %c0_542, %c0_543] : memref<16x6x64xf32, #tpu.memory_space<vmem>>, vector<1x6x64xf32>
    %794 = vector.shape_cast %793 : vector<1x6x64xf32> to vector<6x64xf32>
    %cst_544 = arith.constant dense<0.000000e+00> : vector<8x64xf32>
    %795 = tpu.matmul %792, %794, %cst_544 {dimension_numbers = #tpu.dot_dimension_numbers<[1], [0], [0], [1], [0, 0, 1, 1], [], []>} : vector<8x6xf32>, vector<6x64xf32>, vector<8x64xf32> -> vector<8x64xf32>
    %796 = arith.addf %790, %795 : vector<8x64xf32>
    %c26_545 = arith.constant 26 : index
    %c0_546 = arith.constant 0 : index
    %c0_547 = arith.constant 0 : index
    %797 = vector.load %arg9[%c26_545, %c0_546, %c0_547] : memref<36x8x6xf32, #tpu.memory_space<vmem>>, vector<1x8x6xf32>
    %798 = vector.shape_cast %797 : vector<1x8x6xf32> to vector<8x6xf32>
    %c10_548 = arith.constant 10 : index
    %c0_549 = arith.constant 0 : index
    %c0_550 = arith.constant 0 : index
    %799 = vector.load %arg3[%c10_548, %c0_549, %c0_550] : memref<16x6x64xf32, #tpu.memory_space<vmem>>, vector<1x6x64xf32>
    %800 = vector.shape_cast %799 : vector<1x6x64xf32> to vector<6x64xf32>
    %cst_551 = arith.constant dense<0.000000e+00> : vector<8x64xf32>
    %801 = tpu.matmul %798, %800, %cst_551 {dimension_numbers = #tpu.dot_dimension_numbers<[1], [0], [0], [1], [0, 0, 1, 1], [], []>} : vector<8x6xf32>, vector<6x64xf32>, vector<8x64xf32> -> vector<8x64xf32>
    %802 = arith.addf %796, %801 : vector<8x64xf32>
    %c27_552 = arith.constant 27 : index
    %c0_553 = arith.constant 0 : index
    %c0_554 = arith.constant 0 : index
    %803 = vector.load %arg9[%c27_552, %c0_553, %c0_554] : memref<36x8x6xf32, #tpu.memory_space<vmem>>, vector<1x8x6xf32>
    %804 = vector.shape_cast %803 : vector<1x8x6xf32> to vector<8x6xf32>
    %c11_555 = arith.constant 11 : index
    %c0_556 = arith.constant 0 : index
    %c0_557 = arith.constant 0 : index
    %805 = vector.load %arg3[%c11_555, %c0_556, %c0_557] : memref<16x6x64xf32, #tpu.memory_space<vmem>>, vector<1x6x64xf32>
    %806 = vector.shape_cast %805 : vector<1x6x64xf32> to vector<6x64xf32>
    %cst_558 = arith.constant dense<0.000000e+00> : vector<8x64xf32>
    %807 = tpu.matmul %804, %806, %cst_558 {dimension_numbers = #tpu.dot_dimension_numbers<[1], [0], [0], [1], [0, 0, 1, 1], [], []>} : vector<8x6xf32>, vector<6x64xf32>, vector<8x64xf32> -> vector<8x64xf32>
    %808 = arith.addf %802, %807 : vector<8x64xf32>
    %c30_559 = arith.constant 30 : index
    %c0_560 = arith.constant 0 : index
    %c0_561 = arith.constant 0 : index
    %809 = vector.load %arg9[%c30_559, %c0_560, %c0_561] : memref<36x8x6xf32, #tpu.memory_space<vmem>>, vector<1x8x6xf32>
    %810 = vector.shape_cast %809 : vector<1x8x6xf32> to vector<8x6xf32>
    %c12_562 = arith.constant 12 : index
    %c0_563 = arith.constant 0 : index
    %c0_564 = arith.constant 0 : index
    %811 = vector.load %arg3[%c12_562, %c0_563, %c0_564] : memref<16x6x64xf32, #tpu.memory_space<vmem>>, vector<1x6x64xf32>
    %812 = vector.shape_cast %811 : vector<1x6x64xf32> to vector<6x64xf32>
    %cst_565 = arith.constant dense<0.000000e+00> : vector<8x64xf32>
    %813 = tpu.matmul %810, %812, %cst_565 {dimension_numbers = #tpu.dot_dimension_numbers<[1], [0], [0], [1], [0, 0, 1, 1], [], []>} : vector<8x6xf32>, vector<6x64xf32>, vector<8x64xf32> -> vector<8x64xf32>
    %814 = arith.addf %808, %813 : vector<8x64xf32>
    %c31_566 = arith.constant 31 : index
    %c0_567 = arith.constant 0 : index
    %c0_568 = arith.constant 0 : index
    %815 = vector.load %arg9[%c31_566, %c0_567, %c0_568] : memref<36x8x6xf32, #tpu.memory_space<vmem>>, vector<1x8x6xf32>
    %816 = vector.shape_cast %815 : vector<1x8x6xf32> to vector<8x6xf32>
    %c13_569 = arith.constant 13 : index
    %c0_570 = arith.constant 0 : index
    %c0_571 = arith.constant 0 : index
    %817 = vector.load %arg3[%c13_569, %c0_570, %c0_571] : memref<16x6x64xf32, #tpu.memory_space<vmem>>, vector<1x6x64xf32>
    %818 = vector.shape_cast %817 : vector<1x6x64xf32> to vector<6x64xf32>
    %cst_572 = arith.constant dense<0.000000e+00> : vector<8x64xf32>
    %819 = tpu.matmul %816, %818, %cst_572 {dimension_numbers = #tpu.dot_dimension_numbers<[1], [0], [0], [1], [0, 0, 1, 1], [], []>} : vector<8x6xf32>, vector<6x64xf32>, vector<8x64xf32> -> vector<8x64xf32>
    %820 = arith.addf %814, %819 : vector<8x64xf32>
    %c32_573 = arith.constant 32 : index
    %c0_574 = arith.constant 0 : index
    %c0_575 = arith.constant 0 : index
    %821 = vector.load %arg9[%c32_573, %c0_574, %c0_575] : memref<36x8x6xf32, #tpu.memory_space<vmem>>, vector<1x8x6xf32>
    %822 = vector.shape_cast %821 : vector<1x8x6xf32> to vector<8x6xf32>
    %c14_576 = arith.constant 14 : index
    %c0_577 = arith.constant 0 : index
    %c0_578 = arith.constant 0 : index
    %823 = vector.load %arg3[%c14_576, %c0_577, %c0_578] : memref<16x6x64xf32, #tpu.memory_space<vmem>>, vector<1x6x64xf32>
    %824 = vector.shape_cast %823 : vector<1x6x64xf32> to vector<6x64xf32>
    %cst_579 = arith.constant dense<0.000000e+00> : vector<8x64xf32>
    %825 = tpu.matmul %822, %824, %cst_579 {dimension_numbers = #tpu.dot_dimension_numbers<[1], [0], [0], [1], [0, 0, 1, 1], [], []>} : vector<8x6xf32>, vector<6x64xf32>, vector<8x64xf32> -> vector<8x64xf32>
    %826 = arith.addf %820, %825 : vector<8x64xf32>
    %c33_580 = arith.constant 33 : index
    %c0_581 = arith.constant 0 : index
    %c0_582 = arith.constant 0 : index
    %827 = vector.load %arg9[%c33_580, %c0_581, %c0_582] : memref<36x8x6xf32, #tpu.memory_space<vmem>>, vector<1x8x6xf32>
    %828 = vector.shape_cast %827 : vector<1x8x6xf32> to vector<8x6xf32>
    %c15_583 = arith.constant 15 : index
    %c0_584 = arith.constant 0 : index
    %c0_585 = arith.constant 0 : index
    %829 = vector.load %arg3[%c15_583, %c0_584, %c0_585] : memref<16x6x64xf32, #tpu.memory_space<vmem>>, vector<1x6x64xf32>
    %830 = vector.shape_cast %829 : vector<1x6x64xf32> to vector<6x64xf32>
    %cst_586 = arith.constant dense<0.000000e+00> : vector<8x64xf32>
    %831 = tpu.matmul %828, %830, %cst_586 {dimension_numbers = #tpu.dot_dimension_numbers<[1], [0], [0], [1], [0, 0, 1, 1], [], []>} : vector<8x6xf32>, vector<6x64xf32>, vector<8x64xf32> -> vector<8x64xf32>
    %832 = arith.addf %826, %831 : vector<8x64xf32>
    %cst_587 = arith.constant 0.000000e+00 : f32
    %833 = vector.broadcast %cst_587 : f32 to vector<8x64xf32>
    %834 = arith.maximumf %832, %833 : vector<8x64xf32>
    %835 = vector.extract_strided_slice %834 {offsets = [0, 0], sizes = [8, 16], strides = [1, 1]} : vector<8x64xf32> to vector<8x16xf32>
    %836 = vector.extract_strided_slice %834 {offsets = [0, 16], sizes = [8, 16], strides = [1, 1]} : vector<8x64xf32> to vector<8x16xf32>
    %837 = arith.maximumf %835, %836 : vector<8x16xf32>
    %838 = vector.extract_strided_slice %834 {offsets = [0, 32], sizes = [8, 16], strides = [1, 1]} : vector<8x64xf32> to vector<8x16xf32>
    %839 = vector.extract_strided_slice %834 {offsets = [0, 48], sizes = [8, 16], strides = [1, 1]} : vector<8x64xf32> to vector<8x16xf32>
    %840 = arith.maximumf %838, %839 : vector<8x16xf32>
    %841 = arith.maximumf %837, %840 : vector<8x16xf32>
    %c14_588 = arith.constant 14 : index
    %c0_589 = arith.constant 0 : index
    %c0_590 = arith.constant 0 : index
    %842 = vector.load %arg9[%c14_588, %c0_589, %c0_590] : memref<36x8x6xf32, #tpu.memory_space<vmem>>, vector<1x8x6xf32>
    %843 = vector.shape_cast %842 : vector<1x8x6xf32> to vector<8x6xf32>
    %c0_591 = arith.constant 0 : index
    %c0_592 = arith.constant 0 : index
    %c0_593 = arith.constant 0 : index
    %844 = vector.load %arg3[%c0_591, %c0_592, %c0_593] : memref<16x6x64xf32, #tpu.memory_space<vmem>>, vector<1x6x64xf32>
    %845 = vector.shape_cast %844 : vector<1x6x64xf32> to vector<6x64xf32>
    %cst_594 = arith.constant dense<0.000000e+00> : vector<8x64xf32>
    %846 = tpu.matmul %843, %845, %cst_594 {dimension_numbers = #tpu.dot_dimension_numbers<[1], [0], [0], [1], [0, 0, 1, 1], [], []>} : vector<8x6xf32>, vector<6x64xf32>, vector<8x64xf32> -> vector<8x64xf32>
    %847 = vector.broadcast %1 : vector<1x64xf32> to vector<8x64xf32>
    %848 = arith.addf %847, %846 : vector<8x64xf32>
    %c15_595 = arith.constant 15 : index
    %c0_596 = arith.constant 0 : index
    %c0_597 = arith.constant 0 : index
    %849 = vector.load %arg9[%c15_595, %c0_596, %c0_597] : memref<36x8x6xf32, #tpu.memory_space<vmem>>, vector<1x8x6xf32>
    %850 = vector.shape_cast %849 : vector<1x8x6xf32> to vector<8x6xf32>
    %c1_598 = arith.constant 1 : index
    %c0_599 = arith.constant 0 : index
    %c0_600 = arith.constant 0 : index
    %851 = vector.load %arg3[%c1_598, %c0_599, %c0_600] : memref<16x6x64xf32, #tpu.memory_space<vmem>>, vector<1x6x64xf32>
    %852 = vector.shape_cast %851 : vector<1x6x64xf32> to vector<6x64xf32>
    %cst_601 = arith.constant dense<0.000000e+00> : vector<8x64xf32>
    %853 = tpu.matmul %850, %852, %cst_601 {dimension_numbers = #tpu.dot_dimension_numbers<[1], [0], [0], [1], [0, 0, 1, 1], [], []>} : vector<8x6xf32>, vector<6x64xf32>, vector<8x64xf32> -> vector<8x64xf32>
    %854 = arith.addf %848, %853 : vector<8x64xf32>
    %c16_602 = arith.constant 16 : index
    %c0_603 = arith.constant 0 : index
    %c0_604 = arith.constant 0 : index
    %855 = vector.load %arg9[%c16_602, %c0_603, %c0_604] : memref<36x8x6xf32, #tpu.memory_space<vmem>>, vector<1x8x6xf32>
    %856 = vector.shape_cast %855 : vector<1x8x6xf32> to vector<8x6xf32>
    %c2_605 = arith.constant 2 : index
    %c0_606 = arith.constant 0 : index
    %c0_607 = arith.constant 0 : index
    %857 = vector.load %arg3[%c2_605, %c0_606, %c0_607] : memref<16x6x64xf32, #tpu.memory_space<vmem>>, vector<1x6x64xf32>
    %858 = vector.shape_cast %857 : vector<1x6x64xf32> to vector<6x64xf32>
    %cst_608 = arith.constant dense<0.000000e+00> : vector<8x64xf32>
    %859 = tpu.matmul %856, %858, %cst_608 {dimension_numbers = #tpu.dot_dimension_numbers<[1], [0], [0], [1], [0, 0, 1, 1], [], []>} : vector<8x6xf32>, vector<6x64xf32>, vector<8x64xf32> -> vector<8x64xf32>
    %860 = arith.addf %854, %859 : vector<8x64xf32>
    %c17_609 = arith.constant 17 : index
    %c0_610 = arith.constant 0 : index
    %c0_611 = arith.constant 0 : index
    %861 = vector.load %arg9[%c17_609, %c0_610, %c0_611] : memref<36x8x6xf32, #tpu.memory_space<vmem>>, vector<1x8x6xf32>
    %862 = vector.shape_cast %861 : vector<1x8x6xf32> to vector<8x6xf32>
    %c3_612 = arith.constant 3 : index
    %c0_613 = arith.constant 0 : index
    %c0_614 = arith.constant 0 : index
    %863 = vector.load %arg3[%c3_612, %c0_613, %c0_614] : memref<16x6x64xf32, #tpu.memory_space<vmem>>, vector<1x6x64xf32>
    %864 = vector.shape_cast %863 : vector<1x6x64xf32> to vector<6x64xf32>
    %cst_615 = arith.constant dense<0.000000e+00> : vector<8x64xf32>
    %865 = tpu.matmul %862, %864, %cst_615 {dimension_numbers = #tpu.dot_dimension_numbers<[1], [0], [0], [1], [0, 0, 1, 1], [], []>} : vector<8x6xf32>, vector<6x64xf32>, vector<8x64xf32> -> vector<8x64xf32>
    %866 = arith.addf %860, %865 : vector<8x64xf32>
    %c20_616 = arith.constant 20 : index
    %c0_617 = arith.constant 0 : index
    %c0_618 = arith.constant 0 : index
    %867 = vector.load %arg9[%c20_616, %c0_617, %c0_618] : memref<36x8x6xf32, #tpu.memory_space<vmem>>, vector<1x8x6xf32>
    %868 = vector.shape_cast %867 : vector<1x8x6xf32> to vector<8x6xf32>
    %c4_619 = arith.constant 4 : index
    %c0_620 = arith.constant 0 : index
    %c0_621 = arith.constant 0 : index
    %869 = vector.load %arg3[%c4_619, %c0_620, %c0_621] : memref<16x6x64xf32, #tpu.memory_space<vmem>>, vector<1x6x64xf32>
    %870 = vector.shape_cast %869 : vector<1x6x64xf32> to vector<6x64xf32>
    %cst_622 = arith.constant dense<0.000000e+00> : vector<8x64xf32>
    %871 = tpu.matmul %868, %870, %cst_622 {dimension_numbers = #tpu.dot_dimension_numbers<[1], [0], [0], [1], [0, 0, 1, 1], [], []>} : vector<8x6xf32>, vector<6x64xf32>, vector<8x64xf32> -> vector<8x64xf32>
    %872 = arith.addf %866, %871 : vector<8x64xf32>
    %c21_623 = arith.constant 21 : index
    %c0_624 = arith.constant 0 : index
    %c0_625 = arith.constant 0 : index
    %873 = vector.load %arg9[%c21_623, %c0_624, %c0_625] : memref<36x8x6xf32, #tpu.memory_space<vmem>>, vector<1x8x6xf32>
    %874 = vector.shape_cast %873 : vector<1x8x6xf32> to vector<8x6xf32>
    %c5_626 = arith.constant 5 : index
    %c0_627 = arith.constant 0 : index
    %c0_628 = arith.constant 0 : index
    %875 = vector.load %arg3[%c5_626, %c0_627, %c0_628] : memref<16x6x64xf32, #tpu.memory_space<vmem>>, vector<1x6x64xf32>
    %876 = vector.shape_cast %875 : vector<1x6x64xf32> to vector<6x64xf32>
    %cst_629 = arith.constant dense<0.000000e+00> : vector<8x64xf32>
    %877 = tpu.matmul %874, %876, %cst_629 {dimension_numbers = #tpu.dot_dimension_numbers<[1], [0], [0], [1], [0, 0, 1, 1], [], []>} : vector<8x6xf32>, vector<6x64xf32>, vector<8x64xf32> -> vector<8x64xf32>
    %878 = arith.addf %872, %877 : vector<8x64xf32>
    %c22_630 = arith.constant 22 : index
    %c0_631 = arith.constant 0 : index
    %c0_632 = arith.constant 0 : index
    %879 = vector.load %arg9[%c22_630, %c0_631, %c0_632] : memref<36x8x6xf32, #tpu.memory_space<vmem>>, vector<1x8x6xf32>
    %880 = vector.shape_cast %879 : vector<1x8x6xf32> to vector<8x6xf32>
    %c6_633 = arith.constant 6 : index
    %c0_634 = arith.constant 0 : index
    %c0_635 = arith.constant 0 : index
    %881 = vector.load %arg3[%c6_633, %c0_634, %c0_635] : memref<16x6x64xf32, #tpu.memory_space<vmem>>, vector<1x6x64xf32>
    %882 = vector.shape_cast %881 : vector<1x6x64xf32> to vector<6x64xf32>
    %cst_636 = arith.constant dense<0.000000e+00> : vector<8x64xf32>
    %883 = tpu.matmul %880, %882, %cst_636 {dimension_numbers = #tpu.dot_dimension_numbers<[1], [0], [0], [1], [0, 0, 1, 1], [], []>} : vector<8x6xf32>, vector<6x64xf32>, vector<8x64xf32> -> vector<8x64xf32>
    %884 = arith.addf %878, %883 : vector<8x64xf32>
    %c23_637 = arith.constant 23 : index
    %c0_638 = arith.constant 0 : index
    %c0_639 = arith.constant 0 : index
    %885 = vector.load %arg9[%c23_637, %c0_638, %c0_639] : memref<36x8x6xf32, #tpu.memory_space<vmem>>, vector<1x8x6xf32>
    %886 = vector.shape_cast %885 : vector<1x8x6xf32> to vector<8x6xf32>
    %c7_640 = arith.constant 7 : index
    %c0_641 = arith.constant 0 : index
    %c0_642 = arith.constant 0 : index
    %887 = vector.load %arg3[%c7_640, %c0_641, %c0_642] : memref<16x6x64xf32, #tpu.memory_space<vmem>>, vector<1x6x64xf32>
    %888 = vector.shape_cast %887 : vector<1x6x64xf32> to vector<6x64xf32>
    %cst_643 = arith.constant dense<0.000000e+00> : vector<8x64xf32>
    %889 = tpu.matmul %886, %888, %cst_643 {dimension_numbers = #tpu.dot_dimension_numbers<[1], [0], [0], [1], [0, 0, 1, 1], [], []>} : vector<8x6xf32>, vector<6x64xf32>, vector<8x64xf32> -> vector<8x64xf32>
    %890 = arith.addf %884, %889 : vector<8x64xf32>
    %c26_644 = arith.constant 26 : index
    %c0_645 = arith.constant 0 : index
    %c0_646 = arith.constant 0 : index
    %891 = vector.load %arg9[%c26_644, %c0_645, %c0_646] : memref<36x8x6xf32, #tpu.memory_space<vmem>>, vector<1x8x6xf32>
    %892 = vector.shape_cast %891 : vector<1x8x6xf32> to vector<8x6xf32>
    %c8_647 = arith.constant 8 : index
    %c0_648 = arith.constant 0 : index
    %c0_649 = arith.constant 0 : index
    %893 = vector.load %arg3[%c8_647, %c0_648, %c0_649] : memref<16x6x64xf32, #tpu.memory_space<vmem>>, vector<1x6x64xf32>
    %894 = vector.shape_cast %893 : vector<1x6x64xf32> to vector<6x64xf32>
    %cst_650 = arith.constant dense<0.000000e+00> : vector<8x64xf32>
    %895 = tpu.matmul %892, %894, %cst_650 {dimension_numbers = #tpu.dot_dimension_numbers<[1], [0], [0], [1], [0, 0, 1, 1], [], []>} : vector<8x6xf32>, vector<6x64xf32>, vector<8x64xf32> -> vector<8x64xf32>
    %896 = arith.addf %890, %895 : vector<8x64xf32>
    %c27_651 = arith.constant 27 : index
    %c0_652 = arith.constant 0 : index
    %c0_653 = arith.constant 0 : index
    %897 = vector.load %arg9[%c27_651, %c0_652, %c0_653] : memref<36x8x6xf32, #tpu.memory_space<vmem>>, vector<1x8x6xf32>
    %898 = vector.shape_cast %897 : vector<1x8x6xf32> to vector<8x6xf32>
    %c9_654 = arith.constant 9 : index
    %c0_655 = arith.constant 0 : index
    %c0_656 = arith.constant 0 : index
    %899 = vector.load %arg3[%c9_654, %c0_655, %c0_656] : memref<16x6x64xf32, #tpu.memory_space<vmem>>, vector<1x6x64xf32>
    %900 = vector.shape_cast %899 : vector<1x6x64xf32> to vector<6x64xf32>
    %cst_657 = arith.constant dense<0.000000e+00> : vector<8x64xf32>
    %901 = tpu.matmul %898, %900, %cst_657 {dimension_numbers = #tpu.dot_dimension_numbers<[1], [0], [0], [1], [0, 0, 1, 1], [], []>} : vector<8x6xf32>, vector<6x64xf32>, vector<8x64xf32> -> vector<8x64xf32>
    %902 = arith.addf %896, %901 : vector<8x64xf32>
    %c28_658 = arith.constant 28 : index
    %c0_659 = arith.constant 0 : index
    %c0_660 = arith.constant 0 : index
    %903 = vector.load %arg9[%c28_658, %c0_659, %c0_660] : memref<36x8x6xf32, #tpu.memory_space<vmem>>, vector<1x8x6xf32>
    %904 = vector.shape_cast %903 : vector<1x8x6xf32> to vector<8x6xf32>
    %c10_661 = arith.constant 10 : index
    %c0_662 = arith.constant 0 : index
    %c0_663 = arith.constant 0 : index
    %905 = vector.load %arg3[%c10_661, %c0_662, %c0_663] : memref<16x6x64xf32, #tpu.memory_space<vmem>>, vector<1x6x64xf32>
    %906 = vector.shape_cast %905 : vector<1x6x64xf32> to vector<6x64xf32>
    %cst_664 = arith.constant dense<0.000000e+00> : vector<8x64xf32>
    %907 = tpu.matmul %904, %906, %cst_664 {dimension_numbers = #tpu.dot_dimension_numbers<[1], [0], [0], [1], [0, 0, 1, 1], [], []>} : vector<8x6xf32>, vector<6x64xf32>, vector<8x64xf32> -> vector<8x64xf32>
    %908 = arith.addf %902, %907 : vector<8x64xf32>
    %c29_665 = arith.constant 29 : index
    %c0_666 = arith.constant 0 : index
    %c0_667 = arith.constant 0 : index
    %909 = vector.load %arg9[%c29_665, %c0_666, %c0_667] : memref<36x8x6xf32, #tpu.memory_space<vmem>>, vector<1x8x6xf32>
    %910 = vector.shape_cast %909 : vector<1x8x6xf32> to vector<8x6xf32>
    %c11_668 = arith.constant 11 : index
    %c0_669 = arith.constant 0 : index
    %c0_670 = arith.constant 0 : index
    %911 = vector.load %arg3[%c11_668, %c0_669, %c0_670] : memref<16x6x64xf32, #tpu.memory_space<vmem>>, vector<1x6x64xf32>
    %912 = vector.shape_cast %911 : vector<1x6x64xf32> to vector<6x64xf32>
    %cst_671 = arith.constant dense<0.000000e+00> : vector<8x64xf32>
    %913 = tpu.matmul %910, %912, %cst_671 {dimension_numbers = #tpu.dot_dimension_numbers<[1], [0], [0], [1], [0, 0, 1, 1], [], []>} : vector<8x6xf32>, vector<6x64xf32>, vector<8x64xf32> -> vector<8x64xf32>
    %914 = arith.addf %908, %913 : vector<8x64xf32>
    %c32_672 = arith.constant 32 : index
    %c0_673 = arith.constant 0 : index
    %c0_674 = arith.constant 0 : index
    %915 = vector.load %arg9[%c32_672, %c0_673, %c0_674] : memref<36x8x6xf32, #tpu.memory_space<vmem>>, vector<1x8x6xf32>
    %916 = vector.shape_cast %915 : vector<1x8x6xf32> to vector<8x6xf32>
    %c12_675 = arith.constant 12 : index
    %c0_676 = arith.constant 0 : index
    %c0_677 = arith.constant 0 : index
    %917 = vector.load %arg3[%c12_675, %c0_676, %c0_677] : memref<16x6x64xf32, #tpu.memory_space<vmem>>, vector<1x6x64xf32>
    %918 = vector.shape_cast %917 : vector<1x6x64xf32> to vector<6x64xf32>
    %cst_678 = arith.constant dense<0.000000e+00> : vector<8x64xf32>
    %919 = tpu.matmul %916, %918, %cst_678 {dimension_numbers = #tpu.dot_dimension_numbers<[1], [0], [0], [1], [0, 0, 1, 1], [], []>} : vector<8x6xf32>, vector<6x64xf32>, vector<8x64xf32> -> vector<8x64xf32>
    %920 = arith.addf %914, %919 : vector<8x64xf32>
    %c33_679 = arith.constant 33 : index
    %c0_680 = arith.constant 0 : index
    %c0_681 = arith.constant 0 : index
    %921 = vector.load %arg9[%c33_679, %c0_680, %c0_681] : memref<36x8x6xf32, #tpu.memory_space<vmem>>, vector<1x8x6xf32>
    %922 = vector.shape_cast %921 : vector<1x8x6xf32> to vector<8x6xf32>
    %c13_682 = arith.constant 13 : index
    %c0_683 = arith.constant 0 : index
    %c0_684 = arith.constant 0 : index
    %923 = vector.load %arg3[%c13_682, %c0_683, %c0_684] : memref<16x6x64xf32, #tpu.memory_space<vmem>>, vector<1x6x64xf32>
    %924 = vector.shape_cast %923 : vector<1x6x64xf32> to vector<6x64xf32>
    %cst_685 = arith.constant dense<0.000000e+00> : vector<8x64xf32>
    %925 = tpu.matmul %922, %924, %cst_685 {dimension_numbers = #tpu.dot_dimension_numbers<[1], [0], [0], [1], [0, 0, 1, 1], [], []>} : vector<8x6xf32>, vector<6x64xf32>, vector<8x64xf32> -> vector<8x64xf32>
    %926 = arith.addf %920, %925 : vector<8x64xf32>
    %c34_686 = arith.constant 34 : index
    %c0_687 = arith.constant 0 : index
    %c0_688 = arith.constant 0 : index
    %927 = vector.load %arg9[%c34_686, %c0_687, %c0_688] : memref<36x8x6xf32, #tpu.memory_space<vmem>>, vector<1x8x6xf32>
    %928 = vector.shape_cast %927 : vector<1x8x6xf32> to vector<8x6xf32>
    %c14_689 = arith.constant 14 : index
    %c0_690 = arith.constant 0 : index
    %c0_691 = arith.constant 0 : index
    %929 = vector.load %arg3[%c14_689, %c0_690, %c0_691] : memref<16x6x64xf32, #tpu.memory_space<vmem>>, vector<1x6x64xf32>
    %930 = vector.shape_cast %929 : vector<1x6x64xf32> to vector<6x64xf32>
    %cst_692 = arith.constant dense<0.000000e+00> : vector<8x64xf32>
    %931 = tpu.matmul %928, %930, %cst_692 {dimension_numbers = #tpu.dot_dimension_numbers<[1], [0], [0], [1], [0, 0, 1, 1], [], []>} : vector<8x6xf32>, vector<6x64xf32>, vector<8x64xf32> -> vector<8x64xf32>
    %932 = arith.addf %926, %931 : vector<8x64xf32>
    %c35_693 = arith.constant 35 : index
    %c0_694 = arith.constant 0 : index
    %c0_695 = arith.constant 0 : index
    %933 = vector.load %arg9[%c35_693, %c0_694, %c0_695] : memref<36x8x6xf32, #tpu.memory_space<vmem>>, vector<1x8x6xf32>
    %934 = vector.shape_cast %933 : vector<1x8x6xf32> to vector<8x6xf32>
    %c15_696 = arith.constant 15 : index
    %c0_697 = arith.constant 0 : index
    %c0_698 = arith.constant 0 : index
    %935 = vector.load %arg3[%c15_696, %c0_697, %c0_698] : memref<16x6x64xf32, #tpu.memory_space<vmem>>, vector<1x6x64xf32>
    %936 = vector.shape_cast %935 : vector<1x6x64xf32> to vector<6x64xf32>
    %cst_699 = arith.constant dense<0.000000e+00> : vector<8x64xf32>
    %937 = tpu.matmul %934, %936, %cst_699 {dimension_numbers = #tpu.dot_dimension_numbers<[1], [0], [0], [1], [0, 0, 1, 1], [], []>} : vector<8x6xf32>, vector<6x64xf32>, vector<8x64xf32> -> vector<8x64xf32>
    %938 = arith.addf %932, %937 : vector<8x64xf32>
    %cst_700 = arith.constant 0.000000e+00 : f32
    %939 = vector.broadcast %cst_700 : f32 to vector<8x64xf32>
    %940 = arith.maximumf %938, %939 : vector<8x64xf32>
    %941 = vector.extract_strided_slice %940 {offsets = [0, 0], sizes = [8, 16], strides = [1, 1]} : vector<8x64xf32> to vector<8x16xf32>
    %942 = vector.extract_strided_slice %940 {offsets = [0, 16], sizes = [8, 16], strides = [1, 1]} : vector<8x64xf32> to vector<8x16xf32>
    %943 = arith.maximumf %941, %942 : vector<8x16xf32>
    %944 = vector.extract_strided_slice %940 {offsets = [0, 32], sizes = [8, 16], strides = [1, 1]} : vector<8x64xf32> to vector<8x16xf32>
    %945 = vector.extract_strided_slice %940 {offsets = [0, 48], sizes = [8, 16], strides = [1, 1]} : vector<8x64xf32> to vector<8x16xf32>
    %946 = arith.maximumf %944, %945 : vector<8x16xf32>
    %947 = arith.maximumf %943, %946 : vector<8x16xf32>
    %c0_701 = arith.constant 0 : index
    %c0_702 = arith.constant 0 : index
    %948 = vector.load %arg4[%c0_701, %c0_702] : memref<64x120xf32, #tpu.memory_space<vmem>>, vector<16x120xf32>
    %cst_703 = arith.constant dense<0.000000e+00> : vector<8x120xf32>
    %949 = tpu.matmul %629, %948, %cst_703 {dimension_numbers = #tpu.dot_dimension_numbers<[1], [0], [0], [1], [0, 0, 1, 1], [], []>} : vector<8x16xf32>, vector<16x120xf32>, vector<8x120xf32> -> vector<8x120xf32>
    %c16_704 = arith.constant 16 : index
    %c0_705 = arith.constant 0 : index
    %950 = vector.load %arg4[%c16_704, %c0_705] : memref<64x120xf32, #tpu.memory_space<vmem>>, vector<16x120xf32>
    %cst_706 = arith.constant dense<0.000000e+00> : vector<8x120xf32>
    %951 = tpu.matmul %735, %950, %cst_706 {dimension_numbers = #tpu.dot_dimension_numbers<[1], [0], [0], [1], [0, 0, 1, 1], [], []>} : vector<8x16xf32>, vector<16x120xf32>, vector<8x120xf32> -> vector<8x120xf32>
    %952 = arith.addf %949, %951 : vector<8x120xf32>
    %c32_707 = arith.constant 32 : index
    %c0_708 = arith.constant 0 : index
    %953 = vector.load %arg4[%c32_707, %c0_708] : memref<64x120xf32, #tpu.memory_space<vmem>>, vector<16x120xf32>
    %cst_709 = arith.constant dense<0.000000e+00> : vector<8x120xf32>
    %954 = tpu.matmul %841, %953, %cst_709 {dimension_numbers = #tpu.dot_dimension_numbers<[1], [0], [0], [1], [0, 0, 1, 1], [], []>} : vector<8x16xf32>, vector<16x120xf32>, vector<8x120xf32> -> vector<8x120xf32>
    %955 = arith.addf %952, %954 : vector<8x120xf32>
    %c48 = arith.constant 48 : index
    %c0_710 = arith.constant 0 : index
    %956 = vector.load %arg4[%c48, %c0_710] : memref<64x120xf32, #tpu.memory_space<vmem>>, vector<16x120xf32>
    %cst_711 = arith.constant dense<0.000000e+00> : vector<8x120xf32>
    %957 = tpu.matmul %947, %956, %cst_711 {dimension_numbers = #tpu.dot_dimension_numbers<[1], [0], [0], [1], [0, 0, 1, 1], [], []>} : vector<8x16xf32>, vector<16x120xf32>, vector<8x120xf32> -> vector<8x120xf32>
    %958 = arith.addf %955, %957 : vector<8x120xf32>
    %c2_712 = arith.constant 2 : index
    %c0_713 = arith.constant 0 : index
    %959 = vector.load %arg7[%c2_712, %c0_713] : memref<8x256xf32, #tpu.memory_space<vmem>>, vector<1x120xf32>
    %960 = vector.broadcast %959 : vector<1x120xf32> to vector<8x120xf32>
    %961 = arith.addf %958, %960 : vector<8x120xf32>
    %cst_714 = arith.constant 0.000000e+00 : f32
    %962 = vector.broadcast %cst_714 : f32 to vector<8x120xf32>
    %963 = arith.maximumf %961, %962 : vector<8x120xf32>
    %c0_715 = arith.constant 0 : index
    %c0_716 = arith.constant 0 : index
    %964 = vector.load %arg5[%c0_715, %c0_716] : memref<120x84xf32, #tpu.memory_space<vmem>>, vector<120x84xf32>
    %cst_717 = arith.constant dense<0.000000e+00> : vector<8x84xf32>
    %965 = tpu.matmul %963, %964, %cst_717 {dimension_numbers = #tpu.dot_dimension_numbers<[1], [0], [0], [1], [0, 0, 1, 1], [], []>} : vector<8x120xf32>, vector<120x84xf32>, vector<8x84xf32> -> vector<8x84xf32>
    %c3_718 = arith.constant 3 : index
    %c0_719 = arith.constant 0 : index
    %966 = vector.load %arg7[%c3_718, %c0_719] : memref<8x256xf32, #tpu.memory_space<vmem>>, vector<1x84xf32>
    %967 = vector.broadcast %966 : vector<1x84xf32> to vector<8x84xf32>
    %968 = arith.addf %965, %967 : vector<8x84xf32>
    %cst_720 = arith.constant 0.000000e+00 : f32
    %969 = vector.broadcast %cst_720 : f32 to vector<8x84xf32>
    %970 = arith.maximumf %968, %969 : vector<8x84xf32>
    %c0_721 = arith.constant 0 : index
    %c0_722 = arith.constant 0 : index
    %971 = vector.load %arg6[%c0_721, %c0_722] : memref<84x5xf32, #tpu.memory_space<vmem>>, vector<84x5xf32>
    %cst_723 = arith.constant dense<0.000000e+00> : vector<8x5xf32>
    %972 = tpu.matmul %970, %971, %cst_723 {dimension_numbers = #tpu.dot_dimension_numbers<[1], [0], [0], [1], [0, 0, 1, 1], [], []>} : vector<8x84xf32>, vector<84x5xf32>, vector<8x5xf32> -> vector<8x5xf32>
    %c4_724 = arith.constant 4 : index
    %c0_725 = arith.constant 0 : index
    %973 = vector.load %arg7[%c4_724, %c0_725] : memref<8x256xf32, #tpu.memory_space<vmem>>, vector<1x5xf32>
    %974 = vector.broadcast %973 : vector<1x5xf32> to vector<8x5xf32>
    %975 = arith.addf %972, %974 : vector<8x5xf32>
    %c0_726 = arith.constant 0 : index
    %c0_727 = arith.constant 0 : index
    %976 = vector.load %arg8[%c0_726, %c0_727] : memref<8x5xf32, #tpu.memory_space<vmem>>, vector<8x5xf32>
    tpu.vector_store %arg8[%c0_726, %c0_727], %975 {strides = array<i32>} : memref<8x5xf32, #tpu.memory_space<vmem>>, vector<8x5xf32>,
    return
  }
  func.func @transform_0(%arg0: i32) -> (i32, i32, i32) {
    %c0_i32 = arith.constant 0 : i32
    %c0_i32_0 = arith.constant 0 : i32
    %c0_i32_1 = arith.constant 0 : i32
    return %c0_i32, %arg0, %c0_i32_0 : i32, i32, i32
  }
  func.func @transform_1(%arg0: i32) -> (i32, i32, i32) {
    %c0_i32 = arith.constant 0 : i32
    %c0_i32_0 = arith.constant 0 : i32
    %c0_i32_1 = arith.constant 0 : i32
    %c0_i32_2 = arith.constant 0 : i32
    return %c0_i32, %c0_i32_0, %c0_i32_1 : i32, i32, i32
  }
  func.func @transform_2(%arg0: i32) -> (i32, i32, i32) {
    %c0_i32 = arith.constant 0 : i32
    %c0_i32_0 = arith.constant 0 : i32
    %c0_i32_1 = arith.constant 0 : i32
    %c0_i32_2 = arith.constant 0 : i32
    return %c0_i32, %c0_i32_0, %c0_i32_1 : i32, i32, i32
  }
  func.func @transform_3(%arg0: i32) -> (i32, i32) {
    %c0_i32 = arith.constant 0 : i32
    %c0_i32_0 = arith.constant 0 : i32
    %c0_i32_1 = arith.constant 0 : i32
    return %c0_i32, %c0_i32_0 : i32, i32
  }
  func.func @transform_4(%arg0: i32) -> (i32, i32) {
    %c0_i32 = arith.constant 0 : i32
    %c0_i32_0 = arith.constant 0 : i32
    %c0_i32_1 = arith.constant 0 : i32
    return %c0_i32, %c0_i32_0 : i32, i32
  }
  func.func @transform_5(%arg0: i32) -> (i32, i32) {
    %c0_i32 = arith.constant 0 : i32
    %c0_i32_0 = arith.constant 0 : i32
    %c0_i32_1 = arith.constant 0 : i32
    return %c0_i32, %c0_i32_0 : i32, i32
  }
  func.func @transform_6(%arg0: i32) -> (i32, i32) {
    %c0_i32 = arith.constant 0 : i32
    %c0_i32_0 = arith.constant 0 : i32
    %c0_i32_1 = arith.constant 0 : i32
    return %c0_i32, %c0_i32_0 : i32, i32
  }
  func.func @transform_7(%arg0: i32) -> (i32, i32) {
    %c0_i32 = arith.constant 0 : i32
    %c0_i32_0 = arith.constant 0 : i32
    return %arg0, %c0_i32 : i32, i32
  }
}

</mosaic_0001>

<bundles_post_ra>
// kernel: net_forward.1
= control target key start
LH: loop header
LB: loop body
LE: loop exit
PB: predicated region body
PF: predicated region fallthrough
CT: control target
= control target key end

     0   :  { %vm44_vm0 = vcmask 1045504   ;;  %vm40_vm1 = vcmask 113664   ;;  %s3862_s25 = smov 122   ;;  %s3863_s22 = smov 116   ;;  %vm275_vm2 = vcmask 48128   ;;  %vm301_vm3 = vcmask 998400   ;;  %s5044_s1 = inlined_call_operand.vmem [shape: f32[4,14,144], index: 1, kind: input, shape index: {}]   ;;  %s5045_s0 = inlined_call_operand.vmem [shape: f32[14,8,14], index: 0, kind: input, shape index: {}]   ;;  %s5046_s6 = inlined_call_operand.vmem [shape: f32[8,256], index: 6, kind: input, shape index: {}]   ;;  %s5047_s2 = inlined_call_operand.vmem [shape: f32[16,6,64], index: 2, kind: input, shape index: {}]   ;;  %s5048_s3 = inlined_call_operand.vmem [shape: f32[64,120], index: 3, kind: input, shape index: {}]   ;;  %s5049_s4 = inlined_call_operand.vmem [shape: f32[120,84], index: 4, kind: input, shape index: {}]   ;;  %s5050_s5 = inlined_call_operand.vmem [shape: f32[84,5], index: 5, kind: input, shape index: {}]   ;;  %s5051_s7 = inlined_call_operand.vmem [shape: f32[8,5], index: 7, kind: output, shape index: {}]  }
   0x1   :  { %v3515_v0 = vld [vmem:[%s5044_s1 + $0x30] sm:$0x3f]  ;;  %v32_v1 = vld [vmem:[%s5044_s1 + $0x18] sm:$0x3f]  ;;  %v3920_v2 = vld [vmem:[%s5044_s1 + $0x20] sm:$0xff]  ;;  %s3864_s8 = smov 56  }
   0x2   :  { %3517 = vmatpush.msk.msra.mxu2 %vm44_vm0, %v3515_v0  ;;  %3523 = vmatpush.msk.msra.mxu3 %vm44_vm0, %v32_v1  ;;  %v3927_v3 = vld [vmem:[%s5044_s1 + $0x8] sm:$0xff]  ;;  %v3516_v5 = vld [vmem:[%s5044_s1 + $0x38] sm:$0x3f]  ;;  %v28_v6 = vld [vmem:[%s5045_s0] sm:$0xff]  ;;  %s3865_s11 = smov 80   ;;  %s3866_s12 = smov 104  }
   0x3   :  { %v3512_v4 = vld [vmem:[%s5045_s0 + $0x8] sm:$0xff]  ;;  %v3528_v7 = vld [vmem:[%s5044_s1 + $0x50] sm:$0x3f]  ;;  %v3953_v9 = vld [vmem:[%s5044_s1 + $0x40] sm:$0xff]  ;;  %s3867_s16 = smov 32   ;;  %s3868_s19 = smov 8  }
   0x4   :  { %66 = vmatpush.msra.mxu2 %v3920_v2  ;;  %135 = vmatpush.msra.mxu3 %v3927_v3  ;;  %v3948_v8 = vld [vmem:[%s5044_s1 + $0x28] sm:$0xff]  ;;  %v3529_v10 = vld [vmem:[%s5044_s1 + $0x58] sm:$0x3f]  ;;  %v31_v11 = vld [vmem:[%s5044_s1 + $0x10] sm:$0x3f]  ;;  %vm3323_vm4 = vcmask 130048  }
   0x5   :  { %3518 = vmatmul.msk.f32.vlgmr.msra.gmra.mxu2 %vm40_vm1, %v3512_v4  ;;  %3524 = vmatmul.msk.f32.vlgmr.msra.gmra.mxu3 %vm40_vm1, %v28_v6  ;;  %v3538_v12 = vld [vmem:[%s5044_s1 + $0x78] sm:$0x3f]  ;;  %v3970_v13 = vld [vmem:[%s5044_s1 + $0x48] sm:$0xff]  ;;  %v3977_v14 = vld [vmem:[%s5044_s1] sm:$0xff]  ;;  %vm3482_vm5 = vcmask 1043456   ;;  %vm3441_vm6 = vcmask 982016  }
   0x6   :  { %3519 = vmatpush.msk.msrb.mxu2 %vm44_vm0, %v3516_v5  ;;  %3530 = vmatpush.msk.msrb.mxu3 %vm44_vm0, %v3528_v7  ;;  %v3982_v15 = vld [vmem:[%s5044_s1 + $0x68] sm:$0xff]  ;;  %v3547_v16 = vld [vmem:[%s5044_s1 + $0x30] sm:$0x3f]  ;;  %v322_v20 = vld [vmem:[%s5044_s1 + $0x18] sm:$0x3f]  ;;  %vm3478_vm7 = vcmask 687104  }
   0x7   :  { %3532 = vmatpush.msk.msra.mxu1 %vm44_vm0, %v3529_v10  ;;  %v3525_v17 = vld [vmem:[%s5045_s0 + $0x10] sm:$0xff]  ;;  %3549 = vmatpush.msk.msra.mxu0 %vm44_vm0, %v3547_v16  ;;  %v3534_v21 = vld [vmem:[%s5045_s0 + $0x18] sm:$0xff]  ;;  %v4015_v22 = vld [vmem:[%s5044_s1 + $0x60] sm:$0xff]  ;;  %vm3506_vm8 = vcmask 39936  }
   0x8   :  { %86 = vmatpush.msrb.mxu2 %v3948_v8  ;;  %171 = vmatpush.msrb.mxu3 %v3953_v9  ;;  %v3537_v18 = vld [vmem:[%s5044_s1 + $0x70] sm:$0x3f]  ;;  %v3548_v23 = vld [vmem:[%s5044_s1 + $0x38] sm:$0x3f]  ;;  %v3557_v26 = vld [vmem:[%s5045_s0 + $0x20] sm:$0xff] }
   0x9   :  { %191 = vmatpush.msra.mxu1 %v3970_v13  ;;  %352 = vmatpush.msra.mxu0 %v3920_v2  ;;  %v3560_v19 = vld [vmem:[%s5044_s1 + $0x50] sm:$0x3f]  ;;  %v3570_v27 = vld [vmem:[%s5044_s1 + $0x78] sm:$0x3f]  ;;  %v3566_v31 = vld [vmem:[%s5045_s0 + $0x28] sm:$0xff] }
   0xa   :  { %3521 = vmatpush.msk.msra.mxu2 %vm44_vm0, %v31_v11  ;;  %3541 = vmatpush.msk.msra.mxu3 %vm44_vm0, %v3538_v12  ;;  %v3579_v24 = vld [vmem:[%s5044_s1 + $0x30] sm:$0x3f]  ;;  %v3561_v28 = vld [vmem:[%s5044_s1 + $0x58] sm:$0x3f]  ;;  %v4110_v39 = vld [vmem:[%s5045_s0 + $0x40] sm:$0xff] }
   0xb   :  { %3533 = vmatmul.msk.f32.vlgmr.msra.gmra.mxu1 %vm40_vm1, %v3525_v17  ;;  %3550 = vmatmul.msk.f32.vlgmr.msra.gmra.mxu0 %vm40_vm1, %v3534_v21  ;;  %v321_v25 = vld [vmem:[%s5044_s1 + $0x10] sm:$0x3f]  ;;  %v3598_v36 = vld [vmem:[%s5045_s0 + $0x38] sm:$0xff]  ;;  %v4127_v41 = vld [vmem:[%s5045_s0 + $0x48] sm:$0xff] }
   0xc   :  { %115 = vmatpush.msra.mxu2 %v3977_v14  ;;  %249 = vmatpush.msra.mxu3 %v3982_v15  ;;  %v3592_v29 = vld [vmem:[%s5044_s1 + $0x50] sm:$0x3f]  ;;  %v600_v42 = vld [vmem:[%s5044_s1 + $0x18] sm:$0x3f] }
   0xd   :  { %3520 = vmatmul.msk.f32.vlgmr.msrb.gmra.mxu2 %vm40_vm1, %v3512_v4  ;;  %3531 = vmatmul.msk.f32.vlgmr.msrb.gmra.mxu3 %vm40_vm1, %v3525_v17  ;;  %v3569_v30 = vld [vmem:[%s5044_s1 + $0x70] sm:$0x3f]  ;;  %v3580_v43 = vld [vmem:[%s5044_s1 + $0x38] sm:$0x3f] }
   0xe   :  { %3539 = vmatpush.msk.msrb.mxu2 %vm44_vm0, %v3537_v18  ;;  %3562 = vmatpush.msk.msrb.mxu0 %vm44_vm0, %v3560_v19  ;;  %v599_v32 = vld [vmem:[%s5044_s1 + $0x10] sm:$0x3f]  ;;  %v3602_v44 = vld [vmem:[%s5044_s1 + $0x78] sm:$0x3f] }
   0xf   :  { %3555 = vmatpush.msk.msrb.mxu3 %vm44_vm0, %v322_v20  ;;  %3551 = vmatpush.msk.msrb.mxu1 %vm44_vm0, %v3548_v23  ;;  %v3589_v33 = vld [vmem:[%s5045_s0 + $0x30] sm:$0xff]  ;;  %v3593_v45 = vld [vmem:[%s5044_s1 + $0x58] sm:$0x3f]  ;;  %v26_v62 = vld [vmem:[%s5046_s6] ss:$8 sm:$0x3] }
  0x10   :  { %229 = vmatpush.msrb.mxu2 %v4015_v22  ;;  %456 = vmatpush.msrb.mxu0 %v3953_v9  ;;  %v3611_v34 = vld [vmem:[%s5044_s1 + $0x30] sm:$0x3f]  ;;  %v878_v46 = vld [vmem:[%s5044_s1 + $0x18] sm:$0x3f]  ;;  %v4222_v0 = vperm.slane %v26_v62, 1 }
  0x11   :  { %421 = vmatpush.msrb.mxu3 %v3927_v3  ;;  %372 = vmatpush.msrb.mxu1 %v3948_v8  ;;  %v3601_v35 = vld [vmem:[%s5044_s1 + $0x70] sm:$0x3f]  ;;  %v3612_v47 = vld [vmem:[%s5044_s1 + $0x38] sm:$0x3f] }
  0x12   :  { %3581 = vmatpush.msk.msra.mxu0 %vm44_vm0, %v3579_v24  ;;  %v3624_v37 = vld [vmem:[%s5044_s1 + $0x50] sm:$0x3f]  ;;  %v3634_v48 = vld [vmem:[%s5044_s1 + $0x78] sm:$0x3f] }
  0x13   :  { %3552 = vmatmul.msk.f32.vlgmr.msrb.gmra.mxu1 %vm40_vm1, %v3534_v21  ;;  %3563 = vmatmul.msk.f32.vlgmr.msrb.gmra.mxu0 %vm40_vm1, %v3557_v26  ;;  %v877_v38 = vld [vmem:[%s5044_s1 + $0x10] sm:$0x3f]  ;;  %v3625_v52 = vld [vmem:[%s5044_s1 + $0x58] sm:$0x3f] }
  0x14   :  { %630 = vmatpush.msra.mxu0 %v3920_v2  ;;  %3564 = vmatpush.msk.msra.mxu1 %vm44_vm0, %v3561_v28  ;;  %v3633_v40 = vld [vmem:[%s5044_s1 + $0x70] sm:$0x3f]  ;;  %v4203_v57 = vld [vmem:[%s5045_s0 + $0x58] sm:$0xff] }
  0x15   :  { %3522 = vmatmul.msk.f32.vlgmr.msra.gmra.mxu2 %vm40_vm1, %v28_v6  ;;  %3542 = vmatmul.msk.f32.vlgmr.msra.gmra.mxu3 %vm40_vm1, %v3534_v21  ;;  %v1155_v49 = vld [vmem:[%s5044_s1 + $0x10] sm:$0x3f] }
  0x16   :  { %3553 = vmatpush.msk.msra.mxu2 %vm44_vm0, %v321_v25  ;;  %3573 = vmatpush.msk.msra.mxu3 %vm44_vm0, %v3570_v27  ;;  %v3643_v53 = vld [vmem:[%s5044_s1 + $0x30] sm:$0x3f] }
  0x17   :  { %3594 = vmatpush.msk.msrb.mxu0 %vm44_vm0, %v3592_v29  ;;  %476 = vmatpush.msra.mxu1 %v3970_v13  ;;  %v3665_v54 = vld [vmem:[%s5044_s1 + $0x70] sm:$0x3f] }
  0x18   :  { %401 = vmatpush.msra.mxu2 %v3977_v14  ;;  %533 = vmatpush.msra.mxu3 %v3982_v15  ;;  %v3656_v58 = vld [vmem:[%s5044_s1 + $0x50] sm:$0x3f] }
  0x19   :  { %734 = vmatpush.msrb.mxu0 %v3953_v9  ;;  %3583 = vmatpush.msk.msrb.mxu1 %vm44_vm0, %v3580_v43  ;;  %v4214_v60 = vld [vmem:[%s5045_s0 + $0x50] sm:$0xff] }
  0x1a   :  { %v1433_v11 = vld [vmem:[%s5044_s1 + $0x10] sm:$0x3f] }
  0x1b   :  { %3565 = vmatmul.msk.f32.vlgmr.msra.gmra.mxu1 %vm40_vm1, %v3557_v26  ;;  %3582 = vmatmul.msk.f32.vlgmr.msra.gmra.mxu0 %vm40_vm1, %v3566_v31  ;;  %v3697_v25 = vld [vmem:[%s5044_s1 + $0x70] sm:$0x3f] }
  0x1c   :  { %3613 = vmatpush.msk.msra.mxu0 %vm44_vm0, %v3611_v34  ;;  %650 = vmatpush.msrb.mxu1 %v3948_v8  ;;  %v3688_v28 = vld [vmem:[%s5044_s1 + $0x50] sm:$0x3f] }
  0x1d   :  { %3540 = vmatmul.msk.f32.vlgmr.msrb.gmra.mxu2 %vm40_vm1, %v3534_v21  ;;  %3556 = vmatmul.msk.f32.vlgmr.msrb.gmra.mxu3 %vm40_vm1, %v3525_v17  ;;  %v3675_v21 = vld [vmem:[%s5044_s1 + $0x30] sm:$0x3f] }
  0x1e   :  { %3571 = vmatpush.msk.msrb.mxu2 %vm44_vm0, %v3569_v30  ;;  %908 = vmatpush.msra.mxu0 %v3920_v2 }
  0x1f   :  { %3587 = vmatpush.msk.msrb.mxu3 %vm44_vm0, %v600_v42  ;;  %3596 = vmatpush.msk.msra.mxu1 %vm44_vm0, %v3593_v45 }
  0x20   :  { %513 = vmatpush.msrb.mxu2 %v4015_v22 }
  0x21   :  { %699 = vmatpush.msrb.mxu3 %v3927_v3  ;;  %754 = vmatpush.msra.mxu1 %v3970_v13 }
  0x23   :  { %3595 = vmatmul.msk.f32.vlgmr.msrb.gmra.mxu0 %vm40_vm1, %v3589_v33  ;;  %3584 = vmatmul.msk.f32.vlgmr.msrb.gmra.mxu1 %vm40_vm1, %v3566_v31 }
  0x24   :  { %3626 = vmatpush.msk.msrb.mxu0 %vm44_vm0, %v3624_v37  ;;  %3615 = vmatpush.msk.msrb.mxu1 %vm44_vm0, %v3612_v47 }
  0x25   :  { %3554 = vmatmul.msk.f32.vlgmr.msra.gmra.mxu2 %vm40_vm1, %v3525_v17  ;;  %3574 = vmatmul.msk.f32.vlgmr.msra.gmra.mxu3 %vm40_vm1, %v3566_v31  ;;  %v4236_v17 = vperm.slane %v26_v62, 0 }
  0x26   :  { %3585 = vmatpush.msk.msra.mxu2 %vm44_vm0, %v599_v32  ;;  %1012 = vmatpush.msrb.mxu0 %v3953_v9 }
  0x27   :  { %3605 = vmatpush.msk.msra.mxu3 %vm44_vm0, %v3602_v44  ;;  %928 = vmatpush.msrb.mxu1 %v3948_v8 }
  0x28   :  { %679 = vmatpush.msra.mxu2 %v3977_v14 }
  0x29   :  { %811 = vmatpush.msra.mxu3 %v3982_v15 }
  0x2b   :  { %3614 = vmatmul.msk.f32.vlgmr.msra.gmra.mxu0 %vm40_vm1, %v3598_v36  ;;  %3597 = vmatmul.msk.f32.vlgmr.msra.gmra.mxu1 %vm40_vm1, %v3589_v33 }
  0x2c   :  { %3628 = vmatpush.msk.msra.mxu1 %vm44_vm0, %v3625_v52  ;;  %3645 = vmatpush.msk.msra.mxu0 %vm44_vm0, %v3643_v53 }
  0x2d   :  { %3572 = vmatmul.msk.f32.vlgmr.msrb.gmra.mxu2 %vm40_vm1, %v3566_v31  ;;  %3588 = vmatmul.msk.f32.vlgmr.msrb.gmra.mxu3 %vm40_vm1, %v3557_v26 }
  0x2e   :  { %3603 = vmatpush.msk.msrb.mxu2 %vm44_vm0, %v3601_v35  ;;  %3619 = vmatpush.msk.msrb.mxu3 %vm44_vm0, %v878_v46 }
  0x2f   :  { %1032 = vmatpush.msra.mxu1 %v3970_v13  ;;  %1186 = vmatpush.msra.mxu0 %v3920_v2 }
  0x30   :  { %791 = vmatpush.msrb.mxu2 %v4015_v22  ;;  %977 = vmatpush.msrb.mxu3 %v3927_v3 }
  0x33   :  { %3627 = vmatmul.msk.f32.vlgmr.msrb.gmra.mxu0 %vm40_vm1, %v4110_v39  ;;  %3616 = vmatmul.msk.f32.vlgmr.msrb.gmra.mxu1 %vm40_vm1, %v3598_v36 }
  0x34   :  { %3658 = vmatpush.msk.msrb.mxu0 %vm44_vm0, %v3656_v58 }
  0x35   :  { %3586 = vmatmul.msk.f32.vlgmr.msra.gmra.mxu2 %vm40_vm1, %v3557_v26  ;;  %3606 = vmatmul.msk.f32.vlgmr.msra.gmra.mxu3 %vm40_vm1, %v3598_v36 }
  0x36   :  { %3617 = vmatpush.msk.msra.mxu2 %vm44_vm0, %v877_v38  ;;  %3637 = vmatpush.msk.msra.mxu3 %vm44_vm0, %v3634_v48 }
  0x37   :  { %1290 = vmatpush.msrb.mxu0 %v3953_v9 }
  0x38   :  { %957 = vmatpush.msra.mxu2 %v3977_v14  ;;  %1089 = vmatpush.msra.mxu3 %v3982_v15 }
  0x3b   :  { %3629 = vmatmul.msk.f32.vlgmr.msra.gmra.mxu1 %vm40_vm1, %v4110_v39  ;;  %3646 = vmatmul.msk.f32.vlgmr.msra.gmra.mxu0 %vm40_vm1, %v4127_v41 }
  0x3c   :  { %3677 = vmatpush.msk.msra.mxu0 %vm44_vm0, %v3675_v21 }
  0x3d   :  { %3604 = vmatmul.msk.f32.vlgmr.msrb.gmra.mxu2 %vm40_vm1, %v3598_v36  ;;  %3620 = vmatmul.msk.f32.vlgmr.msrb.gmra.mxu3 %vm40_vm1, %v3589_v33 }
  0x3e   :  { %3635 = vmatpush.msk.msrb.mxu2 %vm44_vm0, %v3633_v40  ;;  %1464 = vmatpush.msra.mxu0 %v3920_v2  ;;  %v4260_v2 = vld [vmem:[%s5045_s0 + $0x68] sm:$0xff] }
  0x40   :  { %1069 = vmatpush.msrb.mxu2 %v4015_v22 }
  0x43   :  { %3659 = vmatmul.msk.f32.vlgmr.msrb.gmra.mxu0 %vm40_vm1, %v4214_v60 }
  0x44   :  { %3690 = vmatpush.msk.msrb.mxu0 %vm44_vm0, %v3688_v28 }
  0x45   :  { %3618 = vmatmul.msk.f32.vlgmr.msra.gmra.mxu2 %vm40_vm1, %v3589_v33  ;;  %3638 = vmatmul.msk.f32.vlgmr.msra.gmra.mxu3 %vm40_vm1, %v4127_v41 }
  0x46   :  { %3649 = vmatpush.msk.msra.mxu2 %vm44_vm0, %v1155_v49  ;;  %1568 = vmatpush.msrb.mxu0 %v3953_v9 }
  0x48   :  { %1235 = vmatpush.msra.mxu2 %v3977_v14 }
  0x4b   :  { %3678 = vmatmul.msk.f32.vlgmr.msra.gmra.mxu0 %vm40_vm1, %v4203_v57 }
  0x4d   :  { %3636 = vmatmul.msk.f32.vlgmr.msrb.gmra.mxu2 %vm40_vm1, %v4127_v41 }
  0x4e   :  { %3667 = vmatpush.msk.msrb.mxu2 %vm44_vm0, %v3665_v54 }
  0x50   :  { %1347 = vmatpush.msrb.mxu2 %v4015_v22 }
  0x55   :  { %3650 = vmatmul.msk.f32.vlgmr.msra.gmra.mxu2 %vm40_vm1, %v4110_v39 }
  0x56   :  { %3681 = vmatpush.msk.msra.mxu2 %vm44_vm0, %v1433_v11 }
  0x58   :  { %1513 = vmatpush.msra.mxu2 %v3977_v14 }
  0x5d   :  { %3668 = vmatmul.msk.f32.vlgmr.msrb.gmra.mxu2 %vm40_vm1, %v4203_v57 }
  0x5e   :  { %3699 = vmatpush.msk.msrb.mxu2 %vm44_vm0, %v3697_v25 }
  0x60   :  { %1625 = vmatpush.msrb.mxu2 %v4015_v22  ;;  %v4271_v22 = vld [vmem:[%s5045_s0 + $0x60] sm:$0xff] }
  0x61   :  { %3691 = vmatmul.msk.f32.vlgmr.msrb.gmra.mxu0 %vm40_vm1, %v4271_v22 }
  0x65   :  { %3682 = vmatmul.msk.f32.vlgmr.msra.gmra.mxu2 %vm40_vm1, %v4214_v60 }
  0x6d   :  { %3700 = vmatmul.msk.f32.vlgmr.msrb.gmra.mxu2 %vm40_vm1, %v4260_v2 }
  0x88   :  { %v68_v50 = vpop.f32.mrf.mxu2  ;;  %v137_v51 = vpop.f32.mrf.mxu3 }
  0x89   :  { %v193_v61 = vpop.f32.mrf.mxu1  ;;  %v354_v6 = vpop.f32.mrf.mxu0 }
  0x90   :  { %v88_v55 = vpop.f32.mrf.mxu2  ;;  %v173_v56 = vpop.f32.mrf.mxu3 }
  0x91   :  { %v138_v59 = vadd.f32 %v137_v51, %v88_v55  ;;  %v374_v20 = vpop.f32.mrf.mxu1  ;;  %v458_v23 = vpop.f32.mrf.mxu0 }
  0x93   :  { %v197_v63 = vadd.f32 %v193_v61, %v138_v59 }
  0x98   :  { %v117_v1 = vpop.f32.mrf.mxu2  ;;  %v251_v4 = vpop.f32.mrf.mxu3 }
  0x99   :  { %v255_v5 = vadd.f32 %v251_v4, %v197_v63  ;;  %v118_v7 = vadd.f32 %v117_v1, %v68_v50  ;;  %v478_v31 = vpop.f32.mrf.mxu1  ;;  %v632_v32 = vpop.f32.mrf.mxu0  ;;  %v1156_v1 = vld [vmem:[%s5044_s1 + $0x18] sm:$0x3f] }
  0x9a   :  { %3651 = vmatpush.msk.msrb.mxu3 %vm44_vm0, %v1156_v1 }
  0x9b   :  { %v4225_v10 = vadd.f32 %v4222_v0, %v255_v5  ;;  %v196_v16 = vadd.f32 %v173_v56, %v118_v7  ;;  %v3644_v5 = vld [vmem:[%s5044_s1 + $0x38] sm:$0x3f] }
  0x9c   :  { %1255 = vmatpush.msrb.mxu3 %v3927_v3  ;;  %3647 = vmatpush.msk.msrb.mxu1 %vm44_vm0, %v3644_v5  ;;  %v4434_v5 = vld [vmem:[%s5047_s2 + $0x20] sm:$0x3f] }
  0x9d   :  { %v264_v12 = vmax.f32 %v4225_v10, 0.0  ;;  %3652 = vmatmul.msk.f32.vlgmr.msrb.gmra.mxu3 %vm40_vm1, %v4110_v39 }
  0x9e   :  { %1206 = vmatpush.msrb.mxu1 %v3948_v8 }
  0x9f   :  { %299 = vrot.lane.b32.xlu2 %v264_v12, %s3862_s25  ;;  %3648 = vmatmul.msk.f32.vlgmr.msrb.gmra.mxu1 %vm40_vm1, %v4127_v41 }
  0xa0   :  { %v231_v18 = vpop.f32.mrf.mxu2  ;;  %v423_v26 = vpop.f32.mrf.mxu3 }
  0xa1   :  { %v254_v19 = vadd.f32 %v231_v18, %v196_v16  ;;  %v424_v30 = vadd.f32 %v423_v26, %v374_v20  ;;  %v736_v44 = vpop.f32.mrf.mxu0  ;;  %v652_v63 = vpop.f32.mrf.mxu1  ;;  %v3657_v16 = vld [vmem:[%s5044_s1 + $0x58] sm:$0x3f] }
  0xa2   :  { %3660 = vmatpush.msk.msra.mxu1 %vm44_vm0, %v3657_v16  ;;  %v3676_v26 = vld [vmem:[%s5044_s1 + $0x38] sm:$0x3f] }
  0xa3   :  { %v261_v14 = vadd.f32 %v4236_v17, %v254_v19  ;;  %v482_v34 = vadd.f32 %v478_v31, %v424_v30 }
  0xa4   :  { %1310 = vmatpush.msra.mxu1 %v3970_v13 }
  0xa5   :  { %v4245_v24 = vmax.f32 %v261_v14, 0.0  ;;  %v1434_v14 = vld [vmem:[%s5044_s1 + $0x18] sm:$0x3f] }
  0xa6   :  { %3679 = vmatpush.msk.msrb.mxu1 %vm44_vm0, %v3676_v26 }
  0xa7   :  { %266 = vrot.lane.b32.xlu0 %v4245_v24, %s3862_s25  ;;  %3661 = vmatmul.msk.f32.vlgmr.msra.gmra.mxu1 %vm40_vm1, %v4214_v60 }
  0xa8   :  { %v403_v27 = vpop.f32.mrf.mxu2  ;;  %v535_v36 = vpop.f32.mrf.mxu3  ;;  %1484 = vmatpush.msrb.mxu1 %v3948_v8 }
  0xa9   :  { %v404_v29 = vadd.f32 %v403_v27, %v354_v6  ;;  %v539_v40 = vadd.f32 %v535_v36, %v482_v34  ;;  %v910_v49 = vpop.f32.mrf.mxu0  ;;  %v3666_v6 = vld [vmem:[%s5044_s1 + $0x78] sm:$0x3f]  ;;  %v756_v7 = vpop.f32.mrf.mxu1 }
  0xaa   :  { %3669 = vmatpush.msk.msra.mxu3 %vm44_vm0, %v3666_v6  ;;  %v3698_v27 = vld [vmem:[%s5044_s1 + $0x78] sm:$0x3f]  ;;  %v4445_v6 = vld [vmem:[%s5047_s2 + $0x40] sm:$0x3f] }
  0xab   :  { %v481_v33 = vadd.f32 %v458_v23, %v404_v29  ;;  %v4282_v43 = vadd.f32 %v539_v40, %v4222_v0 }
  0xac   :  { %1367 = vmatpush.msra.mxu3 %v3982_v15 }
  0xad   :  { %v543_v46 = vmax.f32 %v4282_v43, 0.0  ;;  %3670 = vmatmul.msk.f32.vlgmr.msra.gmra.mxu3 %vm40_vm1, %v4203_v57 }
  0xae   :  { %3683 = vmatpush.msk.msrb.mxu3 %vm44_vm0, %v1434_v14  ;;  %v4459_v14 = vld [vmem:[%s5047_s2 + $0x60] sm:$0x3f] }
  0xaf   :  { %3680 = vmatmul.msk.f32.vlgmr.msrb.gmra.mxu1 %vm40_vm1, %v4203_v57 }
  0xb0   :  { %v515_v35 = vpop.f32.mrf.mxu2  ;;  %v701_v4 = vpop.f32.mrf.mxu3  ;;  %1533 = vmatpush.msrb.mxu3 %v3927_v3 }
  0xb1   :  { %v538_v37 = vadd.f32 %v515_v35, %v481_v33  ;;  %v1014_v55 = vpop.f32.mrf.mxu0  ;;  %v702_v39 = vadd.f32 %v701_v4, %v652_v63  ;;  %v930_v41 = vpop.f32.mrf.mxu1  ;;  %v4415_v63 = vld [vmem:[%s5047_s2] sm:$0x3f] }
  0xb2   :  { %3701 = vmatpush.msk.msra.mxu3 %vm44_vm0, %v3698_v27  ;;  %3703 = vmatpush.msk.msra.mxu0 %vm44_vm0, %v4415_v63 }
  0xb3   :  { %v540_v38 = vadd.f32 %v538_v37, %v4236_v17  ;;  %v760_v18 = vadd.f32 %v756_v7, %v702_v39 }
  0xb4   :  { %1645 = vmatpush.msra.mxu3 %v3982_v15  ;;  %3715 = vmatpush.msk.msrb.mxu0 %vm44_vm0, %v4434_v5 }
  0xb5   :  { %v4277_v42 = vmax.f32 %v540_v38, 0.0  ;;  %3684 = vmatmul.msk.f32.vlgmr.msrb.gmra.mxu3 %vm40_vm1, %v4214_v60  ;;  %v3689_v60 = vld [vmem:[%s5044_s1 + $0x58] sm:$0x3f] }
  0xb6   :  { %3692 = vmatpush.msk.msra.mxu1 %vm44_vm0, %v3689_v60 }
  0xb7   :  { %545 = vrot.lane.b32.xlu0 %v4277_v42, %s3862_s25 }
  0xb8   :  { %v681_v9 = vpop.f32.mrf.mxu2  ;;  %v813_v11 = vpop.f32.mrf.mxu3  ;;  %1588 = vmatpush.msra.mxu1 %v3970_v13 }
  0xb9   :  { %v682_v45 = vadd.f32 %v681_v9, %v632_v32  ;;  %v817_v19 = vadd.f32 %v813_v11, %v760_v18  ;;  %v1188_v28 = vpop.f32.mrf.mxu0  ;;  %v1034_v31 = vpop.f32.mrf.mxu1  ;;  %3693 = vmatmul.msk.f32.vlgmr.msra.gmra.mxu1 %vm40_vm1, %v4271_v22 }
  0xbb   :  { %v759_v47 = vadd.f32 %v736_v44, %v682_v45  ;;  %v4339_v25 = vadd.f32 %v817_v19, %v4222_v0 }
  0xbd   :  { %v821_v29 = vmax.f32 %v4339_v25, 0.0  ;;  %3702 = vmatmul.msk.f32.vlgmr.msra.gmra.mxu3 %vm40_vm1, %v4260_v2 }
  0xbf   :  { %578 = vrot.lane.b32.xlu0 %v543_v46, %s3862_s25 }
  0xc0   :  { %v793_v48 = vpop.f32.mrf.mxu2  ;;  %v979_v23 = vpop.f32.mrf.mxu3 }
  0xc1   :  { %v816_v50 = vadd.f32 %v793_v48, %v759_v47  ;;  %v980_v30 = vadd.f32 %v979_v23, %v930_v41  ;;  %v1292_v34 = vpop.f32.mrf.mxu0 }
  0xc3   :  { %v818_v51 = vadd.f32 %v816_v50, %v4236_v17  ;;  %v1038_v32 = vadd.f32 %v1034_v31, %v980_v30 }
  0xc5   :  { %v4289_v52 = vmax.f32 %v818_v51, 0.0 }
  0xc7   :  { %823 = vrot.lane.b32.xlu1 %v4289_v52, %s3862_s25 }
  0xc8   :  { %v959_v53 = vpop.f32.mrf.mxu2  ;;  %v1091_v8 = vpop.f32.mrf.mxu3 }
  0xc9   :  { %v960_v54 = vadd.f32 %v959_v53, %v910_v49  ;;  %v1095_v57 = vadd.f32 %v1091_v8, %v1038_v32  ;;  %v1466_v40 = vpop.f32.mrf.mxu0 }
  0xcb   :  { %v1037_v56 = vadd.f32 %v1014_v55, %v960_v54  ;;  %v4373_v36 = vadd.f32 %v1095_v57, %v4222_v0 }
  0xcd   :  { %v1099_v13 = vmax.f32 %v4373_v36, 0.0 }
  0xd0   :  { %v1071_v58 = vpop.f32.mrf.mxu2 }
  0xd1   :  { %v1094_v59 = vadd.f32 %v1071_v58, %v1037_v56 }
  0xd3   :  { %v1096_v61 = vadd.f32 %v1094_v59, %v4236_v17 }
  0xd5   :  { %v4294_v62 = vmax.f32 %v1096_v61, 0.0 }
  0xd7   :  { %1101 = vrot.lane.b32.xlu1 %v4294_v62, %s3862_s25 }
  0xd8   :  { %v1237_v3 = vpop.f32.mrf.mxu2 }
  0xd9   :  { %v1238_v33 = vadd.f32 %v1237_v3, %v1188_v28 }
  0xdb   :  { %v1315_v37 = vadd.f32 %v1292_v34, %v1238_v33 }
  0xde   :  { %v1570_v50 = vpop.f32.mrf.mxu0 }
  0xe0   :  { %v1349_v2 = vpop.f32.mrf.mxu2 }
  0xe1   :  { %v1372_v38 = vadd.f32 %v1349_v2, %v1315_v37 }
  0xe3   :  { %v1374_v22 = vadd.f32 %v1372_v38, %v4236_v17 }
  0xe5   :  { %v4378_v9 = vmax.f32 %v1374_v22, 0.0  ;;  %v4507_v22 = vld [vmem:[%s5047_s2 + $0x10] sm:$0x3f] }
  0xe6   :  { %3709 = vmatpush.msk.msra.mxu2 %vm44_vm0, %v4507_v22 }
  0xe8   :  { %v1515_v47 = vpop.f32.mrf.mxu2 }
  0xe9   :  { %v1516_v49 = vadd.f32 %v1515_v47, %v1466_v40 }
  0xeb   :  { %v1593_v53 = vadd.f32 %v1570_v50, %v1516_v49 }
  0xf0   :  { %v1627_v54 = vpop.f32.mrf.mxu2 }
  0xf1   :  { %v1650_v56 = vadd.f32 %v1627_v54, %v1593_v53  ;;  %v4534_v53 = vld [vmem:[%s5047_s2 + $0x8] sm:$0x3f] }
  0xf2   :  { %3706 = vmatpush.msk.msrb.mxu1 %vm44_vm0, %v4534_v53 }
  0xf3   :  { %v1652_v10 = vadd.f32 %v1650_v56, %v4236_v17 }
  0xf9   :  { %v4390_v48 = vpop.permute.xlu2 %299 }
  0xfa   :  { %v306_v51 = vmax.f32 %v264_v12, %v4390_v48  ;;  %v4408_v12 = vmax.f32 %v1652_v10, 0.0 }
 0x119   :  { %v4326_v20 = vpop.permute.xlu0 %266 }
 0x11a   :  { %v4330_v21 = vmax.f32 %v4245_v24, %v4326_v20  ;;  %v302_v2 = vsel %vm301_vm3, %v4326_v20, %v4390_v48 }
 0x11b   :  { %v304_v20 = vmax.f32 %v4245_v24, %v302_v2 }
 0x11c   :  { %271 = vrot.lane.b32.xlu2 %v4330_v21, %s3863_s22  ;;  %v1208_v11 = vpop.f32.mrf.mxu1 }
 0x120   :  { %v1257_v16 = vpop.f32.mrf.mxu3 }
 0x121   :  { %v1258_v27 = vadd.f32 %v1257_v16, %v1208_v11  ;;  %v4605_v11 = vld [vmem:[%s5047_s2 + $0x48] sm:$0x3f] }
 0x124   :  { %856 = vrot.lane.b32.xlu2 %v821_v29, %s3862_s25  ;;  %v1312_v25 = vpop.f32.mrf.mxu1 }
 0x125   :  { %v1316_v30 = vadd.f32 %v1312_v25, %v1258_v27  ;;  %v4627_v25 = vld [vmem:[%s5047_s2 + $0x70] sm:$0x3f] }
 0x129   :  { %v4367_v15 = vpop.permute.xlu0 %545 }
 0x12a   :  { %v548_v35 = vmax.f32 %v4277_v42, %v4367_v15 }
 0x12c   :  { %550 = vrot.lane.b32.xlu1 %v548_v35, %s3863_s22  ;;  %v1486_v31 = vpop.f32.mrf.mxu1 }
 0x131   :  { %v4396_v55 = vpop.permute.xlu0 %578 }
 0x132   :  { %v584_v59 = vmax.f32 %v543_v46, %v4396_v55  ;;  %v580_v24 = vsel %vm301_vm3, %v4367_v15, %v4396_v55 }
 0x133   :  { %v582_v54 = vmax.f32 %v4277_v42, %v580_v24 }
 0x134   :  { %1134 = vrot.lane.b32.xlu1 %v1099_v13, %s3862_s25 }
 0x136   :  { %v1590_v34 = vpop.f32.mrf.mxu1 }
 0x139   :  { %v4380_v44 = vpop.permute.xlu1 %823 }
 0x13a   :  { %v4384_v45 = vmax.f32 %v4289_v52, %v4380_v44 }
 0x13c   :  { %828 = vrot.lane.b32.xlu0 %v4384_v45, %s3863_s22  ;;  %1379 = vrot.lane.b32.xlu1 %v4378_v9, %s3862_s25 }
 0x144   :  { %308 = vrot.lane.b32.xlu0 %v306_v51, %s3863_s22 }
 0x149   :  { %v4398_v58 = vpop.permute.xlu1 %1101 }
 0x14a   :  { %v1104_v61 = vmax.f32 %v4294_v62, %v4398_v58 }
 0x14c   :  { %1106 = vrot.lane.b32.xlu2 %v1104_v61, %s3863_s22  ;;  %586 = vrot.lane.b32.xlu0 %v584_v59, %s3863_s22 }
 0x154   :  { %1657 = vrot.lane.b32.xlu0 %v4408_v12, %s3862_s25 }
 0x176   :  { %v272_v43 = vpop.permute.xlu2 %271 }
 0x177   :  { %v4420_v46 = vmax.f32 %v4330_v21, %v272_v43 }
 0x179   :  { %276 = vst.msk [vmem:[#allocation2] sm:$0xff] %vm275_vm2, %v4420_v46  ;;  %288 = vrot.lane.b32.xlu1 %v4420_v46, %s3864_s8 }
 0x17e   :  { %v4426_v17 = vpop.permute.xlu2 %856 }
 0x17f   :  { %v862_v1 = vmax.f32 %v821_v29, %v4426_v17  ;;  %v1369_v29 = vpop.f32.mrf.mxu3  ;;  %v858_v42 = vsel %vm301_vm3, %v4380_v44, %v4426_v17  ;;  %v4579_v17 = vld [vmem:[%s5047_s2 + $0x30] sm:$0x3f] }
 0x180   :  { %v1708_v4 = vld [vmem:[#allocation2] sm:$0xff]  ;;  %v1373_v3 = vadd.f32 %v1369_v29, %v1316_v30  ;;  %v860_v56 = vmax.f32 %v4289_v52, %v858_v42  ;;  %3721 = vmatpush.msk.msrb.mxu2 %vm44_vm0, %v4579_v17 }
 0x181   :  { %3704 = vmatmul.msk.f32.vlgmr.msra.gmra.mxu0 %vm275_vm2, %v1708_v4  ;;  %864 = vrot.lane.b32.xlu2 %v862_v1, %s3863_s22  ;;  %v4586_v4 = vld [vmem:[%s5047_s2 + $0x28] sm:$0x3f] }
 0x182   :  { %3727 = vmatpush.msk.msra.mxu0 %vm44_vm0, %v4445_v6  ;;  %v4483_v57 = vadd.f32 %v1373_v3, %v4222_v0  ;;  %3718 = vmatpush.msk.msra.mxu1 %vm44_vm0, %v4586_v4 }
 0x187   :  { %v1535_v8 = vpop.f32.mrf.mxu3 }
 0x188   :  { %v1536_v33 = vadd.f32 %v1535_v8, %v1486_v31 }
 0x189   :  { %283 = vrot.lane.b32.xlu2 %v4420_v46, %s3865_s11 }
 0x18a   :  { %v1594_v37 = vadd.f32 %v1590_v34, %v1536_v33 }
 0x18f   :  { %v1647_v38 = vpop.f32.mrf.mxu3 }
 0x191   :  { %278 = vrot.lane.b32.xlu2 %v4420_v46, %s3866_s12 }
 0x19e   :  { %v551_v7 = vpop.permute.xlu1 %550 }
 0x19f   :  { %v553_v39 = vmax.f32 %v548_v35, %v551_v7  ;;  %v1377_v35 = vmax.f32 %v4483_v57, 0.0  ;;  %v4591_v7 = vld [vmem:[%s5047_s2 + $0x50] sm:$0x3f] }
 0x1a1   :  { %555 = vst.msk [vmem:[#allocation2 + $0x30] sm:$0xff] %vm275_vm2, %v553_v39  ;;  %562 = vrot.lane.b32.xlu1 %v553_v39, %s3865_s11 }
 0x1a6   :  { %v1107_v18 = vpop.permute.xlu2 %1106  ;;  %v4451_v41 = vpop.permute.xlu1 %1134 }
 0x1a7   :  { %v4453_v19 = vmax.f32 %v1104_v61, %v1107_v18  ;;  %v1140_v21 = vmax.f32 %v1099_v13, %v4451_v41  ;;  %v4615_v18 = vld [vmem:[%s5047_s2 + $0x58] sm:$0x3f] }
 0x1a8   :  { %v1827_v23 = vld [vmem:[#allocation2 + $0x30] sm:$0xff] }
 0x1a9   :  { %1111 = vst.msk [vmem:[#allocation2 + $0x90] sm:$0xff] %vm275_vm2, %v4453_v19  ;;  %557 = vrot.lane.b32.xlu1 %v553_v39, %s3866_s12  ;;  %3716 = vmatmul.msk.f32.vlgmr.msrb.gmra.mxu0 %vm275_vm2, %v1827_v23  ;;  %v1136_v23 = vsel %vm301_vm3, %v4398_v58, %v4451_v41 }
 0x1aa   :  { %1142 = vrot.lane.b32.xlu0 %v1140_v21, %s3863_s22  ;;  %3739 = vmatpush.msk.msrb.mxu0 %vm44_vm0, %v4459_v14 }
 0x1ae   :  { %v829_v26 = vpop.permute.xlu0 %828  ;;  %v4509_v40 = vpop.permute.xlu1 %1379 }
 0x1af   :  { %v831_v28 = vmax.f32 %v4384_v45, %v829_v26  ;;  %v1651_v45 = vadd.f32 %v1647_v38, %v1594_v37  ;;  %v4516_v48 = vmax.f32 %v4378_v9, %v4509_v40  ;;  %v4673_v38 = vld [vmem:[%s5047_s2 + $0x78] sm:$0x3f] }
 0x1b0   :  { %v4493_v36 = vld [vmem:[#allocation2 + $0x90] sm:$0xff] }
 0x1b1   :  { %833 = vst.msk [vmem:[#allocation2 + $0x60] sm:$0xff] %vm275_vm2, %v831_v28  ;;  %845 = vrot.lane.b32.xlu1 %v831_v28, %s3864_s8  ;;  %840 = vrot.lane.b32.xlu2 %v831_v28, %s3865_s11  ;;  %v4521_v49 = vadd.f32 %v1651_v45, %v4222_v0  ;;  %v4539_v0 = vld [vmem:[%s5047_s2 + $0x18] sm:$0x3f] }
 0x1b2   :  { %567 = vrot.lane.b32.xlu0 %v553_v39, %s3864_s8  ;;  %3712 = vmatpush.msk.msrb.mxu3 %vm44_vm0, %v4539_v0 }
 0x1b3   :  { %v1655_v51 = vmax.f32 %v4521_v49, 0.0 }
 0x1b6   :  { %v309_v32 = vpop.permute.xlu0 %308 }
 0x1b7   :  { %v311_v47 = vmax.f32 %v304_v20, %v309_v32 }
 0x1b8   :  { %v4473_v60 = vld [vmem:[#allocation2 + $0x60] sm:$0xff] }
 0x1b9   :  { %1123 = vrot.lane.b32.xlu1 %v4453_v19, %s3864_s8  ;;  %835 = vrot.lane.b32.xlu2 %v831_v28, %s3866_s12 }
 0x1ba   :  { %1118 = vrot.lane.b32.xlu0 %v4453_v19, %s3865_s11  ;;  %3728 = vmatmul.msk.f32.vlgmr.msra.gmra.mxu0 %vm275_vm2, %v4473_v60 }
 0x1bb   :  { %3750 = vmatpush.msk.msra.mxu0 %vm44_vm0, %v4415_v63 }
 0x1be   :  { %v587_v13 = vpop.permute.xlu0 %586 }
 0x1bf   :  { %v589_v55 = vmax.f32 %v582_v54, %v587_v13 }
 0x1c1   :  { %1412 = vrot.lane.b32.xlu1 %v1377_v35, %s3862_s25  ;;  %1113 = vrot.lane.b32.xlu2 %v4453_v19, %s3866_s12 }
 0x1c2   :  { %293 = vrot.lane.b32.xlu0 %v4420_v46, %s3867_s16  ;;  %3740 = vmatmul.msk.f32.vlgmr.msrb.gmra.mxu0 %vm275_vm2, %v4493_v36 }
 0x1c3   :  { %3758 = vmatpush.msk.msrb.mxu0 %vm44_vm0, %v4434_v5 }
 0x1c6   :  { %v4528_v50 = vpop.permute.xlu0 %1657 }
 0x1c7   :  { %v4548_v15 = vmax.f32 %v4408_v12, %v4528_v50 }
 0x1c9   :  { %572 = vrot.lane.b32.xlu1 %v553_v39, %s3867_s16  ;;  %313 = vrot.lane.b32.xlu2 %v311_v47, %s3868_s19  ;;  %v4600_v39 = vld [vmem:[%s5047_s2 + $0x38] sm:$0x3f] }
 0x1ca   :  { %1384 = vrot.lane.b32.xlu0 %v4516_v48, %s3863_s22  ;;  %3724 = vmatpush.msk.msra.mxu3 %vm44_vm0, %v4600_v39 }
 0x1d1   :  { %1690 = vrot.lane.b32.xlu2 %v1655_v51, %s3862_s25  ;;  %1662 = vrot.lane.b32.xlu1 %v4548_v15, %s3863_s22 }
 0x1d2   :  { %591 = vrot.lane.b32.xlu0 %v589_v55, %s3868_s19 }
 0x1d9   :  { %850 = vrot.lane.b32.xlu2 %v831_v28, %s3867_s16  ;;  %1128 = vrot.lane.b32.xlu1 %v4453_v19, %s3867_s16  ;;  %v1138_v28 = vmax.f32 %v4294_v62, %v1136_v23  ;;  %v4642_v62 = vld [vmem:[%s5047_s2 + $0x68] sm:$0x3f] }
 0x1db   :  { %v865_v59 = vpop.permute.xlu2 %864 }
 0x1dc   :  { %v867_v61 = vmax.f32 %v860_v56, %v865_v59 }
 0x1de   :  { %869 = vrot.lane.b32.xlu0 %v867_v61, %s3868_s19 }
 0x1e3   :  { %v284_v10 = vpop.permute.xlu2 %283 }
 0x1e4   :  { %287 = vst.msk [vmem:[#allocation2 + $0x10] sm:$0xff] %vm275_vm2, %v284_v10 }
 0x1eb   :  { %v279_v43 = vpop.permute.xlu2 %278  ;;  %v289_v46 = vpop.permute.xlu1 %288  ;;  %v1767_v1 = vld [vmem:[#allocation2 + $0x10] sm:$0xff] }
 0x1ec   :  { %282 = vst.msk [vmem:[#allocation2 + $0x8] sm:$0xff] %vm275_vm2, %v279_v43  ;;  %3710 = vmatmul.msk.f32.vlgmr.msra.gmra.mxu2 %vm275_vm2, %v1767_v1  ;;  %3751 = vmatmul.msk.f32.vlgmr.msra.gmra.mxu0 %vm275_vm2, %v1767_v1 }
 0x1ed   :  { %292 = vst.msk [vmem:[#allocation2 + $0x18] sm:$0xff] %vm275_vm2, %v289_v46  ;;  %3766 = vmatpush.msk.msra.mxu0 %vm44_vm0, %v4445_v6  ;;  %3733 = vmatpush.msk.msra.mxu2 %vm44_vm0, %v4591_v7 }
 0x1f3   :  { %v1737_v52 = vld [vmem:[#allocation2 + $0x8] sm:$0xff] }
 0x1f4   :  { %3707 = vmatmul.msk.f32.vlgmr.msrb.gmra.mxu1 %vm275_vm2, %v1737_v52  ;;  %v4572_v44 = vld [vmem:[#allocation2 + $0x18] sm:$0xff] }
 0x1f5   :  { %3713 = vmatmul.msk.f32.vlgmr.msrb.gmra.mxu3 %vm275_vm2, %v4572_v44  ;;  %3730 = vmatpush.msk.msrb.mxu1 %vm44_vm0, %v4605_v11 }
 0x1f6   :  { %3736 = vmatpush.msk.msrb.mxu3 %vm44_vm0, %v4615_v18 }
 0x20b   :  { %v841_v16 = vpop.permute.xlu2 %840 }
 0x20c   :  { %844 = vst.msk [vmem:[#allocation2 + $0x70] sm:$0xff] %vm275_vm2, %v841_v16 }
 0x213   :  { %v563_v19 = vpop.permute.xlu1 %562  ;;  %v836_v21 = vpop.permute.xlu2 %835  ;;  %v4644_v32 = vld [vmem:[#allocation2 + $0x70] sm:$0xff] }
 0x214   :  { %566 = vst.msk [vmem:[#allocation2 + $0x40] sm:$0xff] %vm275_vm2, %v563_v19 }
 0x215   :  { %839 = vst.msk [vmem:[#allocation2 + $0x68] sm:$0xff] %vm275_vm2, %v836_v21 }
 0x21b   :  { %v558_v26 = vpop.permute.xlu1 %557  ;;  %v1114_v27 = vpop.permute.xlu2 %1113  ;;  %v1887_v29 = vld [vmem:[#allocation2 + $0x40] sm:$0xff] }
 0x21c   :  { %561 = vst.msk [vmem:[#allocation2 + $0x38] sm:$0xff] %vm275_vm2, %v558_v26  ;;  %v1143_v30 = vpop.permute.xlu0 %1142  ;;  %3722 = vmatmul.msk.f32.vlgmr.msrb.gmra.mxu2 %vm275_vm2, %v1887_v29  ;;  %3759 = vmatmul.msk.f32.vlgmr.msrb.gmra.mxu0 %vm275_vm2, %v1887_v29  ;;  %v4662_v37 = vld [vmem:[#allocation2 + $0x68] sm:$0xff] }
 0x21d   :  { %1117 = vst.msk [vmem:[#allocation2 + $0x98] sm:$0xff] %vm275_vm2, %v1114_v27  ;;  %v1145_v58 = vmax.f32 %v1138_v28, %v1143_v30  ;;  %3745 = vmatpush.msk.msrb.mxu2 %vm44_vm0, %v4627_v25  ;;  %3774 = vmatpush.msk.msrb.mxu0 %vm44_vm0, %v4459_v14 }
 0x21f   :  { %1147 = vrot.lane.b32.xlu2 %v1145_v58, %s3868_s19 }
 0x223   :  { %v846_v41 = vpop.permute.xlu1 %845  ;;  %v314_v31 = vpop.permute.xlu2 %313  ;;  %v1857_v3 = vld [vmem:[#allocation2 + $0x38] sm:$0xff] }
 0x224   :  { %849 = vst.msk [vmem:[#allocation2 + $0x78] sm:$0xff] %vm275_vm2, %v846_v41  ;;  %v568_v8 = vpop.permute.xlu0 %567  ;;  %3719 = vmatmul.msk.f32.vlgmr.msra.gmra.mxu1 %vm275_vm2, %v1857_v3  ;;  %3734 = vmatmul.msk.f32.vlgmr.msra.gmra.mxu2 %vm275_vm2, %v4644_v32  ;;  %v4684_v49 = vld [vmem:[#allocation2 + $0x98] sm:$0xff] }
 0x225   :  { %317 = vst.msk [vmem:[#allocation2 + $0x28] sm:$0xff] %vm275_vm2, %v314_v31  ;;  %3767 = vmatmul.msk.f32.vlgmr.msra.gmra.mxu0 %vm275_vm2, %v4644_v32  ;;  %3742 = vmatpush.msk.msra.mxu1 %vm44_vm0, %v4642_v62 }
 0x226   :  { %571 = vst.msk [vmem:[#allocation2 + $0x48] sm:$0xff] %vm275_vm2, %v568_v8  ;;  %3754 = vmatpush.msk.msra.mxu2 %vm44_vm0, %v4507_v22  ;;  %3782 = vmatpush.msk.msra.mxu0 %vm44_vm0, %v4415_v63 }
 0x22b   :  { %v1124_v33 = vpop.permute.xlu1 %1123  ;;  %v4660_v34 = vpop.permute.xlu2 %1690  ;;  %v4695_v55 = vld [vmem:[#allocation2 + $0x78] sm:$0xff] }
 0x22c   :  { %1127 = vst.msk [vmem:[#allocation2 + $0xa8] sm:$0xff] %vm275_vm2, %v1124_v33  ;;  %v1696_v2 = vmax.f32 %v1655_v51, %v4660_v34  ;;  %v1119_v13 = vpop.permute.xlu0 %1118  ;;  %3731 = vmatmul.msk.f32.vlgmr.msrb.gmra.mxu1 %vm275_vm2, %v4662_v37  ;;  %v2265_v43 = vld [vmem:[#allocation2 + $0x28] sm:$0xff]  ;;  %v1692_v19 = vsel %vm301_vm3, %v4528_v50, %v4660_v34  ;;  %v1733_v50 = vpop.f32.mrf.mxu0 }
 0x22d   :  { %1122 = vst.msk [vmem:[#allocation2 + $0xa0] sm:$0xff] %vm275_vm2, %v1119_v13  ;;  %v1917_v20 = vld [vmem:[#allocation2 + $0x48] sm:$0xff]  ;;  %3752 = vmatpush.msk.msrb.mxu1 %vm44_vm0, %v4534_v53 }
 0x22e   :  { %3725 = vmatmul.msk.f32.vlgmr.msra.gmra.mxu3 %vm275_vm2, %v1917_v20  ;;  %1698 = vrot.lane.b32.xlu2 %v1696_v2, %s3863_s22 }
 0x22f   :  { %3748 = vmatpush.msk.msra.mxu3 %vm44_vm0, %v4673_v38 }
 0x233   :  { %v4682_v45 = vpop.permute.xlu1 %1412  ;;  %v851_v47 = vpop.permute.xlu2 %850  ;;  %v4716_v59 = vld [vmem:[#allocation2 + $0xa8] sm:$0xff] }
 0x234   :  { %v1418_v24 = vmax.f32 %v1377_v35, %v4682_v45  ;;  %854 = vst.msk [vmem:[#allocation2 + $0x80] sm:$0xff] %vm275_vm2, %v851_v47  ;;  %v294_v51 = vpop.permute.xlu0 %293  ;;  %3743 = vmatmul.msk.f32.vlgmr.msra.gmra.mxu1 %vm275_vm2, %v4684_v49  ;;  %v4692_v54 = vld [vmem:[#allocation2 + $0xa0] sm:$0xff]  ;;  %v1414_v41 = vsel %vm301_vm3, %v4509_v40, %v4682_v45 }
 0x235   :  { %297 = vst.msk [vmem:[#allocation2 + $0x20] sm:$0xff] %vm275_vm2, %v294_v51  ;;  %3746 = vmatmul.msk.f32.vlgmr.msrb.gmra.mxu2 %vm275_vm2, %v4692_v54  ;;  %3775 = vmatmul.msk.f32.vlgmr.msrb.gmra.mxu0 %vm275_vm2, %v4692_v54  ;;  %v1416_v8 = vmax.f32 %v4378_v9, %v1414_v41 }
 0x236   :  { %3737 = vmatmul.msk.f32.vlgmr.msrb.gmra.mxu3 %vm275_vm2, %v4695_v55  ;;  %1420 = vrot.lane.b32.xlu0 %v1418_v24, %s3863_s22 }
 0x237   :  { %3760 = vmatpush.msk.msra.mxu1 %vm44_vm0, %v4586_v4  ;;  %3756 = vmatpush.msk.msrb.mxu3 %vm44_vm0, %v4539_v0 }
 0x238   :  { %3762 = vmatpush.msk.msrb.mxu2 %vm44_vm0, %v4579_v17  ;;  %3790 = vmatpush.msk.msrb.mxu0 %vm44_vm0, %v4434_v5 }
 0x23b   :  { %v573_v57 = vpop.permute.xlu1 %572  ;;  %v4756_v46 = vld [vmem:[#allocation2 + $0x80] sm:$0xff] }
 0x23c   :  { %576 = vst.msk [vmem:[#allocation2 + $0x50] sm:$0xff] %vm275_vm2, %v573_v57  ;;  %v1385_v35 = vpop.permute.xlu0 %1384  ;;  %3753 = vmatmul.msk.f32.vlgmr.msrb.gmra.mxu1 %vm275_vm2, %v4572_v44  ;;  %v2240_v42 = vld [vmem:[#allocation2 + $0x20] sm:$0xff] }
 0x23d   :  { %v1387_v56 = vmax.f32 %v4516_v48, %v1385_v35  ;;  %3755 = vmatmul.msk.f32.vlgmr.msra.gmra.mxu2 %vm275_vm2, %v2240_v42  ;;  %3783 = vmatmul.msk.f32.vlgmr.msra.gmra.mxu0 %vm275_vm2, %v4473_v60 }
 0x23e   :  { %3749 = vmatmul.msk.f32.vlgmr.msra.gmra.mxu3 %vm275_vm2, %v4716_v59  ;;  %3768 = vmatpush.msk.msrb.mxu1 %vm44_vm0, %v4605_v11 }
 0x23f   :  { %1389 = vst.msk [vmem:[#allocation2 + $0xc0] sm:$0xff] %vm275_vm2, %v1387_v56  ;;  %1401 = vrot.lane.b32.xlu0 %v1387_v56, %s3864_s8  ;;  %1396 = vrot.lane.b32.xlu1 %v1387_v56, %s3865_s11 }
 0x240   :  { %3764 = vmatpush.msk.msra.mxu3 %vm44_vm0, %v4600_v39  ;;  %3770 = vmatpush.msk.msra.mxu2 %vm44_vm0, %v4591_v7 }
 0x241   :  { %3798 = vmatpush.msk.msra.mxu0 %vm44_vm0, %v4445_v6 }
 0x243   :  { %v1663_v60 = vpop.permute.xlu1 %1662  ;;  %v2332_v48 = vld [vmem:[#allocation2 + $0x50] sm:$0xff] }
 0x244   :  { %v1665_v61 = vmax.f32 %v4548_v15, %v1663_v60  ;;  %v592_v10 = vpop.permute.xlu0 %591  ;;  %3761 = vmatmul.msk.f32.vlgmr.msra.gmra.mxu1 %vm275_vm2, %v1917_v20 }
 0x245   :  { %595 = vst.msk [vmem:[#allocation2 + $0x58] sm:$0xff] %vm275_vm2, %v592_v10  ;;  %3763 = vmatmul.msk.f32.vlgmr.msrb.gmra.mxu2 %vm275_vm2, %v2332_v48  ;;  %3791 = vmatmul.msk.f32.vlgmr.msrb.gmra.mxu0 %vm275_vm2, %v4493_v36 }
 0x246   :  { %1667 = vst.msk [vmem:[#allocation2 + $0xf0] sm:$0xff] %vm275_vm2, %v1665_v61  ;;  %3757 = vmatmul.msk.f32.vlgmr.msrb.gmra.mxu3 %vm275_vm2, %v2265_v43  ;;  %1674 = vrot.lane.b32.xlu2 %v1665_v61, %s3865_s11  ;;  %v2745_v1 = vld [vmem:[#allocation2 + $0xc0] sm:$0xff]  ;;  %s3870_s11 = smov 96  }
 0x247   :  { %1679 = vrot.lane.b32.xlu0 %v1665_v61, %s3864_s8  ;;  %1391 = vrot.lane.b32.xlu1 %v1387_v56, %s3866_s12  ;;  %s3869_s8 = smov 112  }
 0x248   :  { %3776 = vmatpush.msk.msra.mxu1 %vm44_vm0, %v4642_v62  ;;  %3778 = vmatpush.msk.msrb.mxu2 %vm44_vm0, %v4627_v25 }
 0x249   :  { %3806 = vmatpush.msk.msrb.mxu0 %vm44_vm0, %v4459_v14  ;;  %3772 = vmatpush.msk.msrb.mxu3 %vm44_vm0, %v4615_v18 }
 0x24b   :  { %v1129_v36 = vpop.permute.xlu1 %1128 }
 0x24c   :  { %1132 = vst.msk [vmem:[#allocation2 + $0xb0] sm:$0xff] %vm275_vm2, %v1129_v36  ;;  %v2357_v15 = vld [vmem:[#allocation2 + $0x58] sm:$0xff]  ;;  %3769 = vmatmul.msk.f32.vlgmr.msrb.gmra.mxu1 %vm275_vm2, %v4695_v55 }
 0x24d   :  { %3771 = vmatmul.msk.f32.vlgmr.msra.gmra.mxu2 %vm275_vm2, %v4756_v46  ;;  %3799 = vmatmul.msk.f32.vlgmr.msra.gmra.mxu0 %vm275_vm2, %v2745_v1  ;;  %v2845_v16 = vld [vmem:[#allocation2 + $0xf0] sm:$0xff] }
 0x24e   :  { %3765 = vmatmul.msk.f32.vlgmr.msra.gmra.mxu3 %vm275_vm2, %v2357_v15  ;;  %1406 = vrot.lane.b32.xlu2 %v1387_v56, %s3867_s16 }
 0x24f   :  { %1669 = vrot.lane.b32.xlu1 %v1665_v61, %s3866_s12  ;;  %3784 = vmatpush.msk.msrb.mxu1 %vm44_vm0, %v4534_v53 }
 0x250   :  { %v870_v52 = vpop.permute.xlu0 %869  ;;  %3786 = vmatpush.msk.msra.mxu2 %vm44_vm0, %v4507_v22  ;;  %3814 = vmatpush.msk.msra.mxu0 %vm44_vm0, %v4415_v63 }
 0x251   :  { %873 = vst.msk [vmem:[#allocation2 + $0x88] sm:$0xff] %vm275_vm2, %v870_v52  ;;  %3780 = vmatpush.msk.msra.mxu3 %vm44_vm0, %v4673_v38 }
 0x253   :  { %v4773_v44 = vld [vmem:[#allocation2 + $0xb0] sm:$0xff] }
 0x254   :  { %3777 = vmatmul.msk.f32.vlgmr.msra.gmra.mxu1 %vm275_vm2, %v4716_v59 }
 0x255   :  { %3779 = vmatmul.msk.f32.vlgmr.msrb.gmra.mxu2 %vm275_vm2, %v4773_v44  ;;  %3807 = vmatmul.msk.f32.vlgmr.msrb.gmra.mxu0 %vm275_vm2, %v2845_v16 }
 0x256   :  { %3792 = vmatpush.msk.msra.mxu1 %vm44_vm0, %v4586_v4  ;;  %3794 = vmatpush.msk.msrb.mxu2 %vm44_vm0, %v4579_v17 }
 0x257   :  { %1684 = vrot.lane.b32.xlu1 %v1665_v61, %s3867_s16  ;;  %3822 = vmatpush.msk.msrb.mxu0 %vm44_vm0, %v4434_v5 }
 0x258   :  { %v4787_v63 = vld [vmem:[#allocation2 + $0x88] sm:$0xff] }
 0x259   :  { %3773 = vmatmul.msk.f32.vlgmr.msrb.gmra.mxu3 %vm275_vm2, %v4787_v63 }
 0x25a   :  { %3788 = vmatpush.msk.msrb.mxu3 %vm44_vm0, %v4539_v0 }
 0x25c   :  { %3785 = vmatmul.msk.f32.vlgmr.msrb.gmra.mxu1 %vm275_vm2, %v4662_v37 }
 0x25d   :  { %3787 = vmatmul.msk.f32.vlgmr.msra.gmra.mxu2 %vm275_vm2, %v4644_v32  ;;  %3815 = vmatmul.msk.f32.vlgmr.msra.gmra.mxu0 %vm275_vm2, %v4644_v32  ;;  %v1853_v32 = vpop.f32.mrf.mxu0 }
 0x25e   :  { %3802 = vmatpush.msk.msra.mxu2 %vm44_vm0, %v4591_v7  ;;  %3830 = vmatpush.msk.msra.mxu0 %vm44_vm0, %v4445_v6 }
 0x25f   :  { %3800 = vmatpush.msk.msrb.mxu1 %vm44_vm0, %v4605_v11 }
 0x264   :  { %3793 = vmatmul.msk.f32.vlgmr.msra.gmra.mxu1 %vm275_vm2, %v4684_v49 }
 0x265   :  { %3795 = vmatmul.msk.f32.vlgmr.msrb.gmra.mxu2 %vm275_vm2, %v4692_v54  ;;  %3823 = vmatmul.msk.f32.vlgmr.msrb.gmra.mxu0 %vm275_vm2, %v4692_v54  ;;  %v1973_v49 = vpop.f32.mrf.mxu0 }
 0x266   :  { %3810 = vmatpush.msk.msrb.mxu2 %vm44_vm0, %v4627_v25  ;;  %3838 = vmatpush.msk.msrb.mxu0 %vm44_vm0, %v4459_v14  ;;  %v1694_v14 = vmax.f32 %v4408_v12, %v1692_v19  ;;  %v4840_v12 = vld [vmem:[%s5046_s6 + $0x1] ss:$0 sm:$0xff] }
 0x267   :  { %3808 = vmatpush.msk.msra.mxu1 %vm44_vm0, %v4642_v62  ;;  %v1736_v27 = vadd.f32 %v1733_v50, %v4840_v12 }
 0x26d   :  { %v2093_v15 = vpop.f32.mrf.mxu0 }
 0x26f   :  { %v1793_v30 = vpop.f32.mrf.mxu2 }
 0x271   :  { %v1763_v26 = vpop.f32.mrf.mxu1 }
 0x272   :  { %v1766_v28 = vadd.f32 %v1763_v26, %v1736_v27 }
 0x274   :  { %v1796_v31 = vadd.f32 %v1793_v30, %v1766_v28 }
 0x278   :  { %v1823_v58 = vpop.f32.mrf.mxu3 }
 0x279   :  { %v1148_v5 = vpop.permute.xlu2 %1147  ;;  %v1826_v3 = vadd.f32 %v1823_v58, %v1796_v31 }
 0x27a   :  { %1151 = vst.msk [vmem:[#allocation2 + $0xb8] sm:$0xff] %vm275_vm2, %v1148_v5 }
 0x27b   :  { %v1856_v13 = vadd.f32 %v1853_v32, %v1826_v3 }
 0x281   :  { %v4818_v6 = vld [vmem:[#allocation2 + $0xb8] sm:$0xff] }
 0x282   :  { %3781 = vmatmul.msk.f32.vlgmr.msra.gmra.mxu3 %vm275_vm2, %v4818_v6 }
 0x283   :  { %3796 = vmatpush.msk.msra.mxu3 %vm44_vm0, %v4600_v39 }
 0x288   :  { %v1699_v21 = vpop.permute.xlu2 %1698 }
 0x289   :  { %v1701_v23 = vmax.f32 %v1694_v14, %v1699_v21 }
 0x28a   :  { %3789 = vmatmul.msk.f32.vlgmr.msrb.gmra.mxu3 %vm275_vm2, %v4695_v55 }
 0x28b   :  { %1703 = vrot.lane.b32.xlu2 %v1701_v23, %s3868_s19  ;;  %3804 = vmatpush.msk.msrb.mxu3 %vm44_vm0, %v4615_v18 }
 0x292   :  { %3797 = vmatmul.msk.f32.vlgmr.msra.gmra.mxu3 %vm275_vm2, %v4716_v59 }
 0x293   :  { %3812 = vmatpush.msk.msra.mxu3 %vm44_vm0, %v4673_v38 }
 0x29f   :  { %v1913_v47 = vpop.f32.mrf.mxu2 }
 0x2a0   :  { %v1675_v29 = vpop.permute.xlu2 %1674 }
 0x2a1   :  { %1678 = vst.msk [vmem:[#allocation2 + $0x100] sm:$0xff] %vm275_vm2, %v1675_v29  ;;  %v1883_v37 = vpop.f32.mrf.mxu1 }
 0x2a2   :  { %v1886_v20 = vadd.f32 %v1883_v37, %v1856_v13 }
 0x2a4   :  { %v1916_v24 = vadd.f32 %v1913_v47, %v1886_v20 }
 0x2a7   :  { %v2033_v42 = vpop.f32.mrf.mxu2 }
 0x2a8   :  { %v1407_v33 = vpop.permute.xlu2 %1406  ;;  %v1421_v34 = vpop.permute.xlu0 %1420  ;;  %v2895_v50 = vld [vmem:[#allocation2 + $0x100] sm:$0xff] }
 0x2a9   :  { %1410 = vst.msk [vmem:[#allocation2 + $0xe0] sm:$0xff] %vm275_vm2, %v1407_v33  ;;  %v1423_v2 = vmax.f32 %v1416_v8, %v1421_v34  ;;  %v2003_v9 = vpop.f32.mrf.mxu1 }
 0x2ab   :  { %1425 = vrot.lane.b32.xlu0 %v1423_v2, %s3868_s19 }
 0x2b1   :  { %v1943_v51 = vpop.f32.mrf.mxu3  ;;  %v1397_v40 = vpop.permute.xlu1 %1396 }
 0x2b2   :  { %v1946_v45 = vadd.f32 %v1943_v51, %v1916_v24  ;;  %1400 = vst.msk [vmem:[#allocation2 + $0xd0] sm:$0xff] %vm275_vm2, %v1397_v40  ;;  %v1402_v54 = vpop.permute.xlu0 %1401  ;;  %v2123_v52 = vpop.f32.mrf.mxu1 }
 0x2b3   :  { %1405 = vst.msk [vmem:[#allocation2 + $0xd8] sm:$0xff] %vm275_vm2, %v1402_v54 }
 0x2b4   :  { %v1976_v57 = vadd.f32 %v1973_v49, %v1946_v45 }
 0x2b6   :  { %v2006_v35 = vadd.f32 %v2003_v9, %v1976_v57 }
 0x2b8   :  { %v2036_v56 = vadd.f32 %v2033_v42, %v2006_v35  ;;  %v2153_v5 = vpop.f32.mrf.mxu2 }
 0x2b9   :  { %v2063_v60 = vpop.f32.mrf.mxu3  ;;  %v1392_v48 = vpop.permute.xlu1 %1391  ;;  %v2795_v61 = vld [vmem:[#allocation2 + $0xd0] sm:$0xff] }
 0x2ba   :  { %v2066_v10 = vadd.f32 %v2063_v60, %v2036_v56  ;;  %1395 = vst.msk [vmem:[#allocation2 + $0xc8] sm:$0xff] %vm275_vm2, %v1392_v48  ;;  %v1680_v43 = vpop.permute.xlu0 %1679  ;;  %3803 = vmatmul.msk.f32.vlgmr.msra.gmra.mxu2 %vm275_vm2, %v2795_v61  ;;  %v2820_v36 = vld [vmem:[#allocation2 + $0xd8] sm:$0xff]  ;;  %3831 = vmatmul.msk.f32.vlgmr.msra.gmra.mxu0 %vm275_vm2, %v2795_v61 }
 0x2bb   :  { %1683 = vst.msk [vmem:[#allocation2 + $0x108] sm:$0xff] %vm275_vm2, %v1680_v43  ;;  %3805 = vmatmul.msk.f32.vlgmr.msrb.gmra.mxu3 %vm275_vm2, %v2820_v36  ;;  %3818 = vmatpush.msk.msra.mxu2 %vm44_vm0, %v4507_v22 }
 0x2bc   :  { %v2096_v1 = vadd.f32 %v2093_v15, %v2066_v10  ;;  %3820 = vmatpush.msk.msrb.mxu3 %vm44_vm0, %v4539_v0 }
 0x2be   :  { %v2126_v16 = vadd.f32 %v2123_v52, %v2096_v1 }
 0x2c0   :  { %v2156_v19 = vadd.f32 %v2153_v5, %v2126_v16 }
 0x2c1   :  { %v2183_v14 = vpop.f32.mrf.mxu3  ;;  %v1670_v21 = vpop.permute.xlu1 %1669  ;;  %v2770_v23 = vld [vmem:[#allocation2 + $0xc8] sm:$0xff] }
 0x2c2   :  { %v4861_v26 = vadd.f32 %v2183_v14, %v2156_v19  ;;  %1673 = vst.msk [vmem:[#allocation2 + $0xf8] sm:$0xff] %vm275_vm2, %v1670_v21  ;;  %3801 = vmatmul.msk.f32.vlgmr.msrb.gmra.mxu1 %vm275_vm2, %v2770_v23  ;;  %3811 = vmatmul.msk.f32.vlgmr.msrb.gmra.mxu2 %vm275_vm2, %v2895_v50  ;;  %v2920_v22 = vld [vmem:[#allocation2 + $0x108] sm:$0xff] }
 0x2c3   :  { %3813 = vmatmul.msk.f32.vlgmr.msra.gmra.mxu3 %vm275_vm2, %v2920_v22  ;;  %3839 = vmatmul.msk.f32.vlgmr.msrb.gmra.mxu0 %vm275_vm2, %v2895_v50 }
 0x2c4   :  { %v2187_v0 = vmax.f32 %v4861_v26, 0.0  ;;  %3816 = vmatpush.msk.msrb.mxu1 %vm44_vm0, %v4534_v53  ;;  %3826 = vmatpush.msk.msrb.mxu2 %vm44_vm0, %v4579_v17  ;;  %v3166_v53 = vld [vmem:[#allocation2 + $0xe0] sm:$0xff] }
 0x2c5   :  { %3828 = vmatpush.msk.msra.mxu3 %vm44_vm0, %v4600_v39  ;;  %v2215_v39 = vpop.f32.mrf.mxu0 }
 0x2c6   :  { %2189 = vrot.lane.b32.xlu2 %v2187_v0, %s3869_s8  ;;  %v2218_v31 = vadd.f32 %v2215_v39, %v4840_v12 }
 0x2c9   :  { %v1685_v27 = vpop.permute.xlu1 %1684  ;;  %v2870_v28 = vld [vmem:[#allocation2 + $0xf8] sm:$0xff] }
 0x2ca   :  { %1688 = vst.msk [vmem:[#allocation2 + $0x110] sm:$0xff] %vm275_vm2, %v1685_v27  ;;  %3809 = vmatmul.msk.f32.vlgmr.msra.gmra.mxu1 %vm275_vm2, %v2870_v28  ;;  %3819 = vmatmul.msk.f32.vlgmr.msra.gmra.mxu2 %vm275_vm2, %v4756_v46 }
 0x2cb   :  { %3821 = vmatmul.msk.f32.vlgmr.msrb.gmra.mxu3 %vm275_vm2, %v4787_v63  ;;  %3824 = vmatpush.msk.msra.mxu1 %vm44_vm0, %v4586_v4 }
 0x2cc   :  { %3834 = vmatpush.msk.msra.mxu2 %vm44_vm0, %v4591_v7  ;;  %3836 = vmatpush.msk.msrb.mxu3 %vm44_vm0, %v4615_v18  ;;  %v2236_v7 = vpop.f32.mrf.mxu1  ;;  %v2286_v18 = vpop.f32.mrf.mxu3 }
 0x2cd   :  { %v2239_v32 = vadd.f32 %v2236_v7, %v2218_v31 }
 0x2d1   :  { %v3258_v17 = vld [vmem:[#allocation2 + $0x110] sm:$0xff] }
 0x2d2   :  { %3817 = vmatmul.msk.f32.vlgmr.msrb.gmra.mxu1 %vm275_vm2, %v4695_v55  ;;  %3827 = vmatmul.msk.f32.vlgmr.msrb.gmra.mxu2 %vm275_vm2, %v4773_v44 }
 0x2d3   :  { %3829 = vmatmul.msk.f32.vlgmr.msra.gmra.mxu3 %vm275_vm2, %v4818_v6  ;;  %3832 = vmatpush.msk.msrb.mxu1 %vm44_vm0, %v4605_v11  ;;  %v2261_v11 = vpop.f32.mrf.mxu2 }
 0x2d4   :  { %3842 = vmatpush.msk.msrb.mxu2 %vm44_vm0, %v4627_v25  ;;  %3844 = vmatpush.msk.msra.mxu3 %vm44_vm0, %v4673_v38  ;;  %v2307_v25 = vpop.f32.mrf.mxu0  ;;  %v2328_v38 = vpop.f32.mrf.mxu1  ;;  %v2264_v34 = vadd.f32 %v2261_v11, %v2239_v32 }
 0x2d6   :  { %v2289_v13 = vadd.f32 %v2286_v18, %v2264_v34 }
 0x2d8   :  { %v2310_v24 = vadd.f32 %v2307_v25, %v2289_v13 }
 0x2da   :  { %3825 = vmatmul.msk.f32.vlgmr.msra.gmra.mxu1 %vm275_vm2, %v4716_v59  ;;  %3835 = vmatmul.msk.f32.vlgmr.msra.gmra.mxu2 %vm275_vm2, %v3166_v53  ;;  %v2378_v59 = vpop.f32.mrf.mxu3  ;;  %v2331_v54 = vadd.f32 %v2328_v38, %v2310_v24 }
 0x2db   :  { %3840 = vmatpush.msk.msra.mxu1 %vm44_vm0, %v4642_v62  ;;  %v2353_v55 = vpop.f32.mrf.mxu2 }
 0x2dc   :  { %v2399_v46 = vpop.f32.mrf.mxu0  ;;  %v2420_v62 = vpop.f32.mrf.mxu1  ;;  %v2356_v35 = vadd.f32 %v2353_v55, %v2331_v54 }
 0x2de   :  { %v2381_v60 = vadd.f32 %v2378_v59, %v2356_v35 }
 0x2e0   :  { %v2402_v10 = vadd.f32 %v2399_v46, %v2381_v60 }
 0x2e2   :  { %3833 = vmatmul.msk.f32.vlgmr.msrb.gmra.mxu1 %vm275_vm2, %v2820_v36  ;;  %3843 = vmatmul.msk.f32.vlgmr.msrb.gmra.mxu2 %vm275_vm2, %v3258_v17  ;;  %v2470_v63 = vpop.f32.mrf.mxu3  ;;  %v2423_v15 = vadd.f32 %v2420_v62, %v2402_v10 }
 0x2e3   :  { %v2445_v44 = vpop.f32.mrf.mxu2 }
 0x2e4   :  { %v2491_v6 = vpop.f32.mrf.mxu0  ;;  %v2512_v29 = vpop.f32.mrf.mxu1  ;;  %v2448_v14 = vadd.f32 %v2445_v44, %v2423_v15 }
 0x2e5   :  { %v1704_v4 = vpop.permute.xlu2 %1703 }
 0x2e6   :  { %1707 = vst.msk [vmem:[#allocation2 + $0x118] sm:$0xff] %vm275_vm2, %v1704_v4  ;;  %v2473_v23 = vadd.f32 %v2470_v63, %v2448_v14  ;;  %v3321_v14 = vld [vmem:[%s5048_s3 + $0x10] sm:$0xff] }
 0x2e8   :  { %v2494_v53 = vadd.f32 %v2491_v6, %v2473_v23 }
 0x2ea   :  { %3841 = vmatmul.msk.f32.vlgmr.msra.gmra.mxu1 %vm275_vm2, %v2920_v22  ;;  %v2515_v11 = vadd.f32 %v2512_v29, %v2494_v53 }
 0x2eb   :  { %v2537_v30 = vpop.f32.mrf.mxu2 }
 0x2ec   :  { %v2594_v3 = vpop.f32.mrf.mxu0  ;;  %v2615_v8 = vpop.f32.mrf.mxu1  ;;  %v2540_v38 = vadd.f32 %v2537_v30, %v2515_v11  ;;  %v3438_v11 = vld [vmem:[%s5049_s4 + $0x68] sm:$0xff] }
 0x2ed   :  { %v2597_v33 = vadd.f32 %v2594_v3, %v4840_v12  ;;  %v3283_v45 = vld [vmem:[#allocation2 + $0x118] sm:$0xff] }
 0x2ef   :  { %v2618_v20 = vadd.f32 %v2615_v8, %v2597_v33 }
 0x2f3   :  { %v2636_v37 = vpop.f32.mrf.mxu2 }
 0x2f4   :  { %v2639_v49 = vadd.f32 %v2636_v37, %v2618_v20  ;;  %v2678_v40 = vpop.f32.mrf.mxu0  ;;  %v2699_v57 = vpop.f32.mrf.mxu1 }
 0x2fb   :  { %v2720_v56 = vpop.f32.mrf.mxu2 }
 0x2fc   :  { %v2766_v36 = vpop.f32.mrf.mxu0 }
 0x304   :  { %v2866_v22 = vpop.f32.mrf.mxu0 }
 0x305   :  { %v2562_v58 = vpop.f32.mrf.mxu3 }
 0x306   :  { %v2565_v55 = vadd.f32 %v2562_v58, %v2540_v38  ;;  %v3435_v38 = vld [vmem:[%s5049_s4 + $0x50] sm:$0xff] }
 0x308   :  { %v2566_v59 = vmax.f32 %v2565_v55, 0.0  ;;  %v3434_v55 = vld [vmem:[%s5049_s4 + $0x48] sm:$0xff] }
 0x30c   :  { %v2973_v44 = vpop.f32.mrf.mxu0 }
 0x30d   :  { %v2657_v47 = vpop.f32.mrf.mxu3  ;;  %v2976_v6 = vadd.f32 %v2973_v44, %v4840_v12  ;;  %v3430_v44 = vld [vmem:[%s5049_s4 + $0x28] sm:$0xff] }
 0x30e   :  { %v2660_v51 = vadd.f32 %v2657_v47, %v2639_v49 }
 0x310   :  { %v2681_v9 = vadd.f32 %v2678_v40, %v2660_v51 }
 0x312   :  { %v2702_v42 = vadd.f32 %v2699_v57, %v2681_v9  ;;  %v3320_v9 = vld [vmem:[%s5048_s3 + $0x8] sm:$0xff] }
 0x313   :  { %3364 = vmatpush.msrb.mxu1 %v3320_v9  ;;  %v3440_v9 = vld [vmem:[%s5046_s6 + $0x3] ss:$0 sm:$0xff] }
 0x314   :  { %v2723_v48 = vadd.f32 %v2720_v56, %v2702_v42  ;;  %v3057_v58 = vpop.f32.mrf.mxu0 }
 0x315   :  { %v2741_v61 = vpop.f32.mrf.mxu3 }
 0x316   :  { %v2744_v43 = vadd.f32 %v2741_v61, %v2723_v48  ;;  %v3319_v48 = vld [vmem:[%s5048_s3] sm:$0xff] }
 0x317   :  { %3365 = vmatpush.msrb.mxu1 %v3319_v48 }
 0x318   :  { %v2769_v1 = vadd.f32 %v2766_v36, %v2744_v43 }
 0x31d   :  { %v1426_v41 = vpop.permute.xlu0 %1425 }
 0x31e   :  { %1429 = vst.msk [vmem:[#allocation2 + $0xe8] sm:$0xff] %vm275_vm2, %v1426_v41 }
 0x320   :  { %v2190_v46 = vpop.permute.xlu2 %2189 }
 0x321   :  { %v2192_v62 = vmax.f32 %v2187_v0, %v2190_v46  ;;  %v3432_v46 = vld [vmem:[%s5049_s4 + $0x38] sm:$0xff] }
 0x325   :  { %v3191_v2 = vld [vmem:[#allocation2 + $0xe8] sm:$0xff] }
 0x326   :  { %3837 = vmatmul.msk.f32.vlgmr.msrb.gmra.mxu3 %vm275_vm2, %v3191_v2 }
 0x32e   :  { %3845 = vmatmul.msk.f32.vlgmr.msra.gmra.mxu3 %vm275_vm2, %v3283_v45 }
 0x337   :  { %v3141_v2 = vpop.f32.mrf.mxu0 }
 0x33d   :  { %v2816_v52 = vpop.f32.mrf.mxu2 }
 0x33e   :  { %v2841_v19 = vpop.f32.mrf.mxu3 }
 0x33f   :  { %v2791_v16 = vpop.f32.mrf.mxu1 }
 0x340   :  { %v2794_v5 = vadd.f32 %v2791_v16, %v2769_v1  ;;  %v3233_v40 = vpop.f32.mrf.mxu0  ;;  %v3371_v16 = vld [vmem:[%s5048_s3 + $0x28] sm:$0xff] }
 0x341   :  { %3389 = vmatpush.msra.mxu2 %v3371_v16 }
 0x342   :  { %v2819_v21 = vadd.f32 %v2816_v52, %v2794_v5  ;;  %v3370_v5 = vld [vmem:[%s5048_s3 + $0x20] sm:$0xff] }
 0x343   :  { %3390 = vmatpush.msra.mxu2 %v3370_v5 }
 0x344   :  { %v2844_v50 = vadd.f32 %v2841_v19, %v2819_v21  ;;  %v3322_v19 = vld [vmem:[%s5048_s3 + $0x18] sm:$0xff] }
 0x345   :  { %v2916_v4 = vpop.f32.mrf.mxu2  ;;  %3341 = vmatpush.msra.mxu0 %v3322_v19 }
 0x346   :  { %v2869_v27 = vadd.f32 %v2866_v22, %v2844_v50  ;;  %v2941_v39 = vpop.f32.mrf.mxu3  ;;  %v3397_v50 = vld [vmem:[%s5048_s3 + $0x38] sm:$0xff]  ;;  %v3396_v22 = vld [vmem:[%s5048_s3 + $0x30] sm:$0xff] }
 0x347   :  { %v2891_v28 = vpop.f32.mrf.mxu1  ;;  %3342 = vmatpush.msra.mxu0 %v3321_v14  ;;  %3415 = vmatpush.msrb.mxu3 %v3397_v50 }
 0x348   :  { %v2894_v17 = vadd.f32 %v2891_v28, %v2869_v27 }
 0x349   :  { %3416 = vmatpush.msrb.mxu3 %v3396_v22 }
 0x34a   :  { %v2919_v7 = vadd.f32 %v2916_v4, %v2894_v17 }
 0x34c   :  { %v2944_v18 = vadd.f32 %v2941_v39, %v2919_v7  ;;  %v3439_v39 = vld [vmem:[%s5049_s4 + $0x70] sm:$0xff] }
 0x34d   :  { %v3015_v41 = vpop.f32.mrf.mxu2  ;;  %3446 = vmatpush.msrb.mxu0 %v3439_v39 }
 0x34e   :  { %v2945_v25 = vmax.f32 %v2944_v18, 0.0  ;;  %v3036_v31 = vpop.f32.mrf.mxu3  ;;  %v3437_v18 = vld [vmem:[%s5049_s4 + $0x60] sm:$0xff] }
 0x34f   :  { %v2994_v63 = vpop.f32.mrf.mxu1  ;;  %3447 = vmatpush.msrb.mxu0 %v3438_v11 }
 0x350   :  { %2947 = vrot.lane.b32.xlu0 %v2945_v25, %s3869_s8  ;;  %v2997_v29 = vadd.f32 %v2994_v63, %v2976_v6  ;;  %v3429_v63 = vld [vmem:[%s5049_s4 + $0x20] sm:$0xff]  ;;  %v3428_v6 = vld [vmem:[%s5049_s4 + $0x18] sm:$0xff] }
 0x351   :  { %3448 = vmatpush.msrb.mxu0 %v3437_v18 }
 0x352   :  { %v3018_v30 = vadd.f32 %v3015_v41, %v2997_v29  ;;  %v3427_v29 = vld [vmem:[%s5049_s4 + $0x10] sm:$0xff]  ;;  %v3426_v41 = vld [vmem:[%s5049_s4 + $0x8] sm:$0xff] }
 0x354   :  { %v3039_v3 = vadd.f32 %v3036_v31, %v3018_v30  ;;  %v3425_v30 = vld [vmem:[%s5049_s4] sm:$0xff]  ;;  %v3476_v31 = vld [vmem:[%s5050_s5 + $0x50] sm:$0xf] }
 0x355   :  { %v3099_v34 = vpop.f32.mrf.mxu2  ;;  %3851 = vmatpush.msk.msra.mxu1 %vm3482_vm5, %v3476_v31 }
 0x356   :  { %v3060_v32 = vadd.f32 %v3057_v58, %v3039_v3  ;;  %v3120_v26 = vpop.f32.mrf.mxu3  ;;  %v3475_v3 = vld [vmem:[%s5050_s5 + $0x48] sm:$0xff]  ;;  %v3474_v58 = vld [vmem:[%s5050_s5 + $0x40] sm:$0xff] }
 0x357   :  { %v3078_v8 = vpop.f32.mrf.mxu1  ;;  %3492 = vmatpush.msra.mxu1 %v3475_v3 }
 0x358   :  { %2568 = vrot.lane.b32.xlu0 %v2566_v59, %s3869_s8  ;;  %v3081_v33 = vadd.f32 %v3078_v8, %v3060_v32  ;;  %v3473_v32 = vld [vmem:[%s5050_s5 + $0x38] sm:$0xff]  ;;  %v3472_v8 = vld [vmem:[%s5050_s5 + $0x30] sm:$0xff] }
 0x359   :  { %3493 = vmatpush.msra.mxu1 %v3474_v58 }
 0x35a   :  { %v3102_v37 = vadd.f32 %v3099_v34, %v3081_v33  ;;  %v3471_v33 = vld [vmem:[%s5050_s5 + $0x28] sm:$0xff]  ;;  %v3470_v34 = vld [vmem:[%s5050_s5 + $0x20] sm:$0xff] }
 0x35b   :  { %3494 = vmatpush.msra.mxu1 %v3473_v32 }
 0x35c   :  { %v3123_v0 = vadd.f32 %v3120_v26, %v3102_v37  ;;  %v3469_v37 = vld [vmem:[%s5050_s5 + $0x18] sm:$0xff] }
 0x35d   :  { %v3187_v49 = vpop.f32.mrf.mxu2  ;;  %3495 = vmatpush.msra.mxu1 %v3472_v8 }
 0x35e   :  { %v3144_v13 = vadd.f32 %v3141_v2, %v3123_v0 }
 0x35f   :  { %v3162_v20 = vpop.f32.mrf.mxu1  ;;  %3496 = vmatpush.msra.mxu1 %v3471_v33 }
 0x360   :  { %2194 = vrot.lane.b32.xlu0 %v2192_v62, %s3870_s11  ;;  %v3165_v47 = vadd.f32 %v3162_v20, %v3144_v13 }
 0x361   :  { %3497 = vmatpush.msra.mxu1 %v3470_v34 }
 0x362   :  { %v3190_v24 = vadd.f32 %v3187_v49, %v3165_v47  ;;  %v3422_v49 = vld [vmem:[%s5046_s6 + $0x2] ss:$0 sm:$0xff] }
 0x363   :  { %3498 = vmatpush.msra.mxu1 %v3469_v37 }
 0x365   :  { %v3279_v35 = vpop.f32.mrf.mxu2 }
 0x367   :  { %v3254_v54 = vpop.f32.mrf.mxu1 }
 0x3a9   :  { %v3212_v12 = vpop.f32.mrf.mxu3 }
 0x3aa   :  { %v3215_v51 = vadd.f32 %v3212_v12, %v3190_v24 }
 0x3ac   :  { %v3236_v45 = vadd.f32 %v3233_v40, %v3215_v51  ;;  %v3468_v40 = vld [vmem:[%s5050_s5 + $0x10] sm:$0xff] }
 0x3ad   :  { %3499 = vmatpush.msra.mxu1 %v3468_v40 }
 0x3ae   :  { %v3257_v57 = vadd.f32 %v3254_v54, %v3236_v45  ;;  %v3467_v45 = vld [vmem:[%s5050_s5 + $0x8] sm:$0xff]  ;;  %v3466_v54 = vld [vmem:[%s5050_s5] sm:$0xff] }
 0x3af   :  { %3500 = vmatpush.msra.mxu1 %v3467_v45 }
 0x3b0   :  { %v3282_v42 = vadd.f32 %v3279_v35, %v3257_v57 }
 0x3b1   :  { %v3304_v56 = vpop.f32.mrf.mxu3  ;;  %3501 = vmatpush.msra.mxu1 %v3466_v54 }
 0x3b2   :  { %v3307_v60 = vadd.f32 %v3304_v56, %v3282_v42  ;;  %v3477_v56 = vld [vmem:[%s5046_s6 + $0x4] ss:$0 sm:$0xff] }
 0x3b4   :  { %v3308_v61 = vmax.f32 %v3307_v60, 0.0 }
 0x3b6   :  { %3310 = vrot.lane.b32.xlu1 %v3308_v61, %s3869_s8 }
 0x3c2   :  { %v2948_v10 = vpop.permute.xlu0 %2947 }
 0x3c3   :  { %v2950_v43 = vmax.f32 %v2945_v25, %v2948_v10  ;;  %v3436_v25 = vld [vmem:[%s5049_s4 + $0x58] sm:$0xff] }
 0x3c4   :  { %3449 = vmatpush.msrb.mxu0 %v3436_v25 }
 0x3c5   :  { %2952 = vrot.lane.b32.xlu1 %v2950_v43, %s3870_s11 }
 0x3c6   :  { %3450 = vmatpush.msrb.mxu0 %v3435_v38 }
 0x3c8   :  { %3451 = vmatpush.msrb.mxu0 %v3434_v55 }
 0x3ca   :  { %v2569_v36 = vpop.permute.xlu0 %2568 }
 0x3cb   :  { %v2571_v15 = vmax.f32 %v2566_v59, %v2569_v36  ;;  %v3433_v59 = vld [vmem:[%s5049_s4 + $0x40] sm:$0xff] }
 0x3cc   :  { %3452 = vmatpush.msrb.mxu0 %v3433_v59 }
 0x3cd   :  { %2573 = vrot.lane.b32.xlu1 %v2571_v15, %s3870_s11 }
 0x3ce   :  { %3453 = vmatpush.msrb.mxu0 %v3432_v46 }
 0x3d2   :  { %v2195_v1 = vpop.permute.xlu0 %2194 }
 0x3d3   :  { %v2197_v52 = vmax.f32 %v2192_v62, %v2195_v1  ;;  %v3431_v62 = vld [vmem:[%s5049_s4 + $0x30] sm:$0xff] }
 0x3d4   :  { %3454 = vmatpush.msrb.mxu0 %v3431_v62 }
 0x3d5   :  { %3847 = vmatmul.msk.f32.vlgmr.msrb.gmra.mxu1 %vm3323_vm4, %v2197_v52 }
 0x3d6   :  { %3455 = vmatpush.msrb.mxu0 %v3430_v44 }
 0x3d8   :  { %3456 = vmatpush.msrb.mxu0 %v3429_v63 }
 0x3da   :  { %3457 = vmatpush.msrb.mxu0 %v3428_v6 }
 0x3dc   :  { %3458 = vmatpush.msrb.mxu0 %v3427_v29 }
 0x3de   :  { %3459 = vmatpush.msrb.mxu0 %v3426_v41 }
 0x3e0   :  { %3460 = vmatpush.msrb.mxu0 %v3425_v30 }
 0x428   :  { %v3311_v21 = vpop.permute.xlu1 %3310 }
 0x429   :  { %v3313_v23 = vmax.f32 %v3308_v61, %v3311_v21 }
 0x42b   :  { %3315 = vrot.lane.b32.xlu2 %v3313_v23, %s3870_s11 }
 0x437   :  { %v2953_v27 = vpop.permute.xlu1 %2952 }
 0x438   :  { %v2955_v28 = vmax.f32 %v2950_v43, %v2953_v27 }
 0x43a   :  { %3848 = vmatmul.msk.f32.vlgmr.msra.gmra.mxu2 %vm3323_vm4, %v2955_v28 }
 0x43f   :  { %v2574_v53 = vpop.permute.xlu1 %2573 }
 0x440   :  { %v2576_v17 = vmax.f32 %v2571_v15, %v2574_v53 }
 0x442   :  { %3846 = vmatmul.msk.f32.vlgmr.msra.gmra.mxu0 %vm3323_vm4, %v2576_v17 }
 0x452   :  { %v3367_v0 = vpop.f32.mrf.mxu1 }
 0x485   :  { %v3316_v4 = vpop.permute.xlu2 %3315 }
 0x486   :  { %v3318_v7 = vmax.f32 %v3313_v23, %v3316_v4 }
 0x488   :  { %3849 = vmatmul.msk.f32.vlgmr.msrb.gmra.mxu3 %vm3323_vm4, %v3318_v7 }
 0x4bd   :  { %v3392_v13 = vpop.f32.mrf.mxu2 }
 0x4bf   :  { %v3344_v26 = vpop.f32.mrf.mxu0 }
 0x4c0   :  { %v3368_v2 = vadd.f32 %v3367_v0, %v3344_v26 }
 0x4c2   :  { %v3395_v20 = vadd.f32 %v3392_v13, %v3368_v2 }
 0x50b   :  { %v3418_v47 = vpop.f32.mrf.mxu3 }
 0x50c   :  { %v3421_v24 = vadd.f32 %v3418_v47, %v3395_v20 }
 0x50e   :  { %v3423_v12 = vadd.f32 %v3422_v49, %v3421_v24 }
 0x510   :  { %v3424_v51 = vmax.f32 %v3423_v12, 0.0 }
 0x512   :  { %3850 = vmatmul.msk.f32.vlgmr.msrb.gmra.mxu0 %vm3441_vm6, %v3424_v51 }
 0x58f   :  { %v3462_v57 = vpop.f32.mrf.mxu0 }
 0x590   :  { %v3463_v35 = vadd.f32 %v3462_v57, %v3440_v9 }
 0x592   :  { %v3465_v42 = vmax.f32 %v3463_v35, 0.0 }
 0x594   :  { %3852 = vmatmul.msk.f32.vlgmr.msra.gmra.mxu1 %vm3478_vm7, %v3465_v42 }
 0x611   :  { %v3503_v60 = vpop.f32.mrf.mxu1 }
 0x612   :  { %v3504_v48 = vadd.f32 %v3503_v60, %v3477_v56 }
 0x614   :  { %3507 = vst.msk [vmem:[%s5051_s7] sm:$0xff] %vm3506_vm8, %v3504_v48 }

</bundles_post_ra>
